<compile_context>
chip_gen: v7x
topology: tpu7x:2x2x1
jax: 0.10.0
libtpu: 0.0.40
codegen_flags: <defaults>
</compile_context>

<pallas_src>
import jax
import jax.numpy as jnp
from jax.experimental import pallas as pl
from jax.experimental.pallas import tpu as pltpu

_EPS = 1e-5


# ------------------------------ Pallas kernel -------------------------------

def _basic_block_kernel(xp_ref, w1_ref, b1_ref, w2_ref, b2_ref, out_ref, o1p_ref):
    """Fused conv1+bn1+relu -> conv2+bn2+add+relu for one (batch, h-tile).

    xp_ref : (1, H+4, W+4, Cp)  bf16   input, zero-padded by 2 in H/W, channels
                                        padded to Cp (lane multiple).
    w*_ref : (3, 3, Cp, Cp)     bf16   HWIO conv weights with BN scale folded in.
    b*_ref : (1, Cp)            f32    folded BN bias.
    out_ref: (1, TH, W, Cp)     f32    output tile (lane-dense, Cp = 128k).
    o1p_ref: (TH+2, W+2, Cp)    bf16   scratch: conv1 output for this tile plus
                                        a 1-row/col zero halo (conv2's input).
    """
    TH = out_ref.shape[1]
    W = out_ref.shape[2]
    Cp = out_ref.shape[3]
    H = xp_ref.shape[1] - 4

    r0 = pl.multiple_of(pl.program_id(1) * TH, TH)        # first output row of tile

    # Input slab covering this tile + the 2-row halo both convs need.
    # Dynamic slice is along an outer (non lane/sublane) dim -> cheap.
    xs = xp_ref[0, pl.ds(r0, TH + 4), :, :]               # (TH+4, W+4, Cp) bf16

    # ---------------- conv1 (BN folded) + relu over TH+2 halo rows ------------
    m1 = (TH + 2) * W
    acc1 = jnp.zeros((m1, Cp), jnp.float32)
    for kh in range(3):
        for kw in range(3):
            patch = xs[kh:kh + TH + 2, 1 + kw:1 + kw + W, :].reshape(m1, Cp)
            acc1 += jnp.dot(patch, w1_ref[kh, kw],
                            preferred_element_type=jnp.float32)
    o1 = jnp.maximum(acc1 + b1_ref[...], 0.0).reshape(TH + 2, W, Cp)

    # Halo rows that fall outside the image must be exact zeros (conv2 padding).
    row = r0 - 1 + jax.lax.broadcasted_iota(jnp.int32, (TH + 2, 1, 1), 0)
    o1 = jnp.where((row >= 0) & (row < H), o1, 0.0).astype(o1p_ref.dtype)

    # Zero W-borders of the scratch. They are constant, and the interior is
    # fully rewritten every step, so write them only on the first h-tile of
    # each batch element (scratch persists across grid iterations per core).
    @pl.when(pl.program_id(1) == 0)
    def _():
        o1p_ref[:, 0:1, :] = jnp.zeros((TH + 2, 1, Cp), o1p_ref.dtype)
        o1p_ref[:, W + 1:W + 2, :] = jnp.zeros((TH + 2, 1, Cp), o1p_ref.dtype)

    o1p_ref[:, 1:W + 1, :] = o1

    # ---------------- conv2 (BN folded) + residual + relu ---------------------
    o1p = o1p_ref[...]                                     # (TH+2, W+2, Cp) bf16
    m2 = TH * W
    acc2 = jnp.zeros((m2, Cp), jnp.float32)
    for kh in range(3):
        for kw in range(3):
            patch = o1p[kh:kh + TH, kw:kw + W, :].reshape(m2, Cp)
            acc2 += jnp.dot(patch, w2_ref[kh, kw],
                            preferred_element_type=jnp.float32)

    # identity = this tile's input rows (channel-padded entries are zero).
    identity = xs[2:TH + 2, 2:W + 2, :].astype(jnp.float32).reshape(m2, Cp)
    y = jnp.maximum(acc2 + b2_ref[...] + identity, 0.0)
    out_ref[...] = y.reshape(1, TH, W, Cp).astype(out_ref.dtype)


# -------------------------------- JAX glue -----------------------------------

def _fold_bn(gamma, beta, mean, var):
    scale = gamma / jnp.sqrt(var + _EPS)
    bias = beta - mean * scale
    return scale, bias


def _prep_weight(w_oihw, scale, cpad):
    """(Cout, Cin, 3, 3) OIHW -> (3, 3, Cpad, Cpad) HWIO bf16 with BN scale folded."""
    cout, cin = w_oihw.shape[0], w_oihw.shape[1]
    w = w_oihw * scale[:, None, None, None]                 # fold BN scale per Cout
    w = jnp.transpose(w, (2, 3, 1, 0))                      # (kh, kw, Cin, Cout)
    w = jnp.pad(w, ((0, 0), (0, 0), (0, cpad - cin), (0, cpad - cout)))
    return w.astype(jnp.bfloat16)


def _prep_bias(b, cpad):
    return jnp.pad(b, (0, cpad - b.shape[0])).reshape(1, cpad).astype(jnp.float32)


def _pick_th(H, W, target_rows=1024):
    """Largest divisor of H with TH*W <= target_rows (amortizes per-step overhead)."""
    th = 1
    for cand in range(1, H + 1):
        if H % cand == 0 and cand * W <= target_rows:
            th = cand
    return th


def basic_block_forward(x_nchw, params, *, tile_h=None):
    """ResNet BasicBlock forward (stride=1, no downsample). x in NCHW, f32."""
    x = jnp.transpose(x_nchw, (0, 2, 3, 1)).astype(jnp.float32)     # NHWC
    N, H, W, C = x.shape
    planes = params["w1"].shape[0]
    assert planes == C, "stride=1 / no-downsample BasicBlock needs inplanes == planes"

    cpad = max(128, ((C + 127) // 128) * 128)                # lane-dense channels
    TH = tile_h if tile_h is not None else _pick_th(H, W)
    assert H % TH == 0, "tile_h must divide H"

    s1, b1 = _fold_bn(params["g1"], params["b1"], params["m1"], params["v1"])
    s2, b2 = _fold_bn(params["g2"], params["b2"], params["m2"], params["v2"])
    w1 = _prep_weight(params["w1"], s1, cpad)
    w2 = _prep_weight(params["w2"], s2, cpad)
    b1p = _prep_bias(b1, cpad)
    b2p = _prep_bias(b2, cpad)

    # Spatial zero-pad of 2 covers the halos of both 3x3 convs; channel pad to
    # a lane multiple; bf16 is the native MXU operand dtype.
    xp = jnp.pad(x, ((0, 0), (2, 2), (2, 2), (0, cpad - C))).astype(jnp.bfloat16)

    grid = (N, H // TH)
    # NOTE: at these shapes everything fits comfortably in the default scoped
    # VMEM; for production-scale shapes raise vmem_limit_bytes / shrink TH.
    out = pl.pallas_call(
        _basic_block_kernel,
        out_shape=jax.ShapeDtypeStruct((N, H, W, cpad), jnp.float32),
        grid=grid,
        in_specs=[
            # full padded image of one batch element; constant block index
            # across the h axis -> fetched once per batch element.
            pl.BlockSpec((1, H + 4, W + 4, cpad), lambda n, t: (n, 0, 0, 0)),
            pl.BlockSpec((3, 3, cpad, cpad), lambda n, t: (0, 0, 0, 0)),
            pl.BlockSpec((1, cpad), lambda n, t: (0, 0)),
            pl.BlockSpec((3, 3, cpad, cpad), lambda n, t: (0, 0, 0, 0)),
            pl.BlockSpec((1, cpad), lambda n, t: (0, 0)),
        ],
        out_specs=pl.BlockSpec((1, TH, W, cpad), lambda n, t: (n, t, 0, 0)),
        scratch_shapes=[pltpu.VMEM((TH + 2, W + 2, cpad), jnp.bfloat16)],
        compiler_params=pltpu.CompilerParams(
            dimension_semantics=("parallel", "arbitrary")),
    )(xp, w1, b1p, w2, b2p)

    out = out[..., :C]                                        # strip channel pad
    return jnp.transpose(out, (0, 3, 1, 2))                   # back to NCHW


# ----------------------------- plain-JAX reference ---------------------------

def _reference(x, params):
    def conv(y, w):
        return jax.lax.conv_general_dilated(
            y, w, (1, 1), "SAME",
            dimension_numbers=("NCHW", "OIHW", "NCHW"),
            precision=jax.lax.Precision.HIGHEST)

    def bn(y, g, b, m, v):
        g, b, m, v = (t[None, :, None, None] for t in (g, b, m, v))
        return (y - m) / jnp.sqrt(v + _EPS) * g + b

    out = jax.nn.relu(bn(conv(x, params["w1"]),
                         params["g1"], params["b1"], params["m1"], params["v1"]))
    out = bn(conv(out, params["w2"]),
             params["g2"], params["b2"], params["m2"], params["v2"])
    return jax.nn.relu(out + x)


# ----------------------------------- main -------------------------------------

if __name__ == "__main__":
    key = jax.random.PRNGKey(0)
    N, C, H, W = 2, 8, 16, 16          # inplanes == planes == 8, stride 1
    planes = C
    ks = jax.random.split(key, 11)

    x = jax.random.normal(ks[0], (N, C, H, W), jnp.float32)
    params = {
        "w1": 0.1 * jax.random.normal(ks[1], (planes, C, 3, 3), jnp.float32),
        "w2": 0.1 * jax.random.normal(ks[2], (planes, planes, 3, 3), jnp.float32),
        "g1": 1.0 + 0.1 * jax.random.normal(ks[3], (planes,), jnp.float32),
        "b1": 0.1 * jax.random.normal(ks[4], (planes,), jnp.float32),
        "m1": 0.1 * jax.random.normal(ks[5], (planes,), jnp.float32),
        "v1": jnp.abs(1.0 + 0.1 * jax.random.normal(ks[6], (planes,), jnp.float32)),
        "g2": 1.0 + 0.1 * jax.random.normal(ks[7], (planes,), jnp.float32),
        "b2": 0.1 * jax.random.normal(ks[8], (planes,), jnp.float32),
        "m2": 0.1 * jax.random.normal(ks[9], (planes,), jnp.float32),
        "v2": jnp.abs(1.0 + 0.1 * jax.random.normal(ks[10], (planes,), jnp.float32)),
    }

    ref = jax.block_until_ready(_reference(x, params))

    # Default tiling: whole image per grid step, grid = (N, 1).
    out = jax.block_until_ready(basic_block_forward(x, params))
    assert out.shape == (N, planes, H, W), out.shape
    assert jnp.allclose(out, ref, atol=5e-2, rtol=5e-2), \
        float(jnp.max(jnp.abs(out - ref)))

    # Forced H-tiling: exercises the interior/boundary halo path, grid = (N, 2).
    out2 = jax.block_until_ready(basic_block_forward(x, params, tile_h=H // 2))
    assert jnp.allclose(out2, ref, atol=5e-2, rtol=5e-2), \
        float(jnp.max(jnp.abs(out2 - ref)))

    print("KERNEL_OK")
</pallas_src>

<mosaic_0001>
module attributes {stable_mosaic.version = 11 : i64} {
  func.func @_basic_block_kernel(%arg0: i32, %arg1: i32, %arg2: memref<1x20x20x128xbf16, #tpu.memory_space<vmem>>, %arg3: memref<3x3x128x128xbf16, #tpu.memory_space<vmem>>, %arg4: memref<1x128xf32, #tpu.memory_space<vmem>>, %arg5: memref<3x3x128x128xbf16, #tpu.memory_space<vmem>>, %arg6: memref<1x128xf32, #tpu.memory_space<vmem>>, %arg7: memref<1x16x16x128xf32, #tpu.memory_space<vmem>>, %arg8: memref<18x18x128xbf16, #tpu.memory_space<vmem>>) attributes {dimension_semantics = [#tpu.dimension_semantics<parallel>, #tpu.dimension_semantics<arbitrary>], iteration_bounds = array<i64: 2, 1>, scalar_prefetch = 0 : i64, scratch_operands = 1 : i64, tpu.core_type = #tpu.core_type<tc>, window_params = [{transform_indices = @transform_0, window_bounds = array<i64: 1, 20, 20, 128>}, {pipeline_mode = #tpu.pipeline_mode<synchronous>, transform_indices = @transform_1, window_bounds = array<i64: 3, 3, 128, 128>}, {pipeline_mode = #tpu.pipeline_mode<synchronous>, transform_indices = @transform_2, window_bounds = array<i64: 1, 128>}, {pipeline_mode = #tpu.pipeline_mode<synchronous>, transform_indices = @transform_3, window_bounds = array<i64: 3, 3, 128, 128>}, {pipeline_mode = #tpu.pipeline_mode<synchronous>, transform_indices = @transform_4, window_bounds = array<i64: 1, 128>}, {transform_indices = @transform_5, window_bounds = array<i64: 1, 16, 16, 128>}]} {
    %c16_i32 = arith.constant 16 : i32
    %0 = arith.muli %arg1, %c16_i32 : i32
    %1 = tpu.assume_multiple %0, 16 : i32
    %c0 = arith.constant 0 : index
    %2 = arith.index_cast %1 : i32 to index
    %c0_0 = arith.constant 0 : index
    %c0_1 = arith.constant 0 : index
    %3 = vector.load %arg2[%c0, %2, %c0_0, %c0_1] : memref<1x20x20x128xbf16, #tpu.memory_space<vmem>>, vector<1x20x20x128xbf16>
    %4 = vector.shape_cast %3 : vector<1x20x20x128xbf16> to vector<20x20x128xbf16>
    %cst = arith.constant 0.000000e+00 : f32
    %5 = vector.broadcast %cst : f32 to vector<288x128xf32>
    %6 = vector.extract_strided_slice %4 {offsets = [0, 1, 0], sizes = [18, 16, 128], strides = [1, 1, 1]} : vector<20x20x128xbf16> to vector<18x16x128xbf16>
    %7 = vector.shape_cast %6 : vector<18x16x128xbf16> to vector<288x128xbf16>
    %c0_2 = arith.constant 0 : index
    %c0_3 = arith.constant 0 : index
    %c0_4 = arith.constant 0 : index
    %c0_5 = arith.constant 0 : index
    %8 = vector.load %arg3[%c0_2, %c0_3, %c0_4, %c0_5] : memref<3x3x128x128xbf16, #tpu.memory_space<vmem>>, vector<1x1x128x128xbf16>
    %9 = vector.shape_cast %8 : vector<1x1x128x128xbf16> to vector<128x128xbf16>
    %cst_6 = arith.constant dense<0.000000e+00> : vector<288x128xf32>
    %10 = tpu.matmul %7, %9, %cst_6 {dimension_numbers = #tpu.dot_dimension_numbers<[1], [0], [0], [1], [0, 0, 1, 1], [], []>} : vector<288x128xbf16>, vector<128x128xbf16>, vector<288x128xf32> -> vector<288x128xf32>
    %11 = arith.addf %5, %10 : vector<288x128xf32>
    %12 = vector.extract_strided_slice %4 {offsets = [0, 2, 0], sizes = [18, 16, 128], strides = [1, 1, 1]} : vector<20x20x128xbf16> to vector<18x16x128xbf16>
    %13 = vector.shape_cast %12 : vector<18x16x128xbf16> to vector<288x128xbf16>
    %c0_7 = arith.constant 0 : index
    %c1 = arith.constant 1 : index
    %c0_8 = arith.constant 0 : index
    %c0_9 = arith.constant 0 : index
    %14 = vector.load %arg3[%c0_7, %c1, %c0_8, %c0_9] : memref<3x3x128x128xbf16, #tpu.memory_space<vmem>>, vector<1x1x128x128xbf16>
    %15 = vector.shape_cast %14 : vector<1x1x128x128xbf16> to vector<128x128xbf16>
    %cst_10 = arith.constant dense<0.000000e+00> : vector<288x128xf32>
    %16 = tpu.matmul %13, %15, %cst_10 {dimension_numbers = #tpu.dot_dimension_numbers<[1], [0], [0], [1], [0, 0, 1, 1], [], []>} : vector<288x128xbf16>, vector<128x128xbf16>, vector<288x128xf32> -> vector<288x128xf32>
    %17 = arith.addf %11, %16 : vector<288x128xf32>
    %18 = vector.extract_strided_slice %4 {offsets = [0, 3, 0], sizes = [18, 16, 128], strides = [1, 1, 1]} : vector<20x20x128xbf16> to vector<18x16x128xbf16>
    %19 = vector.shape_cast %18 : vector<18x16x128xbf16> to vector<288x128xbf16>
    %c0_11 = arith.constant 0 : index
    %c2 = arith.constant 2 : index
    %c0_12 = arith.constant 0 : index
    %c0_13 = arith.constant 0 : index
    %20 = vector.load %arg3[%c0_11, %c2, %c0_12, %c0_13] : memref<3x3x128x128xbf16, #tpu.memory_space<vmem>>, vector<1x1x128x128xbf16>
    %21 = vector.shape_cast %20 : vector<1x1x128x128xbf16> to vector<128x128xbf16>
    %cst_14 = arith.constant dense<0.000000e+00> : vector<288x128xf32>
    %22 = tpu.matmul %19, %21, %cst_14 {dimension_numbers = #tpu.dot_dimension_numbers<[1], [0], [0], [1], [0, 0, 1, 1], [], []>} : vector<288x128xbf16>, vector<128x128xbf16>, vector<288x128xf32> -> vector<288x128xf32>
    %23 = arith.addf %17, %22 : vector<288x128xf32>
    %24 = vector.extract_strided_slice %4 {offsets = [1, 1, 0], sizes = [18, 16, 128], strides = [1, 1, 1]} : vector<20x20x128xbf16> to vector<18x16x128xbf16>
    %25 = vector.shape_cast %24 : vector<18x16x128xbf16> to vector<288x128xbf16>
    %c1_15 = arith.constant 1 : index
    %c0_16 = arith.constant 0 : index
    %c0_17 = arith.constant 0 : index
    %c0_18 = arith.constant 0 : index
    %26 = vector.load %arg3[%c1_15, %c0_16, %c0_17, %c0_18] : memref<3x3x128x128xbf16, #tpu.memory_space<vmem>>, vector<1x1x128x128xbf16>
    %27 = vector.shape_cast %26 : vector<1x1x128x128xbf16> to vector<128x128xbf16>
    %cst_19 = arith.constant dense<0.000000e+00> : vector<288x128xf32>
    %28 = tpu.matmul %25, %27, %cst_19 {dimension_numbers = #tpu.dot_dimension_numbers<[1], [0], [0], [1], [0, 0, 1, 1], [], []>} : vector<288x128xbf16>, vector<128x128xbf16>, vector<288x128xf32> -> vector<288x128xf32>
    %29 = arith.addf %23, %28 : vector<288x128xf32>
    %30 = vector.extract_strided_slice %4 {offsets = [1, 2, 0], sizes = [18, 16, 128], strides = [1, 1, 1]} : vector<20x20x128xbf16> to vector<18x16x128xbf16>
    %31 = vector.shape_cast %30 : vector<18x16x128xbf16> to vector<288x128xbf16>
    %c1_20 = arith.constant 1 : index
    %c1_21 = arith.constant 1 : index
    %c0_22 = arith.constant 0 : index
    %c0_23 = arith.constant 0 : index
    %32 = vector.load %arg3[%c1_20, %c1_21, %c0_22, %c0_23] : memref<3x3x128x128xbf16, #tpu.memory_space<vmem>>, vector<1x1x128x128xbf16>
    %33 = vector.shape_cast %32 : vector<1x1x128x128xbf16> to vector<128x128xbf16>
    %cst_24 = arith.constant dense<0.000000e+00> : vector<288x128xf32>
    %34 = tpu.matmul %31, %33, %cst_24 {dimension_numbers = #tpu.dot_dimension_numbers<[1], [0], [0], [1], [0, 0, 1, 1], [], []>} : vector<288x128xbf16>, vector<128x128xbf16>, vector<288x128xf32> -> vector<288x128xf32>
    %35 = arith.addf %29, %34 : vector<288x128xf32>
    %36 = vector.extract_strided_slice %4 {offsets = [1, 3, 0], sizes = [18, 16, 128], strides = [1, 1, 1]} : vector<20x20x128xbf16> to vector<18x16x128xbf16>
    %37 = vector.shape_cast %36 : vector<18x16x128xbf16> to vector<288x128xbf16>
    %c1_25 = arith.constant 1 : index
    %c2_26 = arith.constant 2 : index
    %c0_27 = arith.constant 0 : index
    %c0_28 = arith.constant 0 : index
    %38 = vector.load %arg3[%c1_25, %c2_26, %c0_27, %c0_28] : memref<3x3x128x128xbf16, #tpu.memory_space<vmem>>, vector<1x1x128x128xbf16>
    %39 = vector.shape_cast %38 : vector<1x1x128x128xbf16> to vector<128x128xbf16>
    %cst_29 = arith.constant dense<0.000000e+00> : vector<288x128xf32>
    %40 = tpu.matmul %37, %39, %cst_29 {dimension_numbers = #tpu.dot_dimension_numbers<[1], [0], [0], [1], [0, 0, 1, 1], [], []>} : vector<288x128xbf16>, vector<128x128xbf16>, vector<288x128xf32> -> vector<288x128xf32>
    %41 = arith.addf %35, %40 : vector<288x128xf32>
    %42 = vector.extract_strided_slice %4 {offsets = [2, 1, 0], sizes = [18, 16, 128], strides = [1, 1, 1]} : vector<20x20x128xbf16> to vector<18x16x128xbf16>
    %43 = vector.shape_cast %42 : vector<18x16x128xbf16> to vector<288x128xbf16>
    %c2_30 = arith.constant 2 : index
    %c0_31 = arith.constant 0 : index
    %c0_32 = arith.constant 0 : index
    %c0_33 = arith.constant 0 : index
    %44 = vector.load %arg3[%c2_30, %c0_31, %c0_32, %c0_33] : memref<3x3x128x128xbf16, #tpu.memory_space<vmem>>, vector<1x1x128x128xbf16>
    %45 = vector.shape_cast %44 : vector<1x1x128x128xbf16> to vector<128x128xbf16>
    %cst_34 = arith.constant dense<0.000000e+00> : vector<288x128xf32>
    %46 = tpu.matmul %43, %45, %cst_34 {dimension_numbers = #tpu.dot_dimension_numbers<[1], [0], [0], [1], [0, 0, 1, 1], [], []>} : vector<288x128xbf16>, vector<128x128xbf16>, vector<288x128xf32> -> vector<288x128xf32>
    %47 = arith.addf %41, %46 : vector<288x128xf32>
    %48 = vector.extract_strided_slice %4 {offsets = [2, 2, 0], sizes = [18, 16, 128], strides = [1, 1, 1]} : vector<20x20x128xbf16> to vector<18x16x128xbf16>
    %49 = vector.shape_cast %48 : vector<18x16x128xbf16> to vector<288x128xbf16>
    %c2_35 = arith.constant 2 : index
    %c1_36 = arith.constant 1 : index
    %c0_37 = arith.constant 0 : index
    %c0_38 = arith.constant 0 : index
    %50 = vector.load %arg3[%c2_35, %c1_36, %c0_37, %c0_38] : memref<3x3x128x128xbf16, #tpu.memory_space<vmem>>, vector<1x1x128x128xbf16>
    %51 = vector.shape_cast %50 : vector<1x1x128x128xbf16> to vector<128x128xbf16>
    %cst_39 = arith.constant dense<0.000000e+00> : vector<288x128xf32>
    %52 = tpu.matmul %49, %51, %cst_39 {dimension_numbers = #tpu.dot_dimension_numbers<[1], [0], [0], [1], [0, 0, 1, 1], [], []>} : vector<288x128xbf16>, vector<128x128xbf16>, vector<288x128xf32> -> vector<288x128xf32>
    %53 = arith.addf %47, %52 : vector<288x128xf32>
    %54 = vector.extract_strided_slice %4 {offsets = [2, 3, 0], sizes = [18, 16, 128], strides = [1, 1, 1]} : vector<20x20x128xbf16> to vector<18x16x128xbf16>
    %55 = vector.shape_cast %54 : vector<18x16x128xbf16> to vector<288x128xbf16>
    %c2_40 = arith.constant 2 : index
    %c2_41 = arith.constant 2 : index
    %c0_42 = arith.constant 0 : index
    %c0_43 = arith.constant 0 : index
    %56 = vector.load %arg3[%c2_40, %c2_41, %c0_42, %c0_43] : memref<3x3x128x128xbf16, #tpu.memory_space<vmem>>, vector<1x1x128x128xbf16>
    %57 = vector.shape_cast %56 : vector<1x1x128x128xbf16> to vector<128x128xbf16>
    %cst_44 = arith.constant dense<0.000000e+00> : vector<288x128xf32>
    %58 = tpu.matmul %55, %57, %cst_44 {dimension_numbers = #tpu.dot_dimension_numbers<[1], [0], [0], [1], [0, 0, 1, 1], [], []>} : vector<288x128xbf16>, vector<128x128xbf16>, vector<288x128xf32> -> vector<288x128xf32>
    %59 = arith.addf %53, %58 : vector<288x128xf32>
    %c0_45 = arith.constant 0 : index
    %c0_46 = arith.constant 0 : index
    %60 = vector.load %arg4[%c0_45, %c0_46] : memref<1x128xf32, #tpu.memory_space<vmem>>, vector<1x128xf32>
    %61 = vector.broadcast %60 : vector<1x128xf32> to vector<288x128xf32>
    %62 = arith.addf %59, %61 : vector<288x128xf32>
    %cst_47 = arith.constant 0.000000e+00 : f32
    %63 = vector.broadcast %cst_47 : f32 to vector<288x128xf32>
    %64 = arith.maximumf %62, %63 : vector<288x128xf32>
    %65 = vector.shape_cast %64 : vector<288x128xf32> to vector<18x16x128xf32>
    %c1_i32 = arith.constant 1 : i32
    %66 = arith.subi %1, %c1_i32 : i32
    %67 = tpu.iota {dimensions = array<i32: 0>} : vector<18x1x1xi32>
    %68 = vector.broadcast %66 : i32 to vector<18x1x1xi32>
    %69 = arith.addi %68, %67 : vector<18x1x1xi32>
    %c0_i32 = arith.constant 0 : i32
    %70 = vector.broadcast %c0_i32 : i32 to vector<18x1x1xi32>
    %71 = arith.cmpi sge, %69, %70 : vector<18x1x1xi32>
    %c16_i32_48 = arith.constant 16 : i32
    %72 = vector.broadcast %c16_i32_48 : i32 to vector<18x1x1xi32>
    %73 = arith.cmpi slt, %69, %72 : vector<18x1x1xi32>
    %74 = arith.andi %71, %73 : vector<18x1x1xi1>
    %cst_49 = arith.constant 0.000000e+00 : f32
    %75 = vector.shape_cast %74 : vector<18x1x1xi1> to vector<18x1x1xi1>
    %76 = vector.broadcast %75 : vector<18x1x1xi1> to vector<18x16x128xi1>
    %77 = vector.broadcast %cst_49 : f32 to vector<18x16x128xf32>
    %78 = arith.select %76, %65, %77 : vector<18x16x128xi1>, vector<18x16x128xf32>
    %79 = arith.truncf %78 : vector<18x16x128xf32> to vector<18x16x128xbf16>
    %c0_i32_50 = arith.constant 0 : i32
    %80 = arith.cmpi eq, %arg1, %c0_i32_50 : i32
    %81 = arith.extui %80 : i1 to i32
    %c0_i32_51 = arith.constant 0 : i32
    %82 = arith.cmpi ne, %81, %c0_i32_51 : i32
    scf.if %82 {
      %cst_111 = arith.constant 0.000000e+00 : bf16
      %151 = vector.broadcast %cst_111 : bf16 to vector<18x1x128xbf16>
      %c0_112 = arith.constant 0 : index
      %c0_113 = arith.constant 0 : index
      %c0_114 = arith.constant 0 : index
      %152 = vector.load %arg8[%c0_112, %c0_113, %c0_114] : memref<18x18x128xbf16, #tpu.memory_space<vmem>>, vector<18x1x128xbf16>
      tpu.vector_store %arg8[%c0_112, %c0_113, %c0_114], %151 {strides = array<i32>} : memref<18x18x128xbf16, #tpu.memory_space<vmem>>, vector<18x1x128xbf16>,
      %cst_115 = arith.constant 0.000000e+00 : bf16
      %153 = vector.broadcast %cst_115 : bf16 to vector<18x1x128xbf16>
      %c0_116 = arith.constant 0 : index
      %c17 = arith.constant 17 : index
      %c0_117 = arith.constant 0 : index
      %154 = vector.load %arg8[%c0_116, %c17, %c0_117] : memref<18x18x128xbf16, #tpu.memory_space<vmem>>, vector<18x1x128xbf16>
      tpu.vector_store %arg8[%c0_116, %c17, %c0_117], %153 {strides = array<i32>} : memref<18x18x128xbf16, #tpu.memory_space<vmem>>, vector<18x1x128xbf16>,
    } else {
    }
    %c0_52 = arith.constant 0 : index
    %c1_53 = arith.constant 1 : index
    %c0_54 = arith.constant 0 : index
    %83 = vector.load %arg8[%c0_52, %c1_53, %c0_54] : memref<18x18x128xbf16, #tpu.memory_space<vmem>>, vector<18x16x128xbf16>
    tpu.vector_store %arg8[%c0_52, %c1_53, %c0_54], %79 {strides = array<i32>} : memref<18x18x128xbf16, #tpu.memory_space<vmem>>, vector<18x16x128xbf16>,
    %c0_55 = arith.constant 0 : index
    %c0_56 = arith.constant 0 : index
    %c0_57 = arith.constant 0 : index
    %84 = vector.load %arg8[%c0_55, %c0_56, %c0_57] : memref<18x18x128xbf16, #tpu.memory_space<vmem>>, vector<18x18x128xbf16>
    %cst_58 = arith.constant 0.000000e+00 : f32
    %85 = vector.broadcast %cst_58 : f32 to vector<256x128xf32>
    %86 = vector.extract_strided_slice %84 {offsets = [0, 0, 0], sizes = [16, 16, 128], strides = [1, 1, 1]} : vector<18x18x128xbf16> to vector<16x16x128xbf16>
    %87 = vector.shape_cast %86 : vector<16x16x128xbf16> to vector<256x128xbf16>
    %c0_59 = arith.constant 0 : index
    %c0_60 = arith.constant 0 : index
    %c0_61 = arith.constant 0 : index
    %c0_62 = arith.constant 0 : index
    %88 = vector.load %arg5[%c0_59, %c0_60, %c0_61, %c0_62] : memref<3x3x128x128xbf16, #tpu.memory_space<vmem>>, vector<1x1x128x128xbf16>
    %89 = vector.shape_cast %88 : vector<1x1x128x128xbf16> to vector<128x128xbf16>
    %cst_63 = arith.constant dense<0.000000e+00> : vector<256x128xf32>
    %90 = tpu.matmul %87, %89, %cst_63 {dimension_numbers = #tpu.dot_dimension_numbers<[1], [0], [0], [1], [0, 0, 1, 1], [], []>} : vector<256x128xbf16>, vector<128x128xbf16>, vector<256x128xf32> -> vector<256x128xf32>
    %91 = arith.addf %85, %90 : vector<256x128xf32>
    %92 = vector.extract_strided_slice %84 {offsets = [0, 1, 0], sizes = [16, 16, 128], strides = [1, 1, 1]} : vector<18x18x128xbf16> to vector<16x16x128xbf16>
    %93 = vector.shape_cast %92 : vector<16x16x128xbf16> to vector<256x128xbf16>
    %c0_64 = arith.constant 0 : index
    %c1_65 = arith.constant 1 : index
    %c0_66 = arith.constant 0 : index
    %c0_67 = arith.constant 0 : index
    %94 = vector.load %arg5[%c0_64, %c1_65, %c0_66, %c0_67] : memref<3x3x128x128xbf16, #tpu.memory_space<vmem>>, vector<1x1x128x128xbf16>
    %95 = vector.shape_cast %94 : vector<1x1x128x128xbf16> to vector<128x128xbf16>
    %cst_68 = arith.constant dense<0.000000e+00> : vector<256x128xf32>
    %96 = tpu.matmul %93, %95, %cst_68 {dimension_numbers = #tpu.dot_dimension_numbers<[1], [0], [0], [1], [0, 0, 1, 1], [], []>} : vector<256x128xbf16>, vector<128x128xbf16>, vector<256x128xf32> -> vector<256x128xf32>
    %97 = arith.addf %91, %96 : vector<256x128xf32>
    %98 = vector.extract_strided_slice %84 {offsets = [0, 2, 0], sizes = [16, 16, 128], strides = [1, 1, 1]} : vector<18x18x128xbf16> to vector<16x16x128xbf16>
    %99 = vector.shape_cast %98 : vector<16x16x128xbf16> to vector<256x128xbf16>
    %c0_69 = arith.constant 0 : index
    %c2_70 = arith.constant 2 : index
    %c0_71 = arith.constant 0 : index
    %c0_72 = arith.constant 0 : index
    %100 = vector.load %arg5[%c0_69, %c2_70, %c0_71, %c0_72] : memref<3x3x128x128xbf16, #tpu.memory_space<vmem>>, vector<1x1x128x128xbf16>
    %101 = vector.shape_cast %100 : vector<1x1x128x128xbf16> to vector<128x128xbf16>
    %cst_73 = arith.constant dense<0.000000e+00> : vector<256x128xf32>
    %102 = tpu.matmul %99, %101, %cst_73 {dimension_numbers = #tpu.dot_dimension_numbers<[1], [0], [0], [1], [0, 0, 1, 1], [], []>} : vector<256x128xbf16>, vector<128x128xbf16>, vector<256x128xf32> -> vector<256x128xf32>
    %103 = arith.addf %97, %102 : vector<256x128xf32>
    %104 = vector.extract_strided_slice %84 {offsets = [1, 0, 0], sizes = [16, 16, 128], strides = [1, 1, 1]} : vector<18x18x128xbf16> to vector<16x16x128xbf16>
    %105 = vector.shape_cast %104 : vector<16x16x128xbf16> to vector<256x128xbf16>
    %c1_74 = arith.constant 1 : index
    %c0_75 = arith.constant 0 : index
    %c0_76 = arith.constant 0 : index
    %c0_77 = arith.constant 0 : index
    %106 = vector.load %arg5[%c1_74, %c0_75, %c0_76, %c0_77] : memref<3x3x128x128xbf16, #tpu.memory_space<vmem>>, vector<1x1x128x128xbf16>
    %107 = vector.shape_cast %106 : vector<1x1x128x128xbf16> to vector<128x128xbf16>
    %cst_78 = arith.constant dense<0.000000e+00> : vector<256x128xf32>
    %108 = tpu.matmul %105, %107, %cst_78 {dimension_numbers = #tpu.dot_dimension_numbers<[1], [0], [0], [1], [0, 0, 1, 1], [], []>} : vector<256x128xbf16>, vector<128x128xbf16>, vector<256x128xf32> -> vector<256x128xf32>
    %109 = arith.addf %103, %108 : vector<256x128xf32>
    %110 = vector.extract_strided_slice %84 {offsets = [1, 1, 0], sizes = [16, 16, 128], strides = [1, 1, 1]} : vector<18x18x128xbf16> to vector<16x16x128xbf16>
    %111 = vector.shape_cast %110 : vector<16x16x128xbf16> to vector<256x128xbf16>
    %c1_79 = arith.constant 1 : index
    %c1_80 = arith.constant 1 : index
    %c0_81 = arith.constant 0 : index
    %c0_82 = arith.constant 0 : index
    %112 = vector.load %arg5[%c1_79, %c1_80, %c0_81, %c0_82] : memref<3x3x128x128xbf16, #tpu.memory_space<vmem>>, vector<1x1x128x128xbf16>
    %113 = vector.shape_cast %112 : vector<1x1x128x128xbf16> to vector<128x128xbf16>
    %cst_83 = arith.constant dense<0.000000e+00> : vector<256x128xf32>
    %114 = tpu.matmul %111, %113, %cst_83 {dimension_numbers = #tpu.dot_dimension_numbers<[1], [0], [0], [1], [0, 0, 1, 1], [], []>} : vector<256x128xbf16>, vector<128x128xbf16>, vector<256x128xf32> -> vector<256x128xf32>
    %115 = arith.addf %109, %114 : vector<256x128xf32>
    %116 = vector.extract_strided_slice %84 {offsets = [1, 2, 0], sizes = [16, 16, 128], strides = [1, 1, 1]} : vector<18x18x128xbf16> to vector<16x16x128xbf16>
    %117 = vector.shape_cast %116 : vector<16x16x128xbf16> to vector<256x128xbf16>
    %c1_84 = arith.constant 1 : index
    %c2_85 = arith.constant 2 : index
    %c0_86 = arith.constant 0 : index
    %c0_87 = arith.constant 0 : index
    %118 = vector.load %arg5[%c1_84, %c2_85, %c0_86, %c0_87] : memref<3x3x128x128xbf16, #tpu.memory_space<vmem>>, vector<1x1x128x128xbf16>
    %119 = vector.shape_cast %118 : vector<1x1x128x128xbf16> to vector<128x128xbf16>
    %cst_88 = arith.constant dense<0.000000e+00> : vector<256x128xf32>
    %120 = tpu.matmul %117, %119, %cst_88 {dimension_numbers = #tpu.dot_dimension_numbers<[1], [0], [0], [1], [0, 0, 1, 1], [], []>} : vector<256x128xbf16>, vector<128x128xbf16>, vector<256x128xf32> -> vector<256x128xf32>
    %121 = arith.addf %115, %120 : vector<256x128xf32>
    %122 = vector.extract_strided_slice %84 {offsets = [2, 0, 0], sizes = [16, 16, 128], strides = [1, 1, 1]} : vector<18x18x128xbf16> to vector<16x16x128xbf16>
    %123 = vector.shape_cast %122 : vector<16x16x128xbf16> to vector<256x128xbf16>
    %c2_89 = arith.constant 2 : index
    %c0_90 = arith.constant 0 : index
    %c0_91 = arith.constant 0 : index
    %c0_92 = arith.constant 0 : index
    %124 = vector.load %arg5[%c2_89, %c0_90, %c0_91, %c0_92] : memref<3x3x128x128xbf16, #tpu.memory_space<vmem>>, vector<1x1x128x128xbf16>
    %125 = vector.shape_cast %124 : vector<1x1x128x128xbf16> to vector<128x128xbf16>
    %cst_93 = arith.constant dense<0.000000e+00> : vector<256x128xf32>
    %126 = tpu.matmul %123, %125, %cst_93 {dimension_numbers = #tpu.dot_dimension_numbers<[1], [0], [0], [1], [0, 0, 1, 1], [], []>} : vector<256x128xbf16>, vector<128x128xbf16>, vector<256x128xf32> -> vector<256x128xf32>
    %127 = arith.addf %121, %126 : vector<256x128xf32>
    %128 = vector.extract_strided_slice %84 {offsets = [2, 1, 0], sizes = [16, 16, 128], strides = [1, 1, 1]} : vector<18x18x128xbf16> to vector<16x16x128xbf16>
    %129 = vector.shape_cast %128 : vector<16x16x128xbf16> to vector<256x128xbf16>
    %c2_94 = arith.constant 2 : index
    %c1_95 = arith.constant 1 : index
    %c0_96 = arith.constant 0 : index
    %c0_97 = arith.constant 0 : index
    %130 = vector.load %arg5[%c2_94, %c1_95, %c0_96, %c0_97] : memref<3x3x128x128xbf16, #tpu.memory_space<vmem>>, vector<1x1x128x128xbf16>
    %131 = vector.shape_cast %130 : vector<1x1x128x128xbf16> to vector<128x128xbf16>
    %cst_98 = arith.constant dense<0.000000e+00> : vector<256x128xf32>
    %132 = tpu.matmul %129, %131, %cst_98 {dimension_numbers = #tpu.dot_dimension_numbers<[1], [0], [0], [1], [0, 0, 1, 1], [], []>} : vector<256x128xbf16>, vector<128x128xbf16>, vector<256x128xf32> -> vector<256x128xf32>
    %133 = arith.addf %127, %132 : vector<256x128xf32>
    %134 = vector.extract_strided_slice %84 {offsets = [2, 2, 0], sizes = [16, 16, 128], strides = [1, 1, 1]} : vector<18x18x128xbf16> to vector<16x16x128xbf16>
    %135 = vector.shape_cast %134 : vector<16x16x128xbf16> to vector<256x128xbf16>
    %c2_99 = arith.constant 2 : index
    %c2_100 = arith.constant 2 : index
    %c0_101 = arith.constant 0 : index
    %c0_102 = arith.constant 0 : index
    %136 = vector.load %arg5[%c2_99, %c2_100, %c0_101, %c0_102] : memref<3x3x128x128xbf16, #tpu.memory_space<vmem>>, vector<1x1x128x128xbf16>
    %137 = vector.shape_cast %136 : vector<1x1x128x128xbf16> to vector<128x128xbf16>
    %cst_103 = arith.constant dense<0.000000e+00> : vector<256x128xf32>
    %138 = tpu.matmul %135, %137, %cst_103 {dimension_numbers = #tpu.dot_dimension_numbers<[1], [0], [0], [1], [0, 0, 1, 1], [], []>} : vector<256x128xbf16>, vector<128x128xbf16>, vector<256x128xf32> -> vector<256x128xf32>
    %139 = arith.addf %133, %138 : vector<256x128xf32>
    %140 = vector.extract_strided_slice %4 {offsets = [2, 2, 0], sizes = [16, 16, 128], strides = [1, 1, 1]} : vector<20x20x128xbf16> to vector<16x16x128xbf16>
    %141 = arith.extf %140 : vector<16x16x128xbf16> to vector<16x16x128xf32>
    %142 = vector.shape_cast %141 : vector<16x16x128xf32> to vector<256x128xf32>
    %c0_104 = arith.constant 0 : index
    %c0_105 = arith.constant 0 : index
    %143 = vector.load %arg6[%c0_104, %c0_105] : memref<1x128xf32, #tpu.memory_space<vmem>>, vector<1x128xf32>
    %144 = vector.broadcast %143 : vector<1x128xf32> to vector<256x128xf32>
    %145 = arith.addf %139, %144 : vector<256x128xf32>
    %146 = arith.addf %145, %142 : vector<256x128xf32>
    %cst_106 = arith.constant 0.000000e+00 : f32
    %147 = vector.broadcast %cst_106 : f32 to vector<256x128xf32>
    %148 = arith.maximumf %146, %147 : vector<256x128xf32>
    %149 = vector.shape_cast %148 : vector<256x128xf32> to vector<1x16x16x128xf32>
    %c0_107 = arith.constant 0 : index
    %c0_108 = arith.constant 0 : index
    %c0_109 = arith.constant 0 : index
    %c0_110 = arith.constant 0 : index
    %150 = vector.load %arg7[%c0_107, %c0_108, %c0_109, %c0_110] : memref<1x16x16x128xf32, #tpu.memory_space<vmem>>, vector<1x16x16x128xf32>
    tpu.vector_store %arg7[%c0_107, %c0_108, %c0_109, %c0_110], %149 {strides = array<i32>} : memref<1x16x16x128xf32, #tpu.memory_space<vmem>>, vector<1x16x16x128xf32>,
    return
  }
  func.func @transform_0(%arg0: i32, %arg1: i32) -> (i32, i32, i32, i32) {
    %c0_i32 = arith.constant 0 : i32
    %c0_i32_0 = arith.constant 0 : i32
    %c0_i32_1 = arith.constant 0 : i32
    %c0_i32_2 = arith.constant 0 : i32
    return %arg0, %c0_i32, %c0_i32_0, %c0_i32_1 : i32, i32, i32, i32
  }
  func.func @transform_1(%arg0: i32, %arg1: i32) -> (i32, i32, i32, i32) {
    %c0_i32 = arith.constant 0 : i32
    %c0_i32_0 = arith.constant 0 : i32
    %c0_i32_1 = arith.constant 0 : i32
    %c0_i32_2 = arith.constant 0 : i32
    %c0_i32_3 = arith.constant 0 : i32
    return %c0_i32, %c0_i32_0, %c0_i32_1, %c0_i32_2 : i32, i32, i32, i32
  }
  func.func @transform_2(%arg0: i32, %arg1: i32) -> (i32, i32) {
    %c0_i32 = arith.constant 0 : i32
    %c0_i32_0 = arith.constant 0 : i32
    %c0_i32_1 = arith.constant 0 : i32
    return %c0_i32, %c0_i32_0 : i32, i32
  }
  func.func @transform_3(%arg0: i32, %arg1: i32) -> (i32, i32, i32, i32) {
    %c0_i32 = arith.constant 0 : i32
    %c0_i32_0 = arith.constant 0 : i32
    %c0_i32_1 = arith.constant 0 : i32
    %c0_i32_2 = arith.constant 0 : i32
    %c0_i32_3 = arith.constant 0 : i32
    return %c0_i32, %c0_i32_0, %c0_i32_1, %c0_i32_2 : i32, i32, i32, i32
  }
  func.func @transform_4(%arg0: i32, %arg1: i32) -> (i32, i32) {
    %c0_i32 = arith.constant 0 : i32
    %c0_i32_0 = arith.constant 0 : i32
    %c0_i32_1 = arith.constant 0 : i32
    return %c0_i32, %c0_i32_0 : i32, i32
  }
  func.func @transform_5(%arg0: i32, %arg1: i32) -> (i32, i32, i32, i32) {
    %c0_i32 = arith.constant 0 : i32
    %c0_i32_0 = arith.constant 0 : i32
    %c0_i32_1 = arith.constant 0 : i32
    return %arg0, %arg1, %c0_i32, %c0_i32_0 : i32, i32, i32, i32
  }
}

</mosaic_0001>

<bundles_post_ra>
// kernel: tpu_custom_call.1
= control target key start
LH: loop header
LB: loop body
LE: loop exit
PB: predicated region body
PF: predicated region fallthrough
CT: control target
= control target key end

     0   :  { %10 = vsyncpa [#allocation4], 0  ;;  %s14192_s0 = inlined_call_operand.vmem [shape: bf16[2,20,20,128], index: 0, kind: input, shape index: {}]   ;;  %s14193_s1 = inlined_call_operand.vmem [shape: bf16[3,3,128,128], index: 1, kind: input, shape index: {}]   ;;  %s14194_s2 = inlined_call_operand.vmem [shape: f32[1,128], index: 2, kind: input, shape index: {}]   ;;  %s14195_s3 = inlined_call_operand.hbm [shape: bf16[3,3,128,128], index: 3, kind: input, shape index: {}]   ;;  %s14196_s4 = inlined_call_operand.vmem [shape: f32[1,128], index: 4, kind: input, shape index: {}]   ;;  %s14197_s5 = inlined_call_operand.hbm [shape: f32[2,16,16,128], index: 5, kind: output, shape index: {}]  }
   0x1   :  { %11 = vsyncpa [#allocation5], 0 }
   0x2   :  { %13 = vsyncpa [#allocation5 + $0x1], 0  ;;  %s11320_s18 = smov 0   ;;  %s11322_s19 = smov 0  }
   0x3   :  { %s11324_s20 = smov 0   ;;  %s11326_s21 = smov 0  }
   0x4   :  { %s11328_s22 = smov 0   ;;  %s11330_s23 = smov 0  }
   0x5 LB: > { %s8506_s24 = sadd.s32 4294967295, %s11281_s23   ;;  %s8507_s25 = sadd.s32 4294967294, %s11281_s23   ;;  %s11281_s23 = sphi %s11330_s23, %s19_s23   ;;  %s11277_s22 = sphi %s11328_s22, %s14735_s22   ;;  %s11273_s21 = sphi %s11326_s21, %s14734_s21   ;;  %s11269_s20 = sphi %s11324_s20, %s14733_s20   ;;  %s11265_s19 = sphi %s11322_s19, %s14732_s19   ;;  %s11261_s18 = sphi %s11320_s18, %s14731_s18  }
   0x6   : > { %s31_s26 = sadd.s32 1, %s11277_s22  ;;  %s150_s27 = sadd.s32 1, %s11269_s20 }
   0x7   : > { %p33_p0 = scmp.ge.s32.totalorder %s31_s26, 2  ;;  %p160_p1 = scmp.ne.s32.totalorder %s11269_s20, %s11265_s19 }
   0x8   : > { %p161_p2 = scmp.eq.s32.totalorder %s8506_s24, 1  ;;  %p166_p3 = scmp.ne.s32.totalorder %s11265_s19, %s11261_s18 }
   0x9   : > { %s14737_s26 = smov (%p33_p0, %s31_s26), 0  ;;  %p167_p5 = scmp.eq.s32.totalorder %s8507_s25, 1 }
   0xa   : > { %p11360_p4 = por %p161_p2, %p160_p1  ;;  %s145_s29 = ssub.s32 %s11277_s22, %s14737_s26 }
   0xb   : > { %p8508_p6 = scmp.ge.s32.totalorder %s11281_s23, 1  ;;  %p148_p7 = scmp.eq.s32.totalorder %s145_s29, 0 }
   0xc   : > { %s14418_s28 = scalar_select %p11360_p4, 1, 0 }
   0xd   : > { %p11367_p8 = por %p167_p5, %p166_p3  ;;  %p174_p9 = scmp.lt.s32.totalorder %s11281_s23, 3 }
   0xe   : > { %s11373_s6 = scalar_select %p148_p7, %s11269_s20, %s150_s27  }
   0xf   : > { %s14419_s30 = scalar_select %p11367_p8, 1, 0 }
  0x10   : > { %p11375_p10 = pnand %p8508_p6, %p174_p9  ;;  %p11379_p11 = scmp.eq.s32.totalorder %s8506_s24, 0 }
  0x11   : > { %s11283_s9 = smov [#allocation3]   ;;  %s11171_s14 = scalar_lea.hbm %s14195_s3, 9216 }
  0x12   : > { %s14420_s7 = scalar_select %p11375_p10, 1, 0 }
  0x13   : > { %s14421_s8 = scalar_select %p11379_p11, 1, 0 }
  0x14   : > { %p10868_p12 = pneg %p11375_p10  ;;  %s192_s10 = sshll.u32 %s11283_s9, 4  ;;  %s193_s10 = int_to_ptr.vmem [resolvable:$true] %s192_s10 }
  0x15   : > { %p11172_p0 = scmp.ne.s32.totalorder %s14195_s3, %s11171_s14  ;;  %p11178_p5 = scmp.lt.u32.totalorder %s11171_s14, %s14195_s3 }
  0x16   : > { %p11387_p13 = pnand %p11379_p11, %p10868_p12 }
  0x18   : > { %p11173_p1 = pneg %p11387_p13 }
  0x1a   : > { %p11174_p2 = pnand %p11173_p1, %p11172_p0 }
  0x1c   : > { %p11175_p3 = pneg %p11174_p2 }
  0x1e   : > { %p11180_p6 = pnand %p11178_p5, %p11175_p3 }
  0x20   : > { %11183 = shalt.err (!%p11180_p6)
}
  0x21   : > { %s11184_s25 = scalar_lea.vmem %s193_s10, 9216  ;;  %p11192_p8 = scmp.lt.s32.totalorder %s193_s10, %s193_s10 }
  0x22   : > { %p11185_p7 = scmp.ne.s32.totalorder %s193_s10, %s11184_s25  ;;  %p11193_p4 = scmp.lt.s32.totalorder %s11184_s25, %s11184_s25 }
  0x24   : > { %p11187_p9 = pnand %p11185_p7, %p11173_p1  ;;  %p11194_p11 = por %p11193_p4, %p11192_p8 }
  0x26   : > { %p11188_p12 = pneg %p11187_p9 }
  0x28   : > { %p11195_p10 = pnand %p11194_p11, %p11188_p12 }
  0x2a   : > { %11198 = shalt.err (!%p11195_p10)
}
  0x2b   : > { %s11284_s27 = smov 64   ;;  %s11285_s29 = smov 4  }
  0x2c   : > { %10871 = dma.hbm_to_vmem [thread:$0]  (!%p11387_p13), %s14195_s3, 9216, %s193_s10, [#allocation4], %s11284_s27, %s11284_s27, %s11285_s29  }
  0x2d   : > { %p14423_p0 = scmp.ne.s32.totalorder %s14420_s7, 0 }
  0x2f   : > { %219 = sbr.rel (%p14423_p0) target bundleno = 1761 (0x6e1), region = 40 }
  0x36   : > { %p14424_p2 = scmp.ne.s32.totalorder %s14421_s8, 0 }
  0x38   : > { %11252 = dma.done.wait (%p14424_p2), [#allocation4], 9216  }
  0x39   : > { %11254 = vsyncadd (%p14424_p2), [#allocation4], 4294958080  ;;  %p247_p4 = scmp.lt.s32.totalorder %s11273_s21, 1  ;;  %v10933_v0 = vld [vmem:[%s14193_s1 + $0x40] sm:$0xff]   ;;  %v10934_v1 = vld [vmem:[%s14193_s1 + $0x48] sm:$0xff]   ;;  %vm823_vm0 = vcmask 1042432  }
  0x3a   : > { %9465 = vmatprep.subr.bf16.mxu0 %v10933_v0  ;;  %10365 = vmatprep.subr.bf16.mxu1 %v10933_v0  ;;  %v10935_v2 = vld [vmem:[%s14193_s1 + $0x50] sm:$0xff]   ;;  %vm824_vm1 = vcmask 1046532   ;;  %v10936_v3 = vld [vmem:[%s14193_s1 + $0x58] sm:$0xff]   ;;  %v14425_v9 = vmov 0  ;;  %v10937_v16 = vld [vmem:[%s14193_s1 + $0x60] sm:$0xff]   ;;  %vm4222_vm9 = vcmask 1040384  }
  0x3b   : > { %s248_s13 = scalar_select %p247_p4, %s11273_s21, 1  ;;  %9466 = vmatpush3.bf16.msra.mxu0 %v10933_v0  ;;  %10373 = vmatpush3.bf16.msra.mxu1 %v10933_v0  ;;  %vm11443_vm2 = vmor %vm823_vm0, %vm824_vm1  ;;  %v10938_v33 = vld [vmem:[%s14193_s1 + $0x68] sm:$0xff]   ;;  %v10939_v47 = vld [vmem:[%s14193_s1 + $0x70] sm:$0xff]   ;;  %vm318_vm3 = vsmask.f32 3328  ;;  %vm4788_vm14 = vcmask 1043456  }
  0x3c   : > { %9467 = vmatprep.subr.bf16.mxu0 %v10934_v1  ;;  %10366 = vmatprep.subr.bf16.mxu1 %v10934_v1  ;;  %v14426_v9 = vsel %vm11443_vm2, 4294967295, %v14425_v9  ;;  %v10940_v0 = vld [vmem:[%s14193_s1 + $0x78] sm:$0xff]   ;;  %vm319_vm4 = vsmask.f32 7440  ;;  %vm1563_vm6 = vsmask.f32 2304 }
  0x3d   : > { %s10861_s7 = smul.u32 240, %s248_s13  ;;  %14427 = vst [vmem:[#allocation9_spill] sm:$0xff] %v14426_v9  ;;  %vm11644_vm5 = vmor %vm318_vm3, %vm319_vm4  ;;  %vm1564_vm7 = vsmask.f32 6416  ;;  %vm4223_vm10 = vsmask.f32 256 }
  0x3e   : > { %vm12263_vm8 = vmor %vm1563_vm6, %vm1564_vm7  ;;  %vm4279_vm12 = vsmask.f32 7938  ;;  %vm4426_vm15 = vsmask.f32 4368  ;;  %s244_s9 = sand.u32 1, %s11265_s19   ;;  %p14729_p10 = scmp.ne.s32.totalorder %s14418_s28, 0 }
  0x3f   : > { %s11427_s25 = scalar_lea.vmem %s14192_s0, %s10861_s7  ;;  %9468 = vmatpush3.bf16.msra.mxu0 %v10934_v1  ;;  %10374 = vmatpush3.bf16.msra.mxu1 %v10934_v1  ;;  %vm13021_vm11 = vmand %vm4222_vm9, %vm4223_vm10  ;;  %s8513_s14 = sshll.u32 %s244_s9, 8 }
  0x40   : > { %9469 = vmatprep.subr.bf16.mxu0 %v10935_v2  ;;  %v11433_v4 = vld [vmem:[%s11427_s25] sm:$0xf]  ;;  %v11436_v5 = vld [vmem:[%s11427_s25 + $0x4] sm:$0xf]  ;;  %v11439_v6 = vld [vmem:[%s11427_s25 + $0x8] sm:$0x3]  ;;  %10367 = vmatprep.subr.bf16.mxu1 %v10935_v2 }
  0x41   : > { %v14235_v7 = vshrl.u32 %v11433_v4, 16  ;;  %v14233_v8 = vshll.u32 %v11433_v4, 16  ;;  %v11448_v10 = vld [vmem:[%s11427_s25 + $0xc] sm:$0xf]  ;;  %v14222_v11 = vshll.u32 %v11436_v5, 16  ;;  %v8515_v12 = vrot.slane %v11433_v4, 9  ;;  %vm13028_vm13 = vmand %vm4222_vm9, %vm4279_vm12 }
  0x42   : > { %v828_v13 = vrot.slane %v11436_v5, 5  ;;  %v831_v14 = vrot.slane %v11439_v6, 5  ;;  %v11455_v15 = vld [vmem:[%s11427_s25 + $0x10] sm:$0xf]  ;;  %v1575_v17 = vshrl.u32 %v11439_v6, 16  ;;  %v346_v18 = vshrl.u32 %v11448_v10, 16  ;;  %vm13047_vm0 = vmand %vm4788_vm14, %vm4279_vm12 }
  0x43   : > { %9470 = vmatpush3.bf16.msra.mxu0 %v10935_v2  ;;  %v349_v19 = vshll.u32 %v11448_v10, 16  ;;  %v355_v20 = vshll.u32 %v11455_v15, 16  ;;  %10375 = vmatpush3.bf16.msra.mxu1 %v10935_v2  ;;  %v11467_v23 = vld [vmem:[%s11427_s25 + $0x14] sm:$0x3]  ;;  %v359_v24 = vshrl.u32 %v11455_v15, 16  ;;  %v14232_v25 = vshrl.u32 %v11436_v5, 16  ;;  %vm13054_vm1 = vmor %vm4223_vm10, %vm4426_vm15 }
  0x44   : > { %9471 = vmatprep.subr.bf16.mxu0 %v10936_v3  ;;  %v829_v21 = vsel %vm11443_vm2, %v8515_v12, %v828_v13  ;;  %v830_v22 = vrot.slane %v828_v13, 4  ;;  %10368 = vmatprep.subr.bf16.mxu1 %v10936_v3  ;;  %v14202_v26 = vshll.u32 %v11439_v6, 16  ;;  %v11472_v27 = vrot.slane %v1575_v17, 5  ;;  %v11496_v42 = vld [vmem:[%s11427_s25 + $0x18] sm:$0xf]  ;;  %s14009_s15 = scalar_lea.vmem [#allocation6], %s8513_s14 }
  0x45   : > { %v365_v28 = vshll.u32 %v11467_v23, 16  ;;  %v11477_v30 = vrot.slane %v346_v18, 4  ;;  %v11479_v31 = vrot.slane %v349_v19, 5  ;;  %v11481_v32 = vrot.slane %v355_v20, 5  ;;  %v11503_v45 = vld [vmem:[%s11427_s25 + $0x1c] sm:$0xf] }
  0x46   : > { %v832_v29 = vsel %vm11443_vm2, %v830_v22, %v831_v14  ;;  %v11486_v35 = vrot.slane %v359_v24, 4  ;;  %v835_v36 = vrot.slane %v11455_v15, 5  ;;  %v11489_v37 = vrot.slane %v346_v18, 5  ;;  %v11506_v46 = vld [vmem:[%s11427_s25 + $0x20] sm:$0x3]  ;;  %s8419_s11 = sshll.u32 %s14009_s15, 4  ;;  %s14139_s11 = int_to_ptr.vmem [resolvable:$true] %s8419_s11 }
  0x47   : > { %9472 = vmatpush3.bf16.msra.mxu0 %v10936_v3  ;;  %v8549_v34 = vcombine.low %v829_v21, %v832_v29  ;;  %10376 = vmatpush3.bf16.msra.mxu1 %v10936_v3  ;;  %v8516_v38 = vrot.slane %v11448_v10, 9  ;;  %v11492_v39 = vrot.slane %v349_v19, 6  ;;  %v1585_v40 = vrot.slane %v359_v24, 5  ;;  %v11516_v52 = vld [vmem:[%s11427_s25 + $0x24] sm:$0xf]  ;;  %s11199_s10 = scalar_lea.vmem %s14139_s11, 4096 }
  0x48   : > { %9473 = vmatprep.subr.bf16.mxu0 %v10937_v16  ;;  %v1590_v41 = vshrl.u32 %v11467_v23, 16  ;;  %10369 = vmatprep.subr.bf16.mxu1 %v10937_v16  ;;  %v1586_v43 = vrot.slane %v355_v20, 6  ;;  %v11500_v44 = vrot.slane %v365_v28, 6  ;;  %v837_v48 = vrot.slane %v835_v36, 4  ;;  %v11521_v55 = vld [vmem:[%s11427_s25 + $0x28] sm:$0xf]  ;;  %p11200_p8 = scmp.ne.s32.totalorder %s14139_s11, %s11199_s10 }
  0x49   : > { %9481 = vmatprep.mubr.bf16.mxu0 %v8549_v34  ;;  %v838_v49 = vrot.slane %v11467_v23, 5  ;;  %v842_v51 = vrot.slane %v11503_v45, 5  ;;  %v8517_v53 = vrot.slane %v11496_v42, 9  ;;  %v845_v54 = vrot.slane %v11506_v46, 5  ;;  %v11524_v56 = vld [vmem:[%s11427_s25 + $0x2c] sm:$0x3] }
  0x4a   : > { %v11512_v50 = vrot.slane %v1590_v41, 5  ;;  %v8518_v60 = vrot.slane %v11516_v52, 9  ;;  %v849_v61 = vrot.slane %v11521_v55, 5  ;;  %v852_v62 = vrot.slane %v11524_v56, 5  ;;  %v11539_v1 = vld [vmem:[%s11427_s25 + $0x30] sm:$0xf]  ;;  %p11201_p11 = pnand %p11200_p8, %p14729_p10 }
  0x4b   : > { %9474 = vmatpush3.bf16.msra.mxu0 %v10937_v16  ;;  %10377 = vmatpush3.bf16.msra.mxu1 %v10937_v16  ;;  %v844_v59 = vrot.slane %v842_v51, 4  ;;  %v11533_v63 = vor.u32 %v1586_v43, %v1585_v40  ;;  %v11542_v2 = vld [vmem:[%s11427_s25 + $0x34] sm:$0xf]  ;;  %v11545_v3 = vld [vmem:[%s11427_s25 + $0x38] sm:$0x3]  ;;  %v836_v10 = vsel %vm11443_vm2, %v8516_v38, %v835_v36  ;;  %v839_v12 = vsel %vm11443_vm2, %v837_v48, %v838_v49  ;;  %s11287_s17 = smov [#allocation6]  }
  0x4c   : > { %9475 = vmatprep.subr.bf16.mxu0 %v10938_v33  ;;  %10370 = vmatprep.subr.bf16.mxu1 %v10938_v33  ;;  %v851_v13 = vrot.slane %v849_v61, 4  ;;  %v8519_v14 = vrot.slane %v11539_v1, 9  ;;  %v11553_v15 = vld [vmem:[%s11427_s25 + $0x3c] sm:$0xf]  ;;  %v11556_v16 = vld [vmem:[%s11427_s25 + $0x40] sm:$0xf]  ;;  %v352_v29 = vor.u32 %v11479_v31, %v11477_v30  ;;  %v11574_v34 = vcombine.low %v836_v10, %v839_v12  ;;  %p11202_p13 = pneg %p11201_p11 }
  0x4d   : > { %v856_v17 = vrot.slane %v11542_v2, 5  ;;  %v859_v18 = vrot.slane %v11545_v3, 5  ;;  %v11561_v19 = vld [vmem:[%s11427_s25 + $0x44] sm:$0x3]  ;;  %v8520_v20 = vrot.slane %v11553_v15, 9  ;;  %v863_v21 = vrot.slane %v11556_v16, 5 }
  0x4e   : > { %v11567_v22 = vrot.slane %v365_v28, 5  ;;  %v866_v24 = vrot.slane %v11561_v19, 5  ;;  %14428 = vst [vmem:[#allocation10_spill] sm:$0xff] %v11574_v34  ;;  %v843_v36 = vsel %vm11443_vm2, %v8517_v53, %v842_v51  ;;  %v846_v23 = vsel %vm11443_vm2, %v844_v59, %v845_v54  ;;  %v10941_v28 = vld [vmem:[%s14193_s1] sm:$0xff]   ;;  %v11590_v41 = vld [vmem:[%s11427_s25 + $0x48] sm:$0xf] }
  0x4f   : > { %9476 = vmatpush3.bf16.msra.mxu0 %v10938_v33  ;;  %10378 = vmatpush3.bf16.msra.mxu1 %v10938_v33  ;;  %v362_v33 = vor.u32 %v11486_v35, %v11481_v32  ;;  %v858_v38 = vrot.slane %v856_v17, 4  ;;  %v850_v30 = vsel %vm11443_vm2, %v8518_v60, %v849_v61  ;;  %v853_v31 = vsel %vm11443_vm2, %v851_v13, %v852_v62  ;;  %v11593_v43 = vld [vmem:[%s11427_s25 + $0x4c] sm:$0xf]  ;;  %v11600_v51 = vld [vmem:[%s11427_s25 + $0x50] sm:$0x3]  ;;  %s11203_s24 = sshll.u32 %s11287_s17, 4  ;;  %s11204_s24 = int_to_ptr.vmem [resolvable:$false] %s11203_s24 }
  0x50   : > { %9477 = vmatprep.subr.bf16.mxu0 %v10939_v47  ;;  %10371 = vmatprep.subr.bf16.mxu1 %v10939_v47  ;;  %v857_v35 = vsel %vm11443_vm2, %v8519_v14, %v856_v17  ;;  %v865_v40 = vrot.slane %v863_v21, 4  ;;  %v864_v49 = vsel %vm11443_vm2, %v8520_v20, %v863_v21  ;;  %v8521_v53 = vrot.slane %v11590_v41, 9  ;;  %v11605_v59 = vld [vmem:[%s11427_s25 + $0x54] sm:$0xf]  ;;  %v11613_v62 = vld [vmem:[%s11427_s25 + $0x58] sm:$0xf]  ;;  %p11206_p1 = scmp.lt.s32.totalorder %s14139_s11, %s11204_s24 }
  0x51   : > { %v860_v48 = vsel %vm11443_vm2, %v858_v38, %v859_v18  ;;  %v870_v54 = vrot.slane %v11593_v43, 5  ;;  %v11607_v60 = vcombine.low %v843_v36, %v846_v23  ;;  %v873_v61 = vrot.slane %v11600_v51, 5  ;;  %v11616_v10 = vld [vmem:[%s11427_s25 + $0x5c] sm:$0x3]  ;;  %v10942_v13 = vld [vmem:[%s14193_s1 + $0x8] sm:$0xff]   ;;  %s11205_s27 = scalar_lea.vmem %s11204_s24, 8192 }
  0x52   : > { %v8522_v12 = vrot.slane %v11605_v59, 9  ;;  %v11622_v14 = vcombine.low %v850_v30, %v853_v31  ;;  %v877_v20 = vrot.slane %v11613_v62, 5  ;;  %v11627_v21 = vcombine.low %v857_v35, %v860_v48  ;;  %p11207_p3 = scmp.lt.s32.totalorder %s11205_s27, %s11199_s10 }
  0x53   : > { %9478 = vmatpush3.bf16.msra.mxu0 %v10939_v47  ;;  %10379 = vmatpush3.bf16.msra.mxu1 %v10939_v47  ;;  %14429 = vst [vmem:[#allocation11_spill] sm:$0xff] %v11607_v60  ;;  %v867_v47 = vsel %vm11443_vm2, %v865_v40, %v866_v24  ;;  %v871_v17 = vsel %vm11443_vm2, %v8521_v53, %v870_v54  ;;  %v872_v18 = vrot.slane %v870_v54, 4  ;;  %v880_v36 = vrot.slane %v11616_v10, 5  ;;  %v10943_v54 = vld [vmem:[%s14193_s1 + $0x10] sm:$0xff]  }
  0x54   : > { %9479 = vmatprep.subr.bf16.mxu0 %v10940_v0  ;;  %10372 = vmatprep.subr.bf16.mxu1 %v10940_v0  ;;  %14430 = vst [vmem:[#allocation12_spill] sm:$0xff] %v11622_v14  ;;  %14431 = vst [vmem:[#allocation13_spill] sm:$0xff] %v11627_v21  ;;  %v11629_v24 = vcombine.low %v864_v49, %v867_v47  ;;  %v324_v23 = vrot.slane %v14235_v7, 4  ;;  %v878_v30 = vsel %vm11443_vm2, %v8522_v12, %v877_v20  ;;  %v14434_v48 = vmov 0  ;;  %p11208_p5 = por %p11207_p3, %p11206_p1 }
  0x55   : > { %v874_v38 = vsel %vm11443_vm2, %v872_v18, %v873_v61  ;;  %v879_v31 = vrot.slane %v877_v20, 4  ;;  %v327_v35 = vrot.slane %v14233_v8, 5  ;;  %v14435_v48 = vsel %vm11644_vm5, 4294967295, %v14434_v48 }
  0x56   : > { %14432 = vst [vmem:[#allocation14_spill] sm:$0xff] %v11629_v24  ;;  %v11640_v40 = vcombine.low %v871_v17, %v874_v38  ;;  %14436 = vst [vmem:[#allocation16_spill] sm:$0xff] %v14435_v48  ;;  %v337_v49 = vrot.slane %v14232_v25, 4  ;;  %v343_v53 = vrot.slane %v14202_v26, 5  ;;  %v353_v12 = vrot.slane %v352_v29, 4  ;;  %p11209_p6 = pnand %p11208_p5, %p11202_p13 }
  0x57   : > { %9480 = vmatpush3.bf16.msra.mxu0 %v10940_v0  ;;  %10380 = vmatpush3.bf16.msra.mxu1 %v10940_v0  ;;  %v333_v0 = vrot.slane %v14222_v11, 5  ;;  %v881_v47 = vsel %vm11443_vm2, %v879_v31, %v880_v36  ;;  %v328_v61 = vor.u32 %v327_v35, %v324_v23  ;;  %v363_v17 = vrot.slane %v362_v33, 4 }
  0x58   : > { %9517 = vmatprep.subr.bf16.mxu0 %v10941_v28  ;;  %14433 = vst [vmem:[#allocation15_spill] sm:$0xff] %v11640_v40  ;;  %v11661_v18 = vcombine.low %v878_v30, %v881_v47  ;;  %v14214_v38 = vshrl.u32 %v11496_v42, 16  ;;  %v14211_v58 = vshll.u32 %v11496_v42, 16  ;;  %v358_v26 = vsel %vm11644_vm5, %v353_v12, %v11481_v32 }
  0x59   : > { %v338_v20 = vor.u32 %v337_v49, %v333_v0  ;;  %v329_v57 = vrot.slane %v328_v61, 4  ;;  %v368_v29 = vsel %vm11644_vm5, %v363_v17, %v11567_v22  ;;  %v14207_v33 = vshll.u32 %v11503_v45, 16 }
  0x5a   : > { %9482 = vmatmul.mubr.bf16.vlgmr.msra.gmra.mrb[0].mxu0 %v11574_v34  ;;  %14437 = vst [vmem:[#allocation17_spill] sm:$0xff] %v11661_v18  ;;  %v11672_v36 = vcombine.low %v358_v26, %v368_v29  ;;  %v372_v23 = vrot.slane %v14214_v38, 4  ;;  %v375_v30 = vrot.slane %v14211_v58, 5  ;;  %v14209_v35 = vshrl.u32 %v11503_v45, 16 }
  0x5b   : > { %9518 = vmatpush3.bf16.msra.mxu0 %v10941_v28  ;;  %9485 = vmatprep.mubr.bf16.mxu0 %v11607_v60  ;;  %v339_v28 = vrot.slane %v338_v20, 4  ;;  %v334_v31 = vsel %vm11644_vm5, %v329_v57, %v333_v0  ;;  %v381_v32 = vrot.slane %v14207_v33, 5  ;;  %v14205_v22 = vshll.u32 %v11506_v46, 16  ;;  %v10944_v57 = vld [vmem:[%s14193_s1 + $0x18] sm:$0xff]  }
  0x5c   : > { %9519 = vmatprep.subr.bf16.mxu0 %v10942_v13  ;;  %14438 = vst [vmem:[#allocation18_spill] sm:$0xff] %v11672_v36  ;;  %v376_v49 = vor.u32 %v375_v30, %v372_v23  ;;  %v14203_v47 = vshrl.u32 %v11516_v52, 16  ;;  %v14204_v61 = vshll.u32 %v11516_v52, 16  ;;  %v385_v12 = vrot.slane %v14209_v35, 4  ;;  %v11895_v60 = vld [vmem:[%s11427_s25 + $0x7c] sm:$0xf] }
  0x5d   : > { %v344_v26 = vsel %vm11644_vm5, %v339_v28, %v343_v53  ;;  %v14206_v53 = vshll.u32 %v11521_v55, 16  ;;  %v14208_v28 = vshrl.u32 %v11521_v55, 16  ;;  %v14216_v58 = vshrl.u32 %v11553_v15, 16  ;;  %14449 = vst [vmem:[#allocation27_spill] sm:$0xff] %v11895_v60 }
  0x5e   : > { %v11691_v0 = vcombine.low %v334_v31, %v344_v26  ;;  %v377_v17 = vrot.slane %v376_v49, 4  ;;  %v396_v20 = vrot.slane %v14203_v47, 4  ;;  %v399_v29 = vrot.slane %v14204_v61, 5 }
  0x5f   : > { %9520 = vmatpush3.bf16.msra.mxu0 %v10942_v13  ;;  %v391_v13 = vrot.slane %v14205_v22, 5  ;;  %v386_v23 = vor.u32 %v385_v12, %v381_v32  ;;  %v405_v30 = vrot.slane %v14206_v53, 5  ;;  %v14210_v31 = vshll.u32 %v11524_v56, 16  ;;  %v10945_v12 = vld [vmem:[%s14193_s1 + $0x20] sm:$0xff]  }
  0x60   : > { %9521 = vmatprep.subr.bf16.mxu0 %v10943_v54  ;;  %v14213_v26 = vshrl.u32 %v11539_v1, 16  ;;  %v382_v49 = vsel %vm11644_vm5, %v377_v17, %v381_v32  ;;  %v400_v47 = vor.u32 %v399_v29, %v396_v20  ;;  %v409_v61 = vrot.slane %v14208_v28, 4 }
  0x61   : > { %v14212_v22 = vshll.u32 %v11539_v1, 16  ;;  %v387_v53 = vrot.slane %v386_v23, 4  ;;  %v14215_v32 = vshll.u32 %v11542_v2, 16  ;;  %v14221_v28 = vshrl.u32 %v11542_v2, 16 }
  0x62   : > { %9486 = vmatmul.mubr.bf16.gmra.mrb[4].mxu0 %v11622_v14  ;;  %v420_v33 = vrot.slane %v14213_v26, 4  ;;  %v401_v17 = vrot.slane %v400_v47, 4  ;;  %v410_v20 = vor.u32 %v409_v61, %v405_v30  ;;  %v10946_v47 = vld [vmem:[%s14193_s1 + $0x28] sm:$0xff]  }
  0x63   : > { %9522 = vmatpush3.bf16.msra.mxu0 %v10943_v54  ;;  %9489 = vmatprep.mubr.bf16.mxu0 %v11627_v21  ;;  %v415_v54 = vrot.slane %v14210_v31, 5  ;;  %v423_v29 = vrot.slane %v14212_v22, 5  ;;  %v392_v35 = vsel %vm11644_vm5, %v387_v53, %v391_v13  ;;  %v429_v23 = vrot.slane %v14215_v32, 5 }
  0x64   : > { %9523 = vmatprep.subr.bf16.mxu0 %v10944_v57  ;;  %v14220_v31 = vshll.u32 %v11545_v3, 16  ;;  %v11734_v61 = vcombine.low %v382_v49, %v392_v35  ;;  %v406_v22 = vsel %vm11644_vm5, %v401_v17, %v405_v30  ;;  %v411_v26 = vrot.slane %v410_v20, 4 }
  0x65   : > { %v424_v38 = vor.u32 %v423_v29, %v420_v33  ;;  %v433_v13 = vrot.slane %v14221_v28, 4  ;;  %v14217_v32 = vshll.u32 %v11553_v15, 16  ;;  %v14218_v30 = vshll.u32 %v11556_v16, 16 }
  0x66   : > { %14439 = vst [vmem:[#allocation19_spill] sm:$0xff] %v11734_v61  ;;  %v439_v53 = vrot.slane %v14220_v31, 5  ;;  %v416_v35 = vsel %vm11644_vm5, %v411_v26, %v415_v54  ;;  %v14219_v33 = vshrl.u32 %v11556_v16, 16  ;;  %v14226_v31 = vshrl.u32 %v11593_v43, 16 }
  0x67   : > { %9524 = vmatpush3.bf16.msra.mxu0 %v10944_v57  ;;  %v444_v57 = vrot.slane %v14216_v58, 4  ;;  %v425_v49 = vrot.slane %v424_v38, 4  ;;  %v11750_v17 = vcombine.low %v406_v22, %v416_v35  ;;  %v434_v20 = vor.u32 %v433_v13, %v429_v23  ;;  %v10947_v13 = vld [vmem:[%s14193_s1 + $0x30] sm:$0xff]  }
  0x68   : > { %9525 = vmatprep.subr.bf16.mxu0 %v10945_v12  ;;  %v447_v29 = vrot.slane %v14217_v32, 5  ;;  %v14224_v58 = vshll.u32 %v11561_v19, 16  ;;  %v453_v26 = vrot.slane %v14218_v30, 5  ;;  %v457_v54 = vrot.slane %v14219_v33, 4 }
  0x69   : > { %14440 = vst [vmem:[#allocation20_spill] sm:$0xff] %v11750_v17  ;;  %v430_v38 = vsel %vm11644_vm5, %v425_v49, %v429_v23  ;;  %v14223_v22 = vshrl.u32 %v11590_v41, 16  ;;  %v435_v35 = vrot.slane %v434_v20, 4  ;;  %v14227_v23 = vshll.u32 %v11590_v41, 16 }
  0x6a   : > { %9490 = vmatmul.mubr.bf16.gmra.mrb[8].mxu0 %v11629_v24  ;;  %v463_v32 = vrot.slane %v14224_v58, 5  ;;  %v458_v49 = vor.u32 %v457_v54, %v453_v26  ;;  %v14225_v33 = vshll.u32 %v11593_v43, 16  ;;  %v14231_v20 = vshll.u32 %v11600_v51, 16  ;;  %v11887_v24 = vld [vmem:[%s11427_s25 + $0x78] sm:$0xf] }
  0x6b   : > { %9526 = vmatpush3.bf16.msra.mxu0 %v10945_v12  ;;  %9493 = vmatprep.mubr.bf16.mxu0 %v11640_v40  ;;  %v448_v12 = vor.u32 %v447_v29, %v444_v57  ;;  %v468_v30 = vrot.slane %v14223_v22, 4  ;;  %v440_v28 = vsel %vm11644_vm5, %v435_v35, %v439_v53  ;;  %v471_v57 = vrot.slane %v14227_v23, 5  ;;  %v10948_v53 = vld [vmem:[%s14193_s1 + $0x38] sm:$0xff]   ;;  %14448 = vst [vmem:[#allocation26_spill] sm:$0xff] %v11887_v24 }
  0x6c   : > { %9527 = vmatprep.subr.bf16.mxu0 %v10946_v47  ;;  %v11778_v29 = vcombine.low %v430_v38, %v440_v28  ;;  %v459_v54 = vrot.slane %v458_v49, 4  ;;  %v477_v22 = vrot.slane %v14225_v33, 5  ;;  %v481_v58 = vrot.slane %v14226_v31, 4 }
  0x6d   : > { %v449_v11 = vrot.slane %v448_v12, 4  ;;  %v472_v12 = vor.u32 %v471_v57, %v468_v30  ;;  %v487_v28 = vrot.slane %v14231_v20, 5  ;;  %v14228_v33 = vshll.u32 %v11605_v59, 16  ;;  %v11803_v57 = vld [vmem:[%s11427_s25 + $0x60] sm:$0xf] }
  0x6e   : > { %14441 = vst [vmem:[#allocation21_spill] sm:$0xff] %v11778_v29  ;;  %v464_v38 = vsel %vm11644_vm5, %v459_v54, %v463_v32  ;;  %v482_v49 = vor.u32 %v481_v58, %v477_v22  ;;  %v14229_v31 = vshll.u32 %v11613_v62, 16  ;;  %v8525_v34 = vrot.slane %v11887_v24, 9 }
  0x6f   : > { %9528 = vmatpush3.bf16.msra.mxu0 %v10946_v47  ;;  %v454_v35 = vsel %vm11644_vm5, %v449_v11, %v453_v26  ;;  %v14230_v47 = vshrl.u32 %v11605_v59, 16  ;;  %v473_v11 = vrot.slane %v472_v12, 4  ;;  %v14234_v26 = vshrl.u32 %v11613_v62, 16  ;;  %v11812_v12 = vld [vmem:[%s11427_s25 + $0x64] sm:$0xf] }
  0x70   : > { %9529 = vmatprep.subr.bf16.mxu0 %v10947_v13  ;;  %v11797_v23 = vcombine.low %v454_v35, %v464_v38  ;;  %v483_v58 = vrot.slane %v482_v49, 4  ;;  %v495_v32 = vrot.slane %v14228_v33, 5  ;;  %v501_v54 = vrot.slane %v14229_v31, 5  ;;  %v10949_v38 = vld [vmem:[%s14193_s1 + $0x80] sm:$0xff]   ;;  %v11822_v49 = vld [vmem:[%s11427_s25 + $0x68] sm:$0x3] }
  0x71   : > { %v492_v30 = vrot.slane %v14230_v47, 4  ;;  %v14238_v35 = vshll.u32 %v11616_v10, 16  ;;  %v8523_v33 = vrot.slane %v11803_v57, 9  ;;  %v884_v31 = vrot.slane %v11812_v12, 5 }
  0x72   : > { %9494 = vmatmul.mubr.bf16.gmra.mrb[12].mxu0 %v11661_v18  ;;  %14442 = vst [vmem:[#allocation22_spill] sm:$0xff] %v11797_v23  ;;  %v488_v47 = vsel %vm11644_vm5, %v483_v58, %v487_v28  ;;  %v887_v8 = vrot.slane %v11822_v49, 5  ;;  %v14240_v28 = vshrl.u32 %v11803_v57, 16  ;;  %v11857_v58 = vld [vmem:[%s11427_s25 + $0x70] sm:$0xf] }
  0x73   : > { %9530 = vmatpush3.bf16.msra.mxu0 %v10947_v13  ;;  %9533 = vmatprep.mubr.bf16.mxu0 %v11691_v0  ;;  %v478_v13 = vsel %vm11644_vm5, %v473_v11, %v477_v22  ;;  %v505_v0 = vrot.slane %v14234_v26, 4  ;;  %v496_v20 = vor.u32 %v495_v32, %v492_v30  ;;  %v511_v25 = vrot.slane %v14238_v35, 5 }
  0x74   : > { %9531 = vmatprep.subr.bf16.mxu0 %v10948_v53  ;;  %v11831_v22 = vcombine.low %v478_v13, %v488_v47  ;;  %v885_v26 = vsel %vm11443_vm2, %v8523_v33, %v884_v31  ;;  %v886_v7 = vrot.slane %v884_v31, 4  ;;  %v14239_v30 = vshll.u32 %v11803_v57, 16  ;;  %v10950_v47 = vld [vmem:[%s14193_s1 + $0x88] sm:$0xff]  }
  0x75   : > { %v506_v11 = vor.u32 %v505_v0, %v501_v54  ;;  %v497_v18 = vrot.slane %v496_v20, 4  ;;  %v14243_v31 = vshrl.u32 %v11812_v12, 16  ;;  %v516_v35 = vrot.slane %v14240_v28, 4 }
  0x76   : > { %14443 = vst [vmem:[#allocation23_spill] sm:$0xff] %v11831_v22  ;;  %v888_v33 = vsel %vm11443_vm2, %v886_v7, %v887_v8  ;;  %v11860_v7 = vld [vmem:[%s11427_s25 + $0x74] sm:$0x3]  ;;  %v14445_v20 = vshll.u32 %v11812_v12, 16 }
  0x77   : > { %9532 = vmatpush3.bf16.msra.mxu0 %v10948_v53  ;;  %v507_v32 = vrot.slane %v506_v11, 4  ;;  %v11846_v53 = vld [vmem:[%s11427_s25 + $0x6c] sm:$0xf]  ;;  %v502_v13 = vsel %vm11644_vm5, %v497_v18, %v501_v54  ;;  %v11850_v0 = vcombine.low %v885_v26, %v888_v33  ;;  %v519_v11 = vrot.slane %v14239_v30, 5 }
  0x78   : > { %9569 = vmatprep.subr.bf16.mxu0 %v10949_v38  ;;  %v525_v18 = vrot.slane %v14445_v20, 5  ;;  %v529_v26 = vrot.slane %v14243_v31, 4  ;;  %v14446_v54 = vshll.u32 %v11822_v49, 16  ;;  %v8524_v40 = vrot.slane %v11846_v53, 9 }
  0x79   : > { %14444 = vst [vmem:[#allocation24_spill] sm:$0xff] %v11850_v0  ;;  %v512_v8 = vsel %vm11644_vm5, %v507_v32, %v511_v25  ;;  %v520_v28 = vor.u32 %v519_v11, %v516_v35  ;;  %v891_v25 = vrot.slane %v11857_v58, 5  ;;  %v10951_v32 = vld [vmem:[%s14193_s1 + $0x90] sm:$0xff]   ;;  %9497 = vmatprep.mubr.bf16.mxu1 %v11850_v0  ;;  %v14256_v31 = vshll.u32 %v11857_v58, 16 }
  0x7a   : > { %9534 = vmatmul.mubr.bf16.vlgmr.msra.gmra.mrb[16].mxu0 %v11672_v36  ;;  %v535_v33 = vrot.slane %v14446_v54, 5  ;;  %v11872_v30 = vcombine.low %v502_v13, %v512_v8  ;;  %v530_v20 = vor.u32 %v529_v26, %v525_v18  ;;  %v14254_v54 = vshrl.u32 %v11846_v53, 16 }
  0x7b   : > { %9570 = vmatpush3.bf16.msra.mxu0 %v10949_v38  ;;  %9537 = vmatprep.mubr.bf16.mxu0 %v11734_v61  ;;  %v894_v38 = vrot.slane %v11860_v7, 5  ;;  %v14255_v13 = vshll.u32 %v11846_v53, 16  ;;  %v521_v35 = vrot.slane %v520_v28, 4  ;;  %v892_v11 = vsel %vm11443_vm2, %v8524_v40, %v891_v25 }
  0x7c   : > { %14447 = vst [vmem:[#allocation25_spill] sm:$0xff] %v11872_v30  ;;  %9571 = vmatprep.subr.bf16.mxu0 %v10950_v47  ;;  %v893_v8 = vrot.slane %v891_v25, 4  ;;  %v531_v21 = vrot.slane %v530_v20, 4  ;;  %v540_v26 = vrot.slane %v14254_v54, 4  ;;  %v549_v25 = vrot.slane %v14256_v31, 5 }
  0x7d   : > { %v543_v0 = vrot.slane %v14255_v13, 5  ;;  %v526_v40 = vsel %vm11644_vm5, %v521_v35, %v525_v18  ;;  %v14260_v20 = vshll.u32 %v11860_v7, 16  ;;  %v11905_v54 = vld [vmem:[%s11427_s25 + $0x80] sm:$0x3]  ;;  %v10952_v13 = vld [vmem:[%s14193_s1 + $0x98] sm:$0xff]   ;;  %v898_v61 = vrot.slane %v11895_v60, 5 }
  0x7e   : > { %v895_v28 = vsel %vm11443_vm2, %v893_v8, %v894_v38  ;;  %14450 = vst [vmem:[#allocation28_spill] sm:$0xff] %v11905_v54  ;;  %v14452_v38 = vshrl.u32 %v11857_v58, 16 }
  0x7f   : > { %9572 = vmatpush3.bf16.msra.mxu0 %v10950_v47  ;;  %v536_v47 = vsel %vm11644_vm5, %v531_v21, %v535_v33  ;;  %v11912_v14 = vcombine.low %v892_v11, %v895_v28  ;;  %v544_v18 = vor.u32 %v543_v0, %v540_v26  ;;  %v559_v31 = vrot.slane %v14260_v20, 5  ;;  %v11943_v20 = vld [vmem:[%s11427_s25 + $0x88] sm:$0xf] }
  0x80   : > { %9573 = vmatprep.subr.bf16.mxu0 %v10951_v32  ;;  %v553_v35 = vrot.slane %v14452_v38, 4  ;;  %v11916_v8 = vcombine.low %v526_v40, %v536_v47  ;;  %v901_v0 = vrot.slane %v11905_v54, 5  ;;  %v14265_v11 = vshrl.u32 %v11887_v24, 16  ;;  %v11932_v38 = vld [vmem:[%s11427_s25 + $0x84] sm:$0xf]  ;;  %14455 = vst [vmem:[#allocation32_spill] sm:$0xff] %v11943_v20 }
  0x81   : > { %14451 = vst [vmem:[#allocation29_spill] sm:$0xff] %v11912_v14  ;;  %9498 = vmatmul.mubr.bf16.vlgmr.msra.gmra.mrb[0].mxu1 %v11912_v14  ;;  %v545_v21 = vrot.slane %v544_v18, 4  ;;  %v899_v26 = vsel %vm11443_vm2, %v8525_v34, %v898_v61  ;;  %v900_v40 = vrot.slane %v898_v61, 4  ;;  %v14269_v28 = vshll.u32 %v11887_v24, 16  ;;  %14454 = vst [vmem:[#allocation31_spill] sm:$0xff] %v11932_v38 }
  0x82   : > { %14453 = vst [vmem:[#allocation30_spill] sm:$0xff] %v11916_v8  ;;  %9538 = vmatmul.mubr.bf16.gmra.mrb[4].mxu0 %v11750_v17  ;;  %v554_v33 = vor.u32 %v553_v35, %v549_v25  ;;  %v564_v34 = vrot.slane %v14265_v11, 4  ;;  %v14273_v61 = vshrl.u32 %v11895_v60, 16  ;;  %v905_v24 = vrot.slane %v11943_v20, 5 }
  0x83   : > { %9541 = vmatprep.mubr.bf16.mxu0 %v11778_v29  ;;  %9574 = vmatpush3.bf16.msra.mxu0 %v10951_v32  ;;  %v550_v18 = vsel %vm11644_vm5, %v545_v21, %v549_v25  ;;  %v10953_v32 = vld [vmem:[%s14193_s1 + $0xa0] sm:$0xff]   ;;  %v902_v47 = vsel %vm11443_vm2, %v900_v40, %v901_v0  ;;  %v567_v14 = vrot.slane %v14269_v28, 5  ;;  %v14456_v25 = vshll.u32 %v11895_v60, 16  ;;  %v11953_v29 = vld [vmem:[%s11427_s25 + $0x8c] sm:$0x3] }
  0x84   : > { %9575 = vmatprep.subr.bf16.mxu0 %v10952_v13  ;;  %v555_v35 = vrot.slane %v554_v33, 4  ;;  %v14272_v33 = vshll.u32 %v11905_v54, 16  ;;  %14457 = vst [vmem:[#allocation33_spill] sm:$0xff] %v11953_v29  ;;  %v11957_v17 = vcombine.low %v899_v26, %v902_v47  ;;  %v577_v36 = vrot.slane %v14273_v61, 4  ;;  %v11987_v54 = vld [vmem:[%s11427_s25 + $0x94] sm:$0xf] }
  0x85   : > { %v573_v21 = vrot.slane %v14456_v25, 5  ;;  %v8526_v0 = vrot.slane %v11932_v38, 9  ;;  %v568_v28 = vor.u32 %v567_v14, %v564_v34  ;;  %v908_v26 = vrot.slane %v11953_v29, 5  ;;  %v10954_v14 = vld [vmem:[%s14193_s1 + $0xa8] sm:$0xff]   ;;  %14460 = vst [vmem:[#allocation36_spill] sm:$0xff] %v11987_v54 }
  0x86   : > { %v560_v11 = vsel %vm11644_vm5, %v555_v35, %v559_v31  ;;  %14458 = vst [vmem:[#allocation34_spill] sm:$0xff] %v11957_v17  ;;  %v583_v25 = vrot.slane %v14272_v33, 5  ;;  %9501 = vmatprep.mubr.bf16.mxu1 %v11957_v17  ;;  %v14277_v47 = vshrl.u32 %v11932_v38, 16  ;;  %v907_v35 = vrot.slane %v905_v24, 4  ;;  %v11978_v33 = vld [vmem:[%s11427_s25 + $0x90] sm:$0xf] }
  0x87   : > { %9576 = vmatpush3.bf16.msra.mxu0 %v10952_v13  ;;  %v11962_v40 = vcombine.low %v550_v18, %v560_v11  ;;  %v578_v31 = vor.u32 %v577_v36, %v573_v21  ;;  %v14280_v13 = vshll.u32 %v11932_v38, 16  ;;  %v569_v11 = vrot.slane %v568_v28, 4  ;;  %v12051_v60 = vld [vmem:[%s11427_s25 + $0xa4] sm:$0x3] }
  0x88   : > { %9577 = vmatprep.subr.bf16.mxu0 %v10953_v32  ;;  %v906_v18 = vsel %vm11443_vm2, %v8526_v0, %v905_v24  ;;  %v14286_v34 = vshll.u32 %v11943_v20, 16  ;;  %v588_v61 = vrot.slane %v14277_v47, 4  ;;  %v909_v0 = vsel %vm11443_vm2, %v907_v35, %v908_v26 }
  0x89   : > { %14459 = vst [vmem:[#allocation35_spill] sm:$0xff] %v11962_v40  ;;  %v579_v36 = vrot.slane %v578_v31, 4  ;;  %v591_v17 = vrot.slane %v14280_v13, 5  ;;  %v574_v24 = vsel %vm11644_vm5, %v569_v11, %v573_v21  ;;  %v14285_v47 = vshll.u32 %v11953_v29, 16  ;;  %v10955_v21 = vld [vmem:[%s14193_s1 + $0xb0] sm:$0xff]  }
  0x8a   : > { %9542 = vmatmul.mubr.bf16.gmra.mrb[8].mxu0 %v11797_v23  ;;  %v597_v31 = vrot.slane %v14286_v34, 5  ;;  %v11998_v23 = vld [vmem:[%s11427_s25 + $0x98] sm:$0x3]  ;;  %v12002_v28 = vcombine.low %v906_v18, %v909_v0  ;;  %v8527_v35 = vrot.slane %v11978_v33, 9  ;;  %v14295_v0 = vshll.u32 %v11978_v33, 16 }
  0x8b   : > { %9545 = vmatprep.mubr.bf16.mxu0 %v11831_v22  ;;  %9578 = vmatpush3.bf16.msra.mxu0 %v10953_v32  ;;  %14461 = vst [vmem:[#allocation37_spill] sm:$0xff] %v11998_v23  ;;  %v584_v13 = vsel %vm11644_vm5, %v579_v36, %v583_v25  ;;  %v592_v22 = vor.u32 %v591_v17, %v588_v61  ;;  %v14463_v32 = vshrl.u32 %v11943_v20, 16  ;;  %v607_v11 = vrot.slane %v14285_v47, 5  ;;  %v12023_v47 = vld [vmem:[%s11427_s25 + $0x9c] sm:$0xf] }
  0x8c   : > { %14462 = vst [vmem:[#allocation38_spill] sm:$0xff] %v12002_v28  ;;  %9579 = vmatprep.subr.bf16.mxu0 %v10954_v14  ;;  %v12009_v26 = vcombine.low %v574_v24, %v584_v13  ;;  %v912_v25 = vrot.slane %v11987_v54, 5  ;;  %9502 = vmatmul.mubr.bf16.gmra.mrb[4].mxu1 %v12002_v28  ;;  %v915_v18 = vrot.slane %v11998_v23, 5  ;;  %v14289_v36 = vshrl.u32 %v11978_v33, 16  ;;  %14465 = vst [vmem:[#allocation40_spill] sm:$0xff] %v12023_v47 }
  0x8d   : > { %v601_v38 = vrot.slane %v14463_v32, 4  ;;  %v593_v17 = vrot.slane %v592_v22, 4  ;;  %v12031_v28 = vld [vmem:[%s11427_s25 + $0xa0] sm:$0xf]  ;;  %v615_v32 = vrot.slane %v14295_v0, 5  ;;  %v14468_v29 = vshrl.u32 %v11987_v54, 16 }
  0x8e   : > { %14464 = vst [vmem:[#allocation39_spill] sm:$0xff] %v12009_v26  ;;  %v913_v13 = vsel %vm11443_vm2, %v8527_v35, %v912_v25  ;;  %v914_v24 = vrot.slane %v912_v25, 4  ;;  %v612_v34 = vrot.slane %v14289_v36, 4  ;;  %v10956_v35 = vld [vmem:[%s14193_s1 + $0xb8] sm:$0xff]  }
  0x8f   : > { %v602_v61 = vor.u32 %v601_v38, %v597_v31  ;;  %9580 = vmatpush3.bf16.msra.mxu0 %v10954_v14  ;;  %v598_v22 = vsel %vm11644_vm5, %v593_v17, %v597_v31  ;;  %v14466_v31 = vshll.u32 %v11987_v54, 16  ;;  %v625_v20 = vrot.slane %v14468_v29, 4  ;;  %v12091_v54 = vld [vmem:[%s11427_s25 + $0xb0] sm:$0x3] }
  0x90   : > { %9581 = vmatprep.subr.bf16.mxu0 %v10955_v21  ;;  %v916_v25 = vsel %vm11443_vm2, %v914_v24, %v915_v18  ;;  %v8528_v18 = vrot.slane %v12023_v47, 9  ;;  %14473 = vst [vmem:[#allocation45_spill] sm:$0xff] %v12091_v54 }
  0x91   : > { %v603_v38 = vrot.slane %v602_v61, 4  ;;  %v621_v17 = vrot.slane %v14466_v31, 5  ;;  %v14296_v61 = vshll.u32 %v11998_v23, 16  ;;  %v12046_v14 = vcombine.low %v913_v13, %v916_v25  ;;  %v12081_v23 = vld [vmem:[%s11427_s25 + $0xac] sm:$0xf] }
  0x92   : > { %9546 = vmatmul.mubr.bf16.gmra.mrb[12].mxu0 %v11872_v30  ;;  %v616_v31 = vor.u32 %v615_v32, %v612_v34  ;;  %v922_v13 = vrot.slane %v12051_v60, 5  ;;  %v12067_v34 = vld [vmem:[%s14193_s1 + $0xc0] sm:$0xff]   ;;  %14472 = vst [vmem:[#allocation44_spill] sm:$0xff] %v12081_v23 }
  0x93   : > { %v608_v36 = vsel %vm11644_vm5, %v603_v38, %v607_v11  ;;  %14467 = vst [vmem:[#allocation41_spill] sm:$0xff] %v12046_v14  ;;  %9549 = vmatprep.mubr.bf16.mxu0 %v11916_v8  ;;  %v631_v0 = vrot.slane %v14296_v61, 5  ;;  %v919_v11 = vrot.slane %v12031_v28, 5  ;;  %9582 = vmatpush3.bf16.msra.mxu0 %v10955_v21  ;;  %v626_v29 = vor.u32 %v625_v20, %v621_v17 }
  0x94   : > { %v12055_v24 = vcombine.low %v598_v22, %v608_v36  ;;  %9505 = vmatprep.mubr.bf16.mxu1 %v12046_v14  ;;  %v14306_v38 = vshrl.u32 %v12023_v47, 16  ;;  %9583 = vmatprep.subr.bf16.mxu0 %v10956_v35  ;;  %v617_v36 = vrot.slane %v616_v31, 4  ;;  %v14310_v20 = vshll.u32 %v12031_v28, 16  ;;  %v12073_v22 = vld [vmem:[%s11427_s25 + $0xa8] sm:$0xf] }
  0x95   : > { %v920_v21 = vsel %vm11443_vm2, %v8528_v18, %v919_v11  ;;  %v921_v32 = vrot.slane %v919_v11, 4  ;;  %14470 = vst [vmem:[#allocation43_spill] sm:$0xff] %v12073_v22  ;;  %v627_v61 = vrot.slane %v626_v29, 4  ;;  %v14471_v14 = vshll.u32 %v12023_v47, 16 }
  0x96   : > { %14469 = vst [vmem:[#allocation42_spill] sm:$0xff] %v12055_v24  ;;  %v636_v25 = vrot.slane %v14306_v38, 4  ;;  %v622_v31 = vsel %vm11644_vm5, %v617_v36, %v621_v17  ;;  %v645_v11 = vrot.slane %v14310_v20, 5  ;;  %v14309_v29 = vshll.u32 %v12051_v60, 16 }
  0x97   : > { %v639_v8 = vrot.slane %v14471_v14, 5  ;;  %v923_v18 = vsel %vm11443_vm2, %v921_v32, %v922_v13  ;;  %9584 = vmatpush3.bf16.msra.mxu0 %v10956_v35  ;;  %v632_v14 = vsel %vm11644_vm5, %v627_v61, %v631_v0  ;;  %v14475_v47 = vshrl.u32 %v12031_v28, 16 }
  0x98   : > { %v12095_v38 = vcombine.low %v920_v21, %v923_v18  ;;  %9621 = vmatprep.subr.bf16.mxu0 %v12067_v34  ;;  %v12100_v13 = vcombine.low %v622_v31, %v632_v14  ;;  %v655_v36 = vrot.slane %v14309_v29, 5  ;;  %v8529_v32 = vrot.slane %v12073_v22, 9  ;;  %v12116_v14 = vld [vmem:[%s11427_s25 + $0xb4] sm:$0xf] }
  0x99   : > { %v640_v30 = vor.u32 %v639_v8, %v636_v25  ;;  %v649_v17 = vrot.slane %v14475_v47, 4  ;;  %v926_v35 = vrot.slane %v12081_v23, 5  ;;  %v929_v47 = vrot.slane %v12091_v54, 5  ;;  %14477 = vst [vmem:[#allocation48_spill] sm:$0xff] %v12116_v14 }
  0x9a   : > { %14474 = vst [vmem:[#allocation46_spill] sm:$0xff] %v12095_v38  ;;  %14476 = vst [vmem:[#allocation47_spill] sm:$0xff] %v12100_v13  ;;  %9550 = vmatmul.mubr.bf16.gmra.mrb[20].mxu0 %v11962_v40  ;;  %9506 = vmatmul.mubr.bf16.gmra.mrb[8].mxu1 %v12095_v38  ;;  %v14317_v61 = vshrl.u32 %v12073_v22, 16  ;;  %v14318_v31 = vshll.u32 %v12073_v22, 16  ;;  %v14319_v18 = vshll.u32 %v12081_v23, 16  ;;  %v14322_v20 = vshrl.u32 %v12081_v23, 16 }
  0x9b   : > { %v641_v8 = vrot.slane %v640_v30, 4  ;;  %v650_v0 = vor.u32 %v649_v17, %v645_v11  ;;  %9553 = vmatprep.mubr.bf16.mxu0 %v12009_v26  ;;  %v927_v25 = vsel %vm11443_vm2, %v8529_v32, %v926_v35  ;;  %v928_v21 = vrot.slane %v926_v35, 4  ;;  %v12124_v38 = vld [vmem:[%s11427_s25 + $0xb8] sm:$0xf] }
  0x9c   : > { %v660_v29 = vrot.slane %v14317_v61, 4  ;;  %14478 = vst [vmem:[#allocation49_spill] sm:$0xff] %v12124_v38  ;;  %v663_v35 = vrot.slane %v14318_v31, 5  ;;  %v669_v26 = vrot.slane %v14319_v18, 5  ;;  %v14323_v40 = vshll.u32 %v12091_v54, 16 }
  0x9d   : > { %v646_v30 = vsel %vm11644_vm5, %v641_v8, %v645_v11  ;;  %v651_v17 = vrot.slane %v650_v0, 4  ;;  %v930_v32 = vsel %vm11443_vm2, %v928_v21, %v929_v47  ;;  %v12134_v11 = vld [vmem:[%s11427_s25 + $0xbc] sm:$0x3]  ;;  %v673_v61 = vrot.slane %v14322_v20, 4  ;;  %v12165_v54 = vld [vmem:[%s11427_s25 + $0xc4] sm:$0xf] }
  0x9e   : > { %14479 = vst [vmem:[#allocation50_spill] sm:$0xff] %v12134_v11  ;;  %v12138_v0 = vcombine.low %v927_v25, %v930_v32  ;;  %v8530_v47 = vrot.slane %v12116_v14, 9  ;;  %v664_v31 = vor.u32 %v663_v35, %v660_v29  ;;  %v679_v18 = vrot.slane %v14323_v40, 5 }
  0x9f   : > { %v656_v8 = vsel %vm11644_vm5, %v651_v17, %v655_v36  ;;  %v933_v22 = vrot.slane %v12124_v38, 5  ;;  %v674_v36 = vor.u32 %v673_v61, %v669_v26  ;;  %v936_v25 = vrot.slane %v12134_v11, 5 }
  0xa0   : > { %14480 = vst [vmem:[#allocation51_spill] sm:$0xff] %v12138_v0  ;;  %v12143_v21 = vcombine.low %v646_v30, %v656_v8  ;;  %9509 = vmatprep.mubr.bf16.mxu1 %v12138_v0  ;;  %v14328_v17 = vshrl.u32 %v12116_v14, 16  ;;  %v14331_v32 = vshll.u32 %v12116_v14, 16  ;;  %v665_v20 = vrot.slane %v664_v31, 4  ;;  %v12156_v8 = vld [vmem:[%s11427_s25 + $0xc0] sm:$0xf] }
  0xa1   : > { %v934_v29 = vsel %vm11443_vm2, %v8530_v47, %v933_v22  ;;  %v935_v30 = vrot.slane %v933_v22, 4  ;;  %v14336_v35 = vshll.u32 %v12124_v38, 16  ;;  %v675_v40 = vrot.slane %v674_v36, 4 }
  0xa2   : > { %14481 = vst [vmem:[#allocation52_spill] sm:$0xff] %v12143_v21  ;;  %9554 = vmatmul.mubr.bf16.gmra.mrb[24].mxu0 %v12055_v24  ;;  %v684_v61 = vrot.slane %v14328_v17, 4  ;;  %v687_v0 = vrot.slane %v14331_v32, 5  ;;  %v670_v22 = vsel %vm11644_vm5, %v665_v20, %v669_v26  ;;  %v14337_v17 = vshll.u32 %v12134_v11, 16  ;;  %v12176_v24 = vld [vmem:[%s11427_s25 + $0xc8] sm:$0x3] }
  0xa3   : > { %9557 = vmatprep.mubr.bf16.mxu0 %v12100_v13  ;;  %v937_v47 = vsel %vm11443_vm2, %v935_v30, %v936_v25  ;;  %v693_v36 = vrot.slane %v14336_v35, 5  ;;  %14482 = vst [vmem:[#allocation53_spill] sm:$0xff] %v12176_v24  ;;  %v680_v32 = vsel %vm11644_vm5, %v675_v40, %v679_v18  ;;  %v14484_v14 = vshrl.u32 %v12124_v38, 16  ;;  %v12206_v11 = vld [vmem:[%s11427_s25 + $0xd0] sm:$0xf] }
  0xa4   : > { %v12180_v31 = vcombine.low %v934_v29, %v937_v47  ;;  %v688_v13 = vor.u32 %v687_v0, %v684_v61  ;;  %v12184_v20 = vcombine.low %v670_v22, %v680_v32  ;;  %v703_v25 = vrot.slane %v14337_v17, 5  ;;  %v12198_v47 = vld [vmem:[%s11427_s25 + $0xcc] sm:$0xf] }
  0xa5   : > { %v697_v26 = vrot.slane %v14484_v14, 4  ;;  %v8531_v30 = vrot.slane %v12156_v8, 9  ;;  %v940_v35 = vrot.slane %v12165_v54, 5  ;;  %v943_v29 = vrot.slane %v12176_v24, 5  ;;  %14486 = vst [vmem:[#allocation56_spill] sm:$0xff] %v12198_v47 }
  0xa6   : > { %14483 = vst [vmem:[#allocation54_spill] sm:$0xff] %v12180_v31  ;;  %14485 = vst [vmem:[#allocation55_spill] sm:$0xff] %v12184_v20  ;;  %9510 = vmatmul.mubr.bf16.gmra.mrb[12].mxu1 %v12180_v31  ;;  %v689_v40 = vrot.slane %v688_v13, 4  ;;  %v14348_v0 = vshrl.u32 %v12156_v8, 16  ;;  %v14346_v61 = vshll.u32 %v12156_v8, 16  ;;  %v14347_v22 = vshll.u32 %v12165_v54, 16 }
  0xa7   : > { %v698_v18 = vor.u32 %v697_v26, %v693_v36  ;;  %v941_v14 = vsel %vm11443_vm2, %v8531_v30, %v940_v35  ;;  %v942_v32 = vrot.slane %v940_v35, 4  ;;  %v14351_v31 = vshrl.u32 %v12165_v54, 16 }
  0xa8   : > { %v694_v17 = vsel %vm11644_vm5, %v689_v40, %v693_v36  ;;  %v708_v26 = vrot.slane %v14348_v0, 4  ;;  %v711_v30 = vrot.slane %v14346_v61, 5  ;;  %v717_v38 = vrot.slane %v14347_v22, 5  ;;  %v12216_v36 = vld [vmem:[%s11427_s25 + $0xd4] sm:$0x3] }
  0xa9   : > { %v699_v13 = vrot.slane %v698_v18, 4  ;;  %v944_v35 = vsel %vm11443_vm2, %v942_v32, %v943_v29  ;;  %v14352_v23 = vshll.u32 %v12176_v24, 16  ;;  %v721_v29 = vrot.slane %v14351_v31, 4 }
  0xaa   : > { %9558 = vmatmul.mubr.bf16.gmra.mrb[28].mxu0 %v12143_v21  ;;  %v12221_v18 = vcombine.low %v941_v14, %v944_v35  ;;  %v8532_v32 = vrot.slane %v12198_v47, 9  ;;  %v712_v22 = vor.u32 %v711_v30, %v708_v26  ;;  %v947_v21 = vrot.slane %v12206_v11, 5 }
  0xab   : > { %v704_v40 = vsel %vm11644_vm5, %v699_v13, %v703_v25  ;;  %9561 = vmatprep.mubr.bf16.mxu0 %v12184_v20  ;;  %v727_v0 = vrot.slane %v14352_v23, 5  ;;  %v722_v25 = vor.u32 %v721_v29, %v717_v38  ;;  %v950_v14 = vrot.slane %v12216_v36, 5 }
  0xac   : > { %14487 = vst [vmem:[#allocation57_spill] sm:$0xff] %v12221_v18  ;;  %v12227_v61 = vcombine.low %v694_v17, %v704_v40  ;;  %9513 = vmatprep.mubr.bf16.mxu1 %v12221_v18  ;;  %v14357_v13 = vshrl.u32 %v12198_v47, 16  ;;  %v14360_v35 = vshll.u32 %v12198_v47, 16  ;;  %v713_v31 = vrot.slane %v712_v22, 4 }
  0xad   : > { %v948_v17 = vsel %vm11443_vm2, %v8532_v32, %v947_v21  ;;  %v949_v40 = vrot.slane %v947_v21, 4  ;;  %v14364_v26 = vshll.u32 %v12206_v11, 16  ;;  %v723_v30 = vrot.slane %v722_v25, 4 }
  0xae   : > { %v732_v23 = vrot.slane %v14357_v13, 4  ;;  %v735_v29 = vrot.slane %v14360_v35, 5  ;;  %v14365_v18 = vshrl.u32 %v12206_v11, 16  ;;  %v718_v20 = vsel %vm11644_vm5, %v713_v31, %v717_v38 }
  0xaf   : > { %v951_v22 = vsel %vm11443_vm2, %v949_v40, %v950_v14  ;;  %v741_v21 = vrot.slane %v14364_v26, 5  ;;  %v14363_v32 = vshll.u32 %v12216_v36, 16  ;;  %v728_v25 = vsel %vm11644_vm5, %v723_v30, %v727_v0  ;;  %v11005_v0 = vld [vmem:[#allocation3 + $0x40] sm:$0xff]  }
  0xb0   : > { %v12253_v13 = vcombine.low %v948_v17, %v951_v22  ;;  %v736_v47 = vor.u32 %v735_v29, %v732_v23  ;;  %v745_v35 = vrot.slane %v14365_v18, 4  ;;  %v12257_v24 = vcombine.low %v718_v20, %v728_v25  ;;  %9933 = vmatprep.subr.bf16.mxu1 %v11005_v0 }
  0xb1   : > { %v751_v38 = vrot.slane %v14363_v32, 5  ;;  %v14491_v23 = vshrl.u32 %v11433_v4, 16  ;;  %v14492_v20 = vshll.u32 %v11433_v4, 16  ;;  %v14493_v30 = vshrl.u32 %v11436_v5, 16  ;;  %9934 = vmatpush3.bf16.msra.mxu1 %v11005_v0 }
  0xb2   : > { %14488 = vst [vmem:[#allocation58_spill] sm:$0xff] %v12253_v13  ;;  %9562 = vmatmul.mubr.bf16.gmra.mrb[32].mxu0 %v12227_v61  ;;  %9514 = vmatmul.mubr.bf16.gmra.mrb[16].mxu1 %v12253_v13  ;;  %v737_v31 = vrot.slane %v736_v47, 4  ;;  %v746_v14 = vor.u32 %v745_v35, %v741_v21  ;;  %v14494_v22 = vshll.u32 %v11436_v5, 16  ;;  %v14495_v47 = vshll.u32 %v11439_v6, 16 }
  0xb3   : > { %v1566_v17 = vrot.slane %v14491_v23, 5  ;;  %v1567_v40 = vrot.slane %v14492_v20, 6  ;;  %9565 = vmatprep.mubr.bf16.mxu0 %v12257_v24  ;;  %v1570_v29 = vrot.slane %v14493_v30, 5  ;;  %v14496_v32 = vor.u32 %v11492_v39, %v11489_v37 }
  0xb4   : > { %v1571_v25 = vrot.slane %v14494_v22, 6  ;;  %v1578_v35 = vrot.slane %v14495_v47, 6  ;;  %v742_v23 = vsel %vm11644_vm5, %v737_v31, %v741_v21  ;;  %v747_v4 = vrot.slane %v746_v14, 4 }
  0xb5   : > { %v1584_v26 = vrot.slane %v14496_v32, 4  ;;  %v1568_v20 = vor.u32 %v1567_v40, %v1566_v17  ;;  %v1589_v18 = vrot.slane %v11533_v63, 4  ;;  %v14497_v6 = vshrl.u32 %v11496_v42, 16 }
  0xb6   : > { %v1572_v13 = vor.u32 %v1571_v25, %v1570_v29  ;;  %v1579_v30 = vor.u32 %v1578_v35, %v11472_v27  ;;  %v752_v37 = vsel %vm11644_vm5, %v747_v4, %v751_v38  ;;  %v14498_v21 = vor.u32 %v11500_v44, %v11512_v50 }
  0xb7   : > { %v1588_v5 = vsel %vm12263_vm8, %v1584_v26, %v11533_v63  ;;  %v1596_v22 = vrot.slane %v14497_v6, 5  ;;  %v1569_v39 = vrot.slane %v1568_v20, 4  ;;  %v14499_v31 = vshll.u32 %v11496_v42, 16 }
  0xb8   : > { %v1595_v32 = vsel %vm12263_vm8, %v1589_v18, %v14498_v21  ;;  %v12299_v14 = vcombine.low %v742_v23, %v752_v37  ;;  %v1574_v17 = vrot.slane %v1572_v13, 4  ;;  %v14500_v26 = vshrl.u32 %v11503_v45, 16  ;;  %v11095_v18 = vld [vmem:[%s11427_s25 + $0x20] sm:$0x3] }
  0xb9   : > { %v1597_v27 = vrot.slane %v14499_v31, 6  ;;  %v12301_v63 = vcombine.low %v1588_v5, %v1595_v32  ;;  %v1573_v38 = vsel %vm12263_vm8, %v1569_v39, %v1572_v13  ;;  %v14501_v44 = vshll.u32 %v11503_v45, 16  ;;  %v11096_v32 = vld [vmem:[%s11427_s25 + $0x2c] sm:$0x3] }
  0xba   : > { %v1600_v40 = vrot.slane %v14500_v26, 5  ;;  %v1605_v25 = vshrl.u32 %v11095_v18, 16  ;;  %v1580_v42 = vsel %vm12263_vm8, %v1574_v17, %v1579_v30  ;;  %v14502_v47 = vshll.u32 %v11506_v46, 16  ;;  %9566 = vmatmul.mubr.bf16.gmra.mrb[36].mxu0 %v12299_v14 }
  0xbb   : > { %v1598_v29 = vor.u32 %v1597_v27, %v1596_v22  ;;  %v1601_v50 = vrot.slane %v14501_v44, 6  ;;  %v14503_v23 = vshrl.u32 %v11516_v52, 16  ;;  %v14504_v20 = vshll.u32 %v11516_v52, 16 }
  0xbc   : > { %v1608_v35 = vrot.slane %v14502_v47, 6  ;;  %v8617_v13 = vcombine.low %v1573_v38, %v1580_v42  ;;  %v1607_v22 = vrot.slane %v1605_v25, 5  ;;  %v14505_v39 = vshrl.u32 %v11521_v55, 16 }
  0xbd   : > { %v1611_v4 = vrot.slane %v14503_v23, 5  ;;  %v1612_v5 = vrot.slane %v14504_v20, 6  ;;  %v1599_v45 = vrot.slane %v1598_v29, 4  ;;  %v1602_v6 = vor.u32 %v1601_v50, %v1600_v40 }
  0xbe   : > { %v1615_v21 = vrot.slane %v14505_v39, 5  ;;  %v14506_v30 = vshll.u32 %v11521_v55, 16  ;;  %v1620_v31 = vshrl.u32 %v11096_v32, 16  ;;  %9585 = vmatprep.mubr.bf16.mxu0 %v8617_v13  ;;  %v1609_v17 = vor.u32 %v1608_v35, %v1607_v22  ;;  %v11097_v22 = vld [vmem:[%s11427_s25 + $0x38] sm:$0x3] }
  0xbf   : > { %v1613_v37 = vor.u32 %v1612_v5, %v1611_v4  ;;  %v1603_v52 = vsel %vm12263_vm8, %v1599_v45, %v1602_v6  ;;  %v1604_v27 = vrot.slane %v1602_v6, 4  ;;  %v14507_v26 = vshll.u32 %v11524_v56, 16  ;;  %v10958_v45 = vld [vmem:[%s14193_s1 + $0xc8] sm:$0xff]  }
  0xc0   : > { %v1616_v46 = vrot.slane %v14506_v30, 6  ;;  %v1622_v44 = vrot.slane %v1620_v31, 5  ;;  %v14508_v50 = vshrl.u32 %v11539_v1, 16  ;;  %v14509_v25 = vshll.u32 %v11539_v1, 16 }
  0xc1   : > { %v1623_v38 = vrot.slane %v14507_v26, 6  ;;  %v1614_v40 = vrot.slane %v1613_v37, 4  ;;  %v1610_v55 = vsel %vm12263_vm8, %v1604_v27, %v1609_v17  ;;  %v14510_v47 = vshrl.u32 %v11542_v2, 16 }
  0xc2   : > { %v1617_v29 = vor.u32 %v1616_v46, %v1615_v21  ;;  %v1626_v18 = vrot.slane %v14508_v50, 5  ;;  %v1627_v42 = vrot.slane %v14509_v25, 6  ;;  %v14511_v35 = vshll.u32 %v11542_v2, 16  ;;  %9586 = vmatmul.mubr.bf16.vlgmr.msra.gmra.mrb[40].mxu0 %v12301_v63  ;;  %v10959_v25 = vld [vmem:[%s14193_s1 + $0xd0] sm:$0xff]  }
  0xc3   : > { %v1630_v23 = vrot.slane %v14510_v47, 5  ;;  %v12338_v4 = vcombine.low %v1603_v52, %v1610_v55  ;;  %v1624_v13 = vor.u32 %v1623_v38, %v1622_v44  ;;  %v1635_v37 = vshrl.u32 %v11097_v22, 16  ;;  %9622 = vmatpush3.bf16.msra.mxu0 %v12067_v34 }
  0xc4   : > { %v1631_v56 = vrot.slane %v14511_v35, 6  ;;  %v1618_v20 = vsel %vm12263_vm8, %v1614_v40, %v1617_v29  ;;  %v1619_v5 = vrot.slane %v1617_v29, 4  ;;  %v1628_v6 = vor.u32 %v1627_v42, %v1626_v18  ;;  %9623 = vmatprep.subr.bf16.mxu0 %v10958_v45 }
  0xc5   : > { %v14512_v39 = vshll.u32 %v11545_v3, 16  ;;  %v14513_v30 = vshrl.u32 %v11553_v15, 16  ;;  %v14514_v32 = vshll.u32 %v11553_v15, 16  ;;  %v14515_v52 = vshrl.u32 %v11556_v16, 16  ;;  %9589 = vmatprep.mubr.bf16.mxu0 %v12338_v4  ;;  %v11098_v15 = vld [vmem:[%s11427_s25 + $0x44] sm:$0x3] }
  0xc6   : > { %v1632_v1 = vor.u32 %v1631_v56, %v1630_v23  ;;  %v1625_v21 = vsel %vm12263_vm8, %v1619_v5, %v1624_v13  ;;  %v1629_v26 = vrot.slane %v1628_v6, 4  ;;  %v1637_v3 = vrot.slane %v1635_v37, 5 }
  0xc7   : > { %v1638_v2 = vrot.slane %v14512_v39, 6  ;;  %v1641_v46 = vrot.slane %v14513_v30, 5  ;;  %v1642_v31 = vrot.slane %v14514_v32, 6  ;;  %v1645_v27 = vrot.slane %v14515_v52, 5  ;;  %v11099_v39 = vld [vmem:[%s11427_s25 + $0x50] sm:$0x3]  ;;  %9624 = vmatpush3.bf16.msra.mxu0 %v10958_v45 }
  0xc8   : > { %v12357_v17 = vcombine.low %v1618_v20, %v1625_v21  ;;  %v1634_v38 = vrot.slane %v1632_v1, 4  ;;  %v14516_v29 = vshll.u32 %v11556_v16, 16  ;;  %v1650_v50 = vshrl.u32 %v11098_v15, 16  ;;  %9625 = vmatprep.subr.bf16.mxu0 %v10959_v25 }
  0xc9   : > { %v1643_v40 = vor.u32 %v1642_v31, %v1641_v46  ;;  %v14517_v18 = vshll.u32 %v11561_v19, 16  ;;  %v1633_v34 = vsel %vm12263_vm8, %v1629_v26, %v1632_v1  ;;  %v1639_v42 = vor.u32 %v1638_v2, %v1637_v3 }
  0xca   : > { %v1646_v44 = vrot.slane %v14516_v29, 6  ;;  %v14518_v47 = vshrl.u32 %v11590_v41, 16  ;;  %v14519_v16 = vshll.u32 %v11590_v41, 16  ;;  %v1652_v5 = vrot.slane %v1650_v50, 5  ;;  %9590 = vmatmul.mubr.bf16.gmra.mrb[4].mxu0 %v12357_v17 }
  0xcb   : > { %v1653_v55 = vrot.slane %v14517_v18, 6  ;;  %v1644_v56 = vrot.slane %v1643_v40, 4  ;;  %v14520_v19 = vshrl.u32 %v11593_v43, 16  ;;  %v1640_v6 = vsel %vm12263_vm8, %v1634_v38, %v1639_v42  ;;  %9626 = vmatpush3.bf16.msra.mxu0 %v10959_v25  ;;  %v11100_v42 = vld [vmem:[%s11427_s25 + $0x5c] sm:$0x3] }
  0xcc   : > { %v1656_v23 = vrot.slane %v14518_v47, 5  ;;  %v1657_v35 = vrot.slane %v14519_v16, 6  ;;  %v1647_v20 = vor.u32 %v1646_v44, %v1645_v27  ;;  %v14521_v37 = vshll.u32 %v11593_v43, 16  ;;  %v10960_v43 = vld [vmem:[%s14193_s1 + $0xd8] sm:$0xff]  }
  0xcd   : > { %v1660_v13 = vrot.slane %v14520_v19, 5  ;;  %v1665_v2 = vshrl.u32 %v11099_v39, 16  ;;  %v12382_v21 = vcombine.low %v1633_v34, %v1640_v6  ;;  %v1654_v30 = vor.u32 %v1653_v55, %v1652_v5  ;;  %9627 = vmatprep.subr.bf16.mxu0 %v10960_v43 }
  0xce   : > { %v1658_v22 = vor.u32 %v1657_v35, %v1656_v23  ;;  %v1661_v1 = vrot.slane %v14521_v37, 6  ;;  %v1649_v41 = vrot.slane %v1647_v20, 4  ;;  %v14522_v52 = vshll.u32 %v11600_v51, 16 }
  0xcf   : > { %v1667_v31 = vrot.slane %v1665_v2, 5  ;;  %v1648_v26 = vsel %vm12263_vm8, %v1644_v56, %v1647_v20  ;;  %v14523_v45 = vshrl.u32 %v11605_v59, 16  ;;  %v14524_v3 = vshll.u32 %v11605_v59, 16  ;;  %9593 = vmatprep.mubr.bf16.mxu0 %v12382_v21  ;;  %9628 = vmatpush3.bf16.msra.mxu0 %v10960_v43 }
  0xd0   : > { %v1659_v46 = vrot.slane %v1658_v22, 4  ;;  %v1662_v32 = vor.u32 %v1661_v1, %v1660_v13  ;;  %v1668_v27 = vrot.slane %v14522_v52, 6  ;;  %v14525_v29 = vshrl.u32 %v11613_v62, 16  ;;  %v10961_v13 = vld [vmem:[%s14193_s1 + $0xe0] sm:$0xff]  }
  0xd1   : > { %v1671_v38 = vrot.slane %v14523_v45, 5  ;;  %v1672_v40 = vrot.slane %v14524_v3, 6  ;;  %v1655_v51 = vsel %vm12263_vm8, %v1649_v41, %v1654_v30  ;;  %v14526_v59 = vshll.u32 %v11613_v62, 16  ;;  %v11101_v41 = vld [vmem:[%s11427_s25 + $0x68] sm:$0x3]  ;;  %9629 = vmatprep.subr.bf16.mxu0 %v10961_v13 }
  0xd2   : > { %v1675_v44 = vrot.slane %v14525_v29, 5  ;;  %v1663_v15 = vsel %vm12263_vm8, %v1659_v46, %v1662_v32  ;;  %v1664_v50 = vrot.slane %v1662_v32, 4  ;;  %v1669_v18 = vor.u32 %v1668_v27, %v1667_v31 }
  0xd3   : > { %v1673_v55 = vor.u32 %v1672_v40, %v1671_v38  ;;  %v1676_v34 = vrot.slane %v14526_v59, 6  ;;  %v1680_v47 = vshrl.u32 %v11100_v42, 16  ;;  %v14527_v23 = vshll.u32 %v11616_v10, 16  ;;  %9630 = vmatpush3.bf16.msra.mxu0 %v10961_v13 }
  0xd4   : > { %v1670_v35 = vsel %vm12263_vm8, %v1664_v50, %v1669_v18  ;;  %v14528_v56 = vshrl.u32 %v11803_v57, 16  ;;  %v14529_v5 = vshll.u32 %v11803_v57, 16  ;;  %v14530_v19 = vshrl.u32 %v11812_v12, 16  ;;  %v11102_v50 = vld [vmem:[%s11427_s25 + $0x74] sm:$0x3] }
  0xd5   : > { %v1683_v16 = vrot.slane %v14527_v23, 6  ;;  %v12419_v6 = vcombine.low %v1648_v26, %v1655_v51  ;;  %v1674_v10 = vrot.slane %v1673_v55, 4  ;;  %v1677_v22 = vor.u32 %v1676_v34, %v1675_v44 }
  0xd6   : > { %v1686_v20 = vrot.slane %v14528_v56, 5  ;;  %v1687_v25 = vrot.slane %v14529_v5, 6  ;;  %v1690_v62 = vrot.slane %v14530_v19, 5  ;;  %v1682_v37 = vrot.slane %v1680_v47, 5  ;;  %v14538_v56 = vld [vmem:[#allocation26_spill] sm:$0xff] }
  0xd7   : > { %v14531_v39 = vshll.u32 %v11812_v12, 16  ;;  %v1695_v30 = vshrl.u32 %v11101_v41, 16  ;;  %v14532_v57 = vshll.u32 %v11822_v49, 16  ;;  %v12426_v32 = vcombine.low %v1663_v15, %v1670_v35  ;;  %v10962_v49 = vld [vmem:[%s14193_s1 + $0xe8] sm:$0xff]   ;;  %9594 = vmatmul.mubr.bf16.gmra.mrb[8].mxu0 %v12419_v6 }
  0xd8   : > { %v1688_v1 = vor.u32 %v1687_v25, %v1686_v20  ;;  %v1679_v31 = vrot.slane %v1677_v22, 4  ;;  %v1684_v52 = vor.u32 %v1683_v16, %v1682_v37  ;;  %v14533_v27 = vshrl.u32 %v11846_v53, 16  ;;  %9631 = vmatprep.subr.bf16.mxu0 %v10962_v49  ;;  %v10963_v37 = vld [vmem:[%s14193_s1 + $0xf0] sm:$0xff]  }
  0xd9   : > { %v1691_v2 = vrot.slane %v14531_v39, 6  ;;  %v1698_v46 = vrot.slane %v14532_v57, 6  ;;  %v1697_v3 = vrot.slane %v1695_v30, 5  ;;  %v14534_v12 = vshll.u32 %v11846_v53, 16  ;;  %9597 = vmatprep.mubr.bf16.mxu0 %v12426_v32  ;;  %v11103_v57 = vld [vmem:[%s11427_s25 + $0x80] sm:$0x3]  ;;  %9632 = vmatpush3.bf16.msra.mxu0 %v10962_v49 }
  0xda   : > { %v1701_v26 = vrot.slane %v14533_v27, 5  ;;  %v1689_v45 = vrot.slane %v1688_v1, 4  ;;  %v1678_v29 = vsel %vm12263_vm8, %v1674_v10, %v1677_v22  ;;  %v14535_v44 = vshrl.u32 %v11857_v58, 16  ;;  %9633 = vmatprep.subr.bf16.mxu0 %v10963_v37 }
  0xdb   : > { %v1692_v38 = vor.u32 %v1691_v2, %v1690_v62  ;;  %v1702_v40 = vrot.slane %v14534_v12, 6  ;;  %v14536_v51 = vshll.u32 %v11857_v58, 16  ;;  %v1710_v18 = vshrl.u32 %v11102_v50, 16  ;;  %v14541_v62 = vld [vmem:[#allocation27_spill] sm:$0xff] }
  0xdc   : > { %v1705_v43 = vrot.slane %v14535_v44, 5  ;;  %v1685_v53 = vsel %vm12263_vm8, %v1679_v31, %v1684_v52  ;;  %v1699_v34 = vor.u32 %v1698_v46, %v1697_v3  ;;  %v14537_v58 = vshll.u32 %v11860_v7, 16  ;;  %v14544_v31 = vld [vmem:[#allocation28_spill] sm:$0xff]  ;;  %v14546_v3 = vld [vmem:[#allocation31_spill] sm:$0xff] }
  0xdd   : > { %v1706_v15 = vrot.slane %v14536_v51, 6  ;;  %v1693_v55 = vsel %vm12263_vm8, %v1689_v45, %v1692_v38  ;;  %v1694_v59 = vrot.slane %v1692_v38, 4  ;;  %v1703_v42 = vor.u32 %v1702_v40, %v1701_v26  ;;  %v10964_v26 = vld [vmem:[%s14193_s1 + $0xf8] sm:$0xff]   ;;  %9634 = vmatpush3.bf16.msra.mxu0 %v10963_v37 }
  0xde   : > { %v1712_v23 = vrot.slane %v1710_v18, 5  ;;  %v1713_v16 = vrot.slane %v14537_v58, 6  ;;  %v14539_v20 = vshrl.u32 %v14538_v56, 16  ;;  %v14540_v25 = vshll.u32 %v14538_v56, 16  ;;  %9635 = vmatprep.subr.bf16.mxu0 %v10964_v26 }
  0xdf   : > { %v1707_v47 = vor.u32 %v1706_v15, %v1705_v43  ;;  %v1700_v35 = vsel %vm12263_vm8, %v1694_v59, %v1699_v34  ;;  %v14542_v10 = vshrl.u32 %v14541_v62, 16  ;;  %v12461_v7 = vcombine.low %v1678_v29, %v1685_v53  ;;  %v14549_v53 = vld [vmem:[#allocation32_spill] sm:$0xff] }
  0xe0   : > { %v1716_v5 = vrot.slane %v14539_v20, 5  ;;  %v1717_v19 = vrot.slane %v14540_v25, 6  ;;  %v1704_v13 = vrot.slane %v1703_v42, 4  ;;  %v1714_v39 = vor.u32 %v1713_v16, %v1712_v23 }
  0xe1   : > { %v1720_v22 = vrot.slane %v14542_v10, 5  ;;  %v1709_v1 = vrot.slane %v1707_v47, 4  ;;  %v14543_v41 = vshll.u32 %v14541_v62, 16  ;;  %v1725_v46 = vshrl.u32 %v11103_v57, 16  ;;  %9598 = vmatmul.mubr.bf16.gmra.mrb[12].mxu0 %v12461_v7 }
  0xe2   : > { %v1718_v2 = vor.u32 %v1717_v19, %v1716_v5  ;;  %v14545_v52 = vshll.u32 %v14544_v31, 16  ;;  %v12471_v45 = vcombine.low %v1693_v55, %v1700_v35  ;;  %v1708_v38 = vsel %vm12263_vm8, %v1704_v13, %v1707_v47  ;;  %v11104_v47 = vld [vmem:[%s11427_s25 + $0x8c] sm:$0x3]  ;;  %v14552_v35 = vld [vmem:[#allocation33_spill] sm:$0xff]  ;;  %9636 = vmatpush3.bf16.msra.mxu0 %v10964_v26 }
  0xe3   : > { %v1721_v30 = vrot.slane %v14543_v41, 6  ;;  %v14547_v12 = vshrl.u32 %v14546_v3, 16  ;;  %v14548_v29 = vshll.u32 %v14546_v3, 16  ;;  %v1715_v43 = vsel %vm12263_vm8, %v1709_v1, %v1714_v39  ;;  %v14556_v39 = vld [vmem:[#allocation36_spill] sm:$0xff] }
  0xe4   : > { %v1728_v27 = vrot.slane %v14545_v52, 6  ;;  %v1719_v51 = vrot.slane %v1718_v2, 4  ;;  %v1727_v50 = vrot.slane %v1725_v46, 5  ;;  %v14550_v55 = vshrl.u32 %v14549_v53, 16  ;;  %9601 = vmatprep.mubr.bf16.mxu0 %v12471_v45  ;;  %v12505_v46 = vld [vmem:[%s14193_s1 + $0x100] sm:$0xff]  }
  0xe5   : > { %v1731_v40 = vrot.slane %v14547_v12, 5  ;;  %v1732_v44 = vrot.slane %v14548_v29, 6  ;;  %v1722_v15 = vor.u32 %v1721_v30, %v1720_v22  ;;  %v14551_v34 = vshll.u32 %v14549_v53, 16  ;;  %v11105_v12 = vld [vmem:[%s11427_s25 + $0x98] sm:$0x3]  ;;  %9673 = vmatprep.subr.bf16.mxu0 %v12505_v46 }
  0xe6   : > { %v1735_v59 = vrot.slane %v14550_v55, 5  ;;  %v1740_v23 = vshrl.u32 %v11104_v47, 16  ;;  %v1729_v16 = vor.u32 %v1728_v27, %v1727_v50  ;;  %v14553_v56 = vshll.u32 %v14552_v35, 16  ;;  %v14559_v29 = vld [vmem:[#allocation37_spill] sm:$0xff]  ;;  %v14561_v50 = vld [vmem:[#allocation40_spill] sm:$0xff] }
  0xe7   : > { %v1733_v18 = vor.u32 %v1732_v44, %v1731_v40  ;;  %v1736_v42 = vrot.slane %v14551_v34, 6  ;;  %v1723_v49 = vsel %vm12263_vm8, %v1719_v51, %v1722_v15  ;;  %v1724_v58 = vrot.slane %v1722_v15, 4 }
  0xe8   : > { %v1743_v20 = vrot.slane %v14553_v56, 6  ;;  %v1742_v19 = vrot.slane %v1740_v23, 5  ;;  %v14554_v62 = vshrl.u32 %v11978_v33, 16  ;;  %v14555_v13 = vshll.u32 %v11978_v33, 16 }
  0xe9   : > { %v1734_v5 = vrot.slane %v1733_v18, 4  ;;  %v1737_v25 = vor.u32 %v1736_v42, %v1735_v59  ;;  %v1730_v22 = vsel %vm12263_vm8, %v1724_v58, %v1729_v16  ;;  %v14557_v2 = vshrl.u32 %v14556_v39, 16 }
  0xea   : > { %v1746_v10 = vrot.slane %v14554_v62, 5  ;;  %v1747_v1 = vrot.slane %v14555_v13, 6  ;;  %v14558_v30 = vshll.u32 %v14556_v39, 16  ;;  %v12507_v31 = vcombine.low %v1708_v38, %v1715_v43  ;;  %v14570_v39 = vld [vmem:[#allocation44_spill] sm:$0xff] }
  0xeb   : > { %v1750_v41 = vrot.slane %v14557_v2, 5  ;;  %v12509_v37 = vcombine.low %v1723_v49, %v1730_v22  ;;  %v1739_v52 = vrot.slane %v1737_v25, 4  ;;  %v1744_v27 = vor.u32 %v1743_v20, %v1742_v19 }
  0xec   : > { %v1751_v57 = vrot.slane %v14558_v30, 6  ;;  %v1748_v33 = vor.u32 %v1747_v1, %v1746_v10  ;;  %v1755_v40 = vshrl.u32 %v11105_v12, 16  ;;  %v14560_v44 = vshll.u32 %v14559_v29, 16  ;;  %9602 = vmatmul.mubr.bf16.gmra.mrb[20].mxu0 %v12507_v31 }
  0xed   : > { %v1738_v15 = vsel %vm12263_vm8, %v1734_v5, %v1737_v25  ;;  %v14562_v18 = vshrl.u32 %v14561_v50, 16  ;;  %v14563_v38 = vshll.u32 %v14561_v50, 16  ;;  %v14564_v55 = vshrl.u32 %v12031_v28, 16  ;;  %v14567_v25 = vld [vmem:[#allocation43_spill] sm:$0xff]  ;;  %9605 = vmatprep.mubr.bf16.mxu0 %v12509_v37 }
  0xee   : > { %v1752_v3 = vor.u32 %v1751_v57, %v1750_v41  ;;  %v1758_v51 = vrot.slane %v14560_v44, 6  ;;  %v1745_v34 = vsel %vm12263_vm8, %v1739_v52, %v1744_v27  ;;  %v1749_v42 = vrot.slane %v1748_v33, 4  ;;  %v14573_v27 = vld [vmem:[#allocation45_spill] sm:$0xff] }
  0xef   : > { %v1761_v53 = vrot.slane %v14562_v18, 5  ;;  %v1762_v43 = vrot.slane %v14563_v38, 6  ;;  %v1765_v59 = vrot.slane %v14564_v55, 5  ;;  %v1757_v23 = vrot.slane %v1755_v40, 5  ;;  %v14576_v38 = vld [vmem:[#allocation48_spill] sm:$0xff] }
  0xf0   : > { %v1754_v47 = vrot.slane %v1752_v3, 4  ;;  %v14565_v58 = vshll.u32 %v12031_v28, 16  ;;  %v1770_v35 = vshrl.u32 %v12051_v60, 16  ;;  %v14566_v56 = vshll.u32 %v12051_v60, 16 }
  0xf1   : > { %v1763_v49 = vor.u32 %v1762_v43, %v1761_v53  ;;  %v1753_v26 = vsel %vm12263_vm8, %v1749_v42, %v1752_v3  ;;  %v1759_v5 = vor.u32 %v1758_v51, %v1757_v23  ;;  %v14568_v19 = vshrl.u32 %v14567_v25, 16 }
  0xf2   : > { %v1766_v16 = vrot.slane %v14565_v58, 6  ;;  %v1773_v20 = vrot.slane %v14566_v56, 6  ;;  %v14569_v10 = vshll.u32 %v14567_v25, 16  ;;  %v1772_v1 = vrot.slane %v1770_v35, 5 }
  0xf3   : > { %v1776_v62 = vrot.slane %v14568_v19, 5  ;;  %v1764_v28 = vrot.slane %v1763_v49, 4  ;;  %v14571_v60 = vshrl.u32 %v14570_v39, 16  ;;  %v1760_v41 = vsel %vm12263_vm8, %v1754_v47, %v1759_v5  ;;  %v14579_v47 = vld [vmem:[#allocation49_spill] sm:$0xff]  ;;  %v14582_v5 = vld [vmem:[#allocation50_spill] sm:$0xff] }
  0xf4   : > { %v1777_v22 = vrot.slane %v14569_v10, 6  ;;  %v1767_v13 = vor.u32 %v1766_v16, %v1765_v59  ;;  %v14572_v57 = vshll.u32 %v14570_v39, 16  ;;  %v1785_v33 = vshrl.u32 %v14573_v27, 16 }
  0xf5   : > { %v1780_v2 = vrot.slane %v14571_v60, 5  ;;  %v12545_v3 = vcombine.low %v1738_v15, %v1745_v34  ;;  %v1774_v40 = vor.u32 %v1773_v20, %v1772_v1  ;;  %v14574_v50 = vshll.u32 %v14573_v27, 16  ;;  %v14588_v27 = vld [vmem:[#allocation53_spill] sm:$0xff] }
  0xf6   : > { %v1778_v30 = vor.u32 %v1777_v22, %v1776_v62  ;;  %v1781_v52 = vrot.slane %v14572_v57, 6  ;;  %v1769_v12 = vrot.slane %v1767_v13, 4  ;;  %v1787_v51 = vrot.slane %v1785_v33, 5 }
  0xf7   : > { %v1788_v18 = vrot.slane %v14574_v50, 6  ;;  %v12549_v53 = vcombine.low %v1753_v26, %v1760_v41  ;;  %v14577_v43 = vshrl.u32 %v14576_v38, 16  ;;  %v14578_v59 = vshll.u32 %v14576_v38, 16  ;;  %9606 = vmatmul.mubr.bf16.gmra.mrb[24].mxu0 %v12545_v3 }
  0xf8   : > { %v1779_v29 = vrot.slane %v1778_v30, 4  ;;  %v1782_v44 = vor.u32 %v1781_v52, %v1780_v2  ;;  %v14580_v23 = vshrl.u32 %v14579_v47, 16  ;;  %v1768_v34 = vsel %vm12263_vm8, %v1764_v28, %v1767_v13 }
  0xf9   : > { %14575 = vst [vmem:[#allocation26_spill] sm:$0xff] %v12549_v53  ;;  %v1791_v55 = vrot.slane %v14577_v43, 5  ;;  %v1792_v42 = vrot.slane %v14578_v59, 6  ;;  %v1775_v49 = vsel %vm12263_vm8, %v1769_v12, %v1774_v40  ;;  %v1789_v16 = vor.u32 %v1788_v18, %v1787_v51  ;;  %9609 = vmatprep.mubr.bf16.mxu0 %v12549_v53  ;;  %v14591_v51 = vld [vmem:[#allocation56_spill] sm:$0xff] }
  0xfa   : > { %v1795_v15 = vrot.slane %v14580_v23, 5  ;;  %v1784_v58 = vrot.slane %v1782_v44, 4  ;;  %v1783_v35 = vsel %vm12263_vm8, %v1779_v29, %v1782_v44  ;;  %v14581_v20 = vshll.u32 %v14579_v47, 16 }
  0xfb   : > { %v1793_v56 = vor.u32 %v1792_v42, %v1791_v55  ;;  %v1800_v25 = vshrl.u32 %v14582_v5, 16  ;;  %v14583_v62 = vshrl.u32 %v12156_v8, 16  ;;  %v14584_v22 = vshll.u32 %v12156_v8, 16 }
  0xfc   : > { %v1796_v26 = vrot.slane %v14581_v20, 6  ;;  %v1790_v19 = vsel %vm12263_vm8, %v1784_v58, %v1789_v16  ;;  %v14585_v13 = vshrl.u32 %v12165_v54, 16  ;;  %v14586_v2 = vshll.u32 %v14582_v5, 16 }
  0xfd   : > { %v1806_v10 = vrot.slane %v14583_v62, 5  ;;  %v1807_v28 = vrot.slane %v14584_v22, 6  ;;  %v1802_v60 = vrot.slane %v1800_v25, 5  ;;  %v14587_v57 = vshll.u32 %v12165_v54, 16 }
  0xfe   : > { %v1810_v1 = vrot.slane %v14585_v13, 5  ;;  %v1797_v39 = vor.u32 %v1796_v26, %v1795_v15  ;;  %v1803_v41 = vrot.slane %v14586_v2, 6  ;;  %v1815_v33 = vshrl.u32 %v14588_v27, 16 }
  0xff   : > { %v1808_v30 = vor.u32 %v1807_v28, %v1806_v10  ;;  %v1811_v52 = vrot.slane %v14587_v57, 6  ;;  %v14589_v12 = vshll.u32 %v14588_v27, 16  ;;  %v12583_v40 = vcombine.low %v1768_v34, %v1775_v49  ;;  %v12626_v57 = vld [vmem:[%s11427_s25 + $0xdc] sm:$0xf]  ;;  %v12630_v27 = vld [vmem:[%s11427_s25 + $0xd8] sm:$0xf] }
 0x100   : > { %v12585_v29 = vcombine.low %v1783_v35, %v1790_v19  ;;  %v1794_v44 = vrot.slane %v1793_v56, 4  ;;  %v14592_v50 = vshrl.u32 %v14591_v51, 16  ;;  %v1799_v38 = vrot.slane %v1797_v39, 4 }
 0x101   : > { %v1818_v8 = vrot.slane %v14589_v12, 6  ;;  %14590 = vst [vmem:[#allocation27_spill] sm:$0xff] %v12583_v40  ;;  %v1812_v43 = vor.u32 %v1811_v52, %v1810_v1  ;;  %v1817_v55 = vrot.slane %v1815_v33, 5  ;;  %v14593_v59 = vshll.u32 %v14591_v51, 16  ;;  %9610 = vmatmul.mubr.bf16.gmra.mrb[28].mxu0 %v12583_v40  ;;  %v14598_v52 = vld [vmem:[#allocation19_spill] sm:$0xff]  ;;  %v14599_v12 = vld [vmem:[#allocation20_spill] sm:$0xff] }
 0x102   : > { %v1821_v18 = vrot.slane %v14592_v50, 5  ;;  %v1804_v42 = vor.u32 %v1803_v41, %v1802_v60  ;;  %v14594_v47 = vshrl.u32 %v12206_v11, 16  ;;  %v14595_v15 = vshll.u32 %v12206_v11, 16  ;;  %9613 = vmatprep.mubr.bf16.mxu0 %v12585_v29  ;;  %v14597_v41 = vld [vmem:[#allocation18_spill] sm:$0xff] }
 0x103   : > { %v1822_v54 = vrot.slane %v14593_v59, 6  ;;  %v1830_v49 = vshrl.u32 %v12216_v36, 16  ;;  %v1809_v58 = vrot.slane %v1808_v30, 4  ;;  %v1814_v16 = vrot.slane %v1812_v43, 4  ;;  %v10966_v30 = vld [vmem:[%s14193_s1 + $0x108] sm:$0xff]   ;;  %v14600_v59 = vld [vmem:[#allocation21_spill] sm:$0xff] }
 0x104   : > { %v1825_v23 = vrot.slane %v14594_v47, 5  ;;  %v1826_v34 = vrot.slane %v14595_v15, 6  ;;  %v1819_v35 = vor.u32 %v1818_v8, %v1817_v55  ;;  %v14596_v5 = vshll.u32 %v12216_v36, 16  ;;  %v12633_v33 = vld [vmem:[%s11427_s25 + $0xe0] sm:$0x3]  ;;  %v10967_v8 = vld [vmem:[%s14193_s1 + $0x110] sm:$0xff]  }
 0x105   : > { %v1823_v56 = vor.u32 %v1822_v54, %v1821_v18  ;;  %v1832_v26 = vrot.slane %v1830_v49, 5  ;;  %v1798_v19 = vsel %vm12263_vm8, %v1794_v44, %v1797_v39  ;;  %v1805_v11 = vsel %vm12263_vm8, %v1799_v38, %v1804_v42  ;;  %v10968_v38 = vld [vmem:[%s14193_s1 + $0x118] sm:$0xff]   ;;  %v14601_v54 = vld [vmem:[#allocation22_spill] sm:$0xff]  ;;  %v10970_v47 = vld [vmem:[%s14193_s1 + $0x128] sm:$0xff]  }
 0x106   : > { %v1827_v20 = vor.u32 %v1826_v34, %v1825_v23  ;;  %v1833_v25 = vrot.slane %v14596_v5, 6  ;;  %v1813_v36 = vsel %vm12263_vm8, %v1809_v58, %v1812_v43  ;;  %v1820_v28 = vsel %vm12263_vm8, %v1814_v16, %v1819_v35  ;;  %v10969_v42 = vld [vmem:[%s14193_s1 + $0x120] sm:$0xff]   ;;  %v14602_v23 = vld [vmem:[#allocation23_spill] sm:$0xff]  ;;  %v14603_v15 = vld [vmem:[#allocation25_spill] sm:$0xff] }
 0x107   : > { %v1824_v62 = vrot.slane %v1823_v56, 4  ;;  %v12612_v39 = vcombine.low %v1798_v19, %v1805_v11  ;;  %v12616_v2 = vcombine.low %v1813_v36, %v1820_v28  ;;  %v2497_v44 = vrot.slane %v12626_v57, 5  ;;  %v10971_v34 = vld [vmem:[%s14193_s1 + $0x130] sm:$0xff]   ;;  %v10972_v49 = vld [vmem:[%s14193_s1 + $0x138] sm:$0xff]   ;;  %v14604_v58 = vld [vmem:[#allocation30_spill] sm:$0xff] }
 0x108   : > { %v1829_v10 = vrot.slane %v1827_v20, 4  ;;  %v1834_v22 = vor.u32 %v1833_v25, %v1832_v26  ;;  %v8668_v51 = vrot.slane %v12630_v27, 9  ;;  %v2500_v18 = vrot.slane %v12633_v33, 5  ;;  %v14605_v16 = vld [vmem:[#allocation35_spill] sm:$0xff]  ;;  %v10973_v35 = vld [vmem:[%s14193_s1 + $0x140] sm:$0xff]  }
 0x109   : > { %v1828_v13 = vsel %vm12263_vm8, %v1824_v62, %v1827_v20  ;;  %9614 = vmatmul.mubr.bf16.gmra.mrb[32].mxu0 %v12612_v39  ;;  %v2499_v50 = vrot.slane %v2497_v44, 4  ;;  %v14606_v56 = vld [vmem:[#allocation39_spill] sm:$0xff]  ;;  %v14607_v20 = vld [vmem:[#allocation42_spill] sm:$0xff]  ;;  %v14609_v62 = vld [vmem:[#allocation52_spill] sm:$0xff]  ;;  %v14369_v36 = vshll.u32 %v12626_v57, 16  ;;  %v14370_v28 = vshrl.u32 %v12626_v57, 16 }
 0x10a   : > { %v1835_v1 = vsel %vm12263_vm8, %v1829_v10, %v1834_v22  ;;  %9617 = vmatprep.mubr.bf16.mxu0 %v12616_v2  ;;  %v14608_v11 = vld [vmem:[#allocation47_spill] sm:$0xff]  ;;  %v14372_v10 = vshrl.u32 %v12630_v27, 16  ;;  %v14371_v22 = vshll.u32 %v12630_v27, 16 }
 0x10b   : > { %v12614_v60 = vcombine.low %v1828_v13, %v1835_v1  ;;  %v2501_v43 = vsel %vm11443_vm2, %v2499_v50, %v2500_v18  ;;  %v14368_v50 = vshll.u32 %v12633_v33, 16 }
 0x10c   : > { %v2189_v13 = vrot.slane %v14372_v10, 4  ;;  %v2192_v1 = vrot.slane %v14371_v22, 5  ;;  %v14627_v22 = vld [vmem:[#allocation29_spill] sm:$0xff] }
 0x111   : > { %9618 = vmatmul.mubr.bf16.gmra.mrb[44].mxu0 %v12614_v60 }
 0x112   : > { %9637 = vmatprep.mubr.bf16.mxu0 %v14597_v41  ;;  %v2198_v41 = vrot.slane %v14369_v36, 5  ;;  %v10980_v36 = vld [vmem:[%s14193_s1 + $0x178] sm:$0xff]  }
 0x119   : > { %9638 = vmatmul.mubr.bf16.vlgmr.msra.gmra.mrb[48].mxu0 %v14598_v52 }
 0x11a   : > { %9674 = vmatpush3.bf16.msra.mxu0 %v12505_v46  ;;  %9641 = vmatprep.mubr.bf16.mxu0 %v14599_v12  ;;  %v2498_v46 = vsel %vm11443_vm2, %v8668_v51, %v2497_v44  ;;  %v2193_v44 = vor.u32 %v2192_v1, %v2189_v13 }
 0x11b   : > { %9675 = vmatprep.subr.bf16.mxu0 %v10966_v30  ;;  %v12650_v55 = vcombine.low %v2498_v46, %v2501_v43  ;;  %v2208_v46 = vrot.slane %v14368_v50, 5 }
 0x11c   : > { %v2194_v18 = vrot.slane %v2193_v44, 4  ;;  %v14612_v44 = vld [vmem:[#allocation11_spill] sm:$0xff] }
 0x11e   : > { %9676 = vmatpush3.bf16.msra.mxu0 %v10966_v30  ;;  %v2202_v30 = vrot.slane %v14370_v28, 4  ;;  %v2199_v43 = vsel %vm11644_vm5, %v2194_v18, %v2198_v41  ;;  %v14626_v28 = vld [vmem:[#allocation24_spill] sm:$0xff] }
 0x11f   : > { %9677 = vmatprep.subr.bf16.mxu0 %v10967_v8 }
 0x120   : > { %v2203_v51 = vor.u32 %v2202_v30, %v2198_v41  ;;  %v10974_v41 = vld [vmem:[%s14193_s1 + $0x148] sm:$0xff]  }
 0x121   : > { %9642 = vmatmul.mubr.bf16.gmra.mrb[4].mxu0 %v14600_v59 }
 0x122   : > { %9645 = vmatprep.mubr.bf16.mxu0 %v14601_v54  ;;  %9678 = vmatpush3.bf16.msra.mxu0 %v10967_v8  ;;  %v14610_v8 = vld [vmem:[#allocation55_spill] sm:$0xff] }
 0x123   : > { %9679 = vmatprep.subr.bf16.mxu0 %v10968_v38 }
 0x126   : > { %9680 = vmatpush3.bf16.msra.mxu0 %v10968_v38  ;;  %v2204_v38 = vrot.slane %v2203_v51, 4  ;;  %v14613_v51 = vld [vmem:[#allocation12_spill] sm:$0xff] }
 0x127   : > { %9681 = vmatprep.subr.bf16.mxu0 %v10969_v42 }
 0x129   : > { %9646 = vmatmul.mubr.bf16.gmra.mrb[8].mxu0 %v14602_v23 }
 0x12a   : > { %9649 = vmatprep.mubr.bf16.mxu0 %v14603_v15  ;;  %9682 = vmatpush3.bf16.msra.mxu0 %v10969_v42  ;;  %v2209_v42 = vsel %vm11644_vm5, %v2204_v38, %v2208_v46  ;;  %v10976_v46 = vld [vmem:[%s14193_s1 + $0x158] sm:$0xff]  }
 0x12b   : > { %9683 = vmatprep.subr.bf16.mxu0 %v10970_v47 }
 0x12d   : > { %v9483_v26 = vpop.f32.mrb[0].mxu0 }
 0x12e   : > { %9684 = vmatpush3.bf16.msra.mxu0 %v10970_v47  ;;  %v1123_v5 = vpop.f32.mrb[1].mxu0  ;;  %v12700_v47 = vcombine.low %v2199_v43, %v2209_v42  ;;  %v14618_v43 = vld [vmem:[#allocation13_spill] sm:$0xff]  ;;  %v14619_v42 = vld [vmem:[#allocation14_spill] sm:$0xff] }
 0x12f   : > { %9685 = vmatprep.subr.bf16.mxu0 %v10971_v34  ;;  %v9484_v25 = vpop.f32.mrb[2].mxu0 }
 0x130   : > { %v1126_v19 = vpop.f32.mrb[3].mxu0 }
 0x131   : > { %9650 = vmatmul.mubr.bf16.gmra.mrb[12].mxu0 %v14604_v58 }
 0x132   : > { %9653 = vmatprep.mubr.bf16.mxu0 %v14605_v16  ;;  %9686 = vmatpush3.bf16.msra.mxu0 %v10971_v34  ;;  %v14611_v34 = vld [vmem:[#allocation10_spill] sm:$0xff] }
 0x133   : > { %9687 = vmatprep.subr.bf16.mxu0 %v10972_v49 }
 0x136   : > { %9688 = vmatpush3.bf16.msra.mxu0 %v10972_v49 }
 0x137   : > { %9725 = vmatprep.subr.bf16.mxu0 %v10973_v35 }
 0x139   : > { %9654 = vmatmul.mubr.bf16.gmra.mrb[20].mxu0 %v14606_v56 }
 0x13a   : > { %9657 = vmatprep.mubr.bf16.mxu0 %v14607_v20 }
 0x141   : > { %9658 = vmatmul.mubr.bf16.gmra.mrb[24].mxu0 %v14608_v11 }
 0x142   : > { %9661 = vmatprep.mubr.bf16.mxu0 %v14609_v62 }
 0x149   : > { %9662 = vmatmul.mubr.bf16.gmra.mrb[28].mxu0 %v14610_v8 }
 0x14a   : > { %9665 = vmatprep.mubr.bf16.mxu0 %v12227_v61 }
 0x14d   : > { %v9535_v49 = vpop.f32.mrb[16].mxu0 }
 0x14e   : > { %v12704_v5 = vadd.f32 %v9535_v49, %v9483_v26  ;;  %v1420_v19 = vpop.f32.mrb[17].mxu0  ;;  %v10975_v26 = vld [vmem:[%s14193_s1 + $0x150] sm:$0xff]   ;;  %v10978_v49 = vld [vmem:[%s14193_s1 + $0x168] sm:$0xff]  }
 0x14f   : > { %v9536_v13 = vpop.f32.mrb[18].mxu0 }
 0x150   : > { %v12706_v1 = vadd.f32 %v9536_v13, %v9484_v25  ;;  %v1423_v30 = vpop.f32.mrb[19].mxu0  ;;  %v14621_v13 = vld [vmem:[#allocation15_spill] sm:$0xff] }
 0x151   : > { %9666 = vmatmul.mubr.bf16.gmra.mrb[32].mxu0 %v12257_v24 }
 0x152   : > { %9669 = vmatprep.mubr.bf16.mxu0 %v12299_v14 }
 0x154   : > { %v12716_v18 = vpop.f32.mrb[0].mxu1 }
 0x155   : > { %14614 = vst [vmem:[#allocation28_spill] sm:$0xff] %v12716_v18  ;;  %v12718_v38 = vpop.f32.mrb[1].mxu1 }
 0x156   : > { %14615 = vst [vmem:[#allocation31_spill] sm:$0xff] %v12718_v38  ;;  %v12720_v25 = vpop.f32.mrb[2].mxu1  ;;  %v14637_v38 = vld [vmem:[#allocation46_spill] sm:$0xff] }
 0x157   : > { %14616 = vst [vmem:[#allocation32_spill] sm:$0xff] %v12720_v25 }
 0x159   : > { %9670 = vmatmul.mubr.bf16.gmra.mrb[52].mxu0 %v12700_v47 }
 0x15a   : > { %9689 = vmatprep.mubr.bf16.mxu0 %v14611_v34  ;;  %v10977_v34 = vld [vmem:[%s14193_s1 + $0x160] sm:$0xff]  }
 0x161   : > { %9690 = vmatmul.mubr.bf16.vlgmr.msra.gmra.mrb[56].mxu0 %v14612_v44 }
 0x162   : > { %9726 = vmatpush3.bf16.msra.mxu0 %v10973_v35  ;;  %9693 = vmatprep.mubr.bf16.mxu0 %v14613_v51  ;;  %v12725_v35 = vpop.f32.mrb[3].mxu1 }
 0x163   : > { %9727 = vmatprep.subr.bf16.mxu0 %v10974_v41  ;;  %14617 = vst [vmem:[#allocation33_spill] sm:$0xff] %v12725_v35  ;;  %v12735_v19 = vpop.f32.mrb[4].mxu1  ;;  %v14635_v35 = vld [vmem:[#allocation41_spill] sm:$0xff] }
 0x164   : > { %14620 = vst [vmem:[#allocation36_spill] sm:$0xff] %v12735_v19  ;;  %v12738_v30 = vpop.f32.mrb[5].mxu1  ;;  %v14633_v19 = vld [vmem:[#allocation38_spill] sm:$0xff] }
 0x165   : > { %14622 = vst [vmem:[#allocation37_spill] sm:$0xff] %v12738_v30  ;;  %v14632_v30 = vld [vmem:[#allocation34_spill] sm:$0xff] }
 0x166   : > { %9728 = vmatpush3.bf16.msra.mxu0 %v10974_v41  ;;  %v14623_v41 = vld [vmem:[#allocation17_spill] sm:$0xff] }
 0x167   : > { %9729 = vmatprep.subr.bf16.mxu0 %v10975_v26 }
 0x169   : > { %9694 = vmatmul.mubr.bf16.gmra.mrb[4].mxu0 %v14618_v43 }
 0x16a   : > { %9697 = vmatprep.mubr.bf16.mxu0 %v14619_v42  ;;  %9730 = vmatpush3.bf16.msra.mxu0 %v10975_v26  ;;  %v12741_v26 = vpop.f32.mrb[6].mxu1 }
 0x16b   : > { %9731 = vmatprep.subr.bf16.mxu0 %v10976_v46  ;;  %14624 = vst [vmem:[#allocation40_spill] sm:$0xff] %v12741_v26  ;;  %v12743_v50 = vpop.f32.mrb[7].mxu1 }
 0x16c   : > { %14625 = vst [vmem:[#allocation43_spill] sm:$0xff] %v12743_v50 }
 0x16d   : > { %v12756_v10 = vpop.f32.mrb[8].mxu1 }
 0x16e   : > { %9732 = vmatpush3.bf16.msra.mxu0 %v10976_v46  ;;  %v10979_v46 = vld [vmem:[%s14193_s1 + $0x170] sm:$0xff]   ;;  %14628 = vst [vmem:[#allocation44_spill] sm:$0xff] %v12756_v10  ;;  %v12758_v50 = vpop.f32.mrb[9].mxu1 }
 0x16f   : > { %9733 = vmatprep.subr.bf16.mxu0 %v10977_v34  ;;  %14629 = vst [vmem:[#allocation45_spill] sm:$0xff] %v12758_v50 }
 0x171   : > { %9698 = vmatmul.mubr.bf16.gmra.mrb[8].mxu0 %v14621_v13 }
 0x172   : > { %9701 = vmatprep.mubr.bf16.mxu0 %v14623_v41  ;;  %9734 = vmatpush3.bf16.msra.mxu0 %v10977_v34  ;;  %v10981_v34 = vld [vmem:[%s14193_s1 + $0x180] sm:$0xff]  }
 0x173   : > { %9735 = vmatprep.subr.bf16.mxu0 %v10978_v49 }
 0x176   : > { %9736 = vmatpush3.bf16.msra.mxu0 %v10978_v49  ;;  %v12760_v49 = vpop.f32.mrb[10].mxu1 }
 0x177   : > { %9737 = vmatprep.subr.bf16.mxu0 %v10979_v46  ;;  %14630 = vst [vmem:[#allocation48_spill] sm:$0xff] %v12760_v49  ;;  %v12762_v26 = vpop.f32.mrb[11].mxu1 }
 0x178   : > { %14631 = vst [vmem:[#allocation49_spill] sm:$0xff] %v12762_v26  ;;  %v14641_v26 = vld [vmem:[#allocation54_spill] sm:$0xff] }
 0x179   : > { %9702 = vmatmul.mubr.bf16.gmra.mrb[12].mxu0 %v14626_v28 }
 0x17a   : > { %9705 = vmatprep.mubr.bf16.mxu0 %v14627_v22  ;;  %9738 = vmatpush3.bf16.msra.mxu0 %v10979_v46  ;;  %v12766_v46 = vpop.f32.mrb[12].mxu1 }
 0x17b   : > { %9739 = vmatprep.subr.bf16.mxu0 %v10980_v36  ;;  %14634 = vst [vmem:[#allocation50_spill] sm:$0xff] %v12766_v46  ;;  %v12769_v25 = vpop.f32.mrb[13].mxu1  ;;  %v14643_v46 = vld [vmem:[#allocation58_spill] sm:$0xff] }
 0x17c   : > { %14636 = vst [vmem:[#allocation53_spill] sm:$0xff] %v12769_v25  ;;  %v12772_v10 = vpop.f32.mrb[14].mxu1 }
 0x17d   : > { %14638 = vst [vmem:[#allocation56_spill] sm:$0xff] %v12772_v10  ;;  %v12774_v50 = vpop.f32.mrb[15].mxu1 }
 0x17e   : > { %9740 = vmatpush3.bf16.msra.mxu0 %v10980_v36  ;;  %14639 = vst [vmem:[#allocation18_spill] sm:$0xff] %v12774_v50  ;;  %v14640_v36 = vld [vmem:[#allocation51_spill] sm:$0xff] }
 0x17f   : > { %9777 = vmatprep.subr.bf16.mxu0 %v10981_v34 }
 0x181   : > { %9706 = vmatmul.mubr.bf16.gmra.mrb[20].mxu0 %v14632_v30  ;;  %v14642_v30 = vld [vmem:[#allocation57_spill] sm:$0xff] }
 0x182   : > { %9709 = vmatprep.mubr.bf16.mxu0 %v14633_v19 }
 0x185   : > { %v9515_v49 = vpop.f32.mrb[16].mxu1 }
 0x186   : > { %v1251_v18 = vpop.f32.mrb[17].mxu1 }
 0x187   : > { %v9516_v9 = vpop.f32.mrb[18].mxu1 }
 0x188   : > { %v1254_v19 = vpop.f32.mrb[19].mxu1 }
 0x189   : > { %9710 = vmatmul.mubr.bf16.gmra.mrb[24].mxu0 %v14635_v35 }
 0x18a   : > { %9713 = vmatprep.mubr.bf16.mxu0 %v14637_v38 }
 0x18d   : > { %v9567_v35 = vpop.f32.mrb[36].mxu0 }
 0x18e   : > { %v1548_v25 = vpop.f32.mrb[37].mxu0 }
 0x18f   : > { %v12780_v22 = vadd.f32 %v1548_v25, %v1251_v18  ;;  %v9568_v38 = vpop.f32.mrb[38].mxu0  ;;  %v10982_v18 = vld [vmem:[%s14193_s1 + $0x188] sm:$0xff]   ;;  %v10989_v25 = vld [vmem:[%s14193_s1 + $0x1c0] sm:$0xff]  }
 0x190   : > { %v1551_v10 = vpop.f32.mrb[39].mxu0  ;;  %v10988_v38 = vld [vmem:[%s14193_s1 + $0x1b8] sm:$0xff]  }
 0x191   : > { %9714 = vmatmul.mubr.bf16.gmra.mrb[28].mxu0 %v14640_v36  ;;  %v12782_v28 = vadd.f32 %v1551_v10, %v1254_v19  ;;  %v10984_v10 = vld [vmem:[%s14193_s1 + $0x198] sm:$0xff]   ;;  %v14644_v19 = vshrl.u32 %v12630_v27, 16 }
 0x192   : > { %9717 = vmatprep.mubr.bf16.mxu0 %v14641_v26 }
 0x195   : > { %v9587_v49 = vpop.f32.mrb[40].mxu0 }
 0x196   : > { %v12787_v9 = vadd.f32 %v9587_v49, %v12704_v5  ;;  %v2007_v50 = vpop.f32.mrb[41].mxu0  ;;  %v10986_v5 = vld [vmem:[%s14193_s1 + $0x1a8] sm:$0xff]  }
 0x197   : > { %v10985_v50 = vld [vmem:[%s14193_s1 + $0x1a0] sm:$0xff]  }
 0x199   : > { %9718 = vmatmul.mubr.bf16.gmra.mrb[32].mxu0 %v14642_v30  ;;  %v9588_v30 = vpop.f32.mrb[42].mxu0 }
 0x19a   : > { %9721 = vmatprep.mubr.bf16.mxu0 %v14643_v46  ;;  %v12790_v46 = vadd.f32 %v9588_v30, %v12706_v1  ;;  %v2010_v35 = vpop.f32.mrb[43].mxu0  ;;  %v10987_v1 = vld [vmem:[%s14193_s1 + $0x1b0] sm:$0xff]   ;;  %v2784_v30 = vrot.slane %v14644_v19, 5  ;;  %v14648_v19 = vshll.u32 %v12633_v33, 16 }
 0x19b   : > { %v14646_v35 = vshrl.u32 %v12626_v57, 16 }
 0x1a1   : > { %9722 = vmatmul.mubr.bf16.gmra.mrb[60].mxu0 %v12650_v55 }
 0x1a2   : > { %9741 = vmatprep.mubr.bf16.mxu0 %v12301_v63  ;;  %v10983_v63 = vld [vmem:[%s14193_s1 + $0x190] sm:$0xff]  }
 0x1a9   : > { %9742 = vmatmul.mubr.bf16.vlgmr.msra.gmra.mrb[64].mxu0 %v12338_v4 }
 0x1aa   : > { %9778 = vmatpush3.bf16.msra.mxu0 %v10981_v34  ;;  %9745 = vmatprep.mubr.bf16.mxu0 %v12357_v17  ;;  %v14645_v34 = vshll.u32 %v12630_v27, 16 }
 0x1ab   : > { %9779 = vmatprep.subr.bf16.mxu0 %v10982_v18 }
 0x1ac   : > { %v2785_v49 = vrot.slane %v14645_v34, 6 }
 0x1ae   : > { %9780 = vmatpush3.bf16.msra.mxu0 %v10982_v18  ;;  %v2788_v18 = vrot.slane %v14646_v35, 5 }
 0x1af   : > { %9781 = vmatprep.subr.bf16.mxu0 %v10983_v63 }
 0x1b1   : > { %9746 = vmatmul.mubr.bf16.gmra.mrb[4].mxu0 %v12382_v21 }
 0x1b2   : > { %9749 = vmatprep.mubr.bf16.mxu0 %v12419_v6  ;;  %9782 = vmatpush3.bf16.msra.mxu0 %v10983_v63  ;;  %v14647_v63 = vshll.u32 %v12626_v57, 16 }
 0x1b3   : > { %9783 = vmatprep.subr.bf16.mxu0 %v10984_v10 }
 0x1b6   : > { %9784 = vmatpush3.bf16.msra.mxu0 %v10984_v10  ;;  %v2789_v10 = vrot.slane %v14647_v63, 6 }
 0x1b7   : > { %9785 = vmatprep.subr.bf16.mxu0 %v10985_v50 }
 0x1b9   : > { %9750 = vmatmul.mubr.bf16.gmra.mrb[8].mxu0 %v12426_v32 }
 0x1ba   : > { %9753 = vmatprep.mubr.bf16.mxu0 %v12461_v7  ;;  %9786 = vmatpush3.bf16.msra.mxu0 %v10985_v50  ;;  %v2793_v50 = vshrl.u32 %v12633_v33, 16 }
 0x1bb   : > { %9787 = vmatprep.subr.bf16.mxu0 %v10986_v5 }
 0x1be   : > { %9788 = vmatpush3.bf16.msra.mxu0 %v10986_v5  ;;  %v2786_v5 = vor.u32 %v2785_v49, %v2784_v30 }
 0x1bf   : > { %9789 = vmatprep.subr.bf16.mxu0 %v10987_v1 }
 0x1c0   : > { %v2787_v27 = vrot.slane %v2786_v5, 4 }
 0x1c1   : > { %9754 = vmatmul.mubr.bf16.gmra.mrb[12].mxu0 %v12471_v45 }
 0x1c2   : > { %9757 = vmatprep.mubr.bf16.mxu0 %v12507_v31  ;;  %9790 = vmatpush3.bf16.msra.mxu0 %v10987_v1  ;;  %v2790_v1 = vor.u32 %v2789_v10, %v2788_v18 }
 0x1c3   : > { %9791 = vmatprep.subr.bf16.mxu0 %v10988_v38 }
 0x1c4   : > { %v2792_v34 = vrot.slane %v2790_v1, 4  ;;  %v2791_v57 = vsel %vm12263_vm8, %v2787_v27, %v2790_v1 }
 0x1c6   : > { %9792 = vmatpush3.bf16.msra.mxu0 %v10988_v38  ;;  %v2795_v38 = vrot.slane %v2793_v50, 5 }
 0x1c7   : > { %9829 = vmatprep.subr.bf16.mxu0 %v10989_v25 }
 0x1c9   : > { %9758 = vmatmul.mubr.bf16.gmra.mrb[20].mxu0 %v12509_v37 }
 0x1ca   : > { %9761 = vmatprep.mubr.bf16.mxu0 %v12545_v3 }
 0x1d1   : > { %9762 = vmatmul.mubr.bf16.gmra.mrb[24].mxu0 %v12549_v53 }
 0x1d2   : > { %9765 = vmatprep.mubr.bf16.mxu0 %v12583_v40  ;;  %v2796_v40 = vrot.slane %v14648_v19, 6  ;;  %v10990_v19 = vld [vmem:[%s14193_s1 + $0x1c8] sm:$0xff]  }
 0x1d4   : > { %v2797_v53 = vor.u32 %v2796_v40, %v2795_v38 }
 0x1d6   : > { %v2798_v35 = vsel %vm12263_vm8, %v2792_v34, %v2797_v53 }
 0x1d7   : > { %v12847_v49 = vcombine.low %v2791_v57, %v2798_v35 }
 0x1d9   : > { %9766 = vmatmul.mubr.bf16.gmra.mrb[28].mxu0 %v12585_v29 }
 0x1da   : > { %9769 = vmatprep.mubr.bf16.mxu0 %v12612_v39 }
 0x1e1   : > { %9770 = vmatmul.mubr.bf16.gmra.mrb[32].mxu0 %v12616_v2 }
 0x1e2   : > { %9773 = vmatprep.mubr.bf16.mxu0 %v12614_v60 }
 0x1e4   : > { %v9619_v63 = vpop.f32.mrb[44].mxu0 }
 0x1e5   : > { %v2135_v30 = vpop.f32.mrb[45].mxu0 }
 0x1e6   : > { %v12850_v33 = vadd.f32 %v2135_v30, %v12780_v22  ;;  %v9620_v18 = vpop.f32.mrb[46].mxu0 }
 0x1e7   : > { %v2138_v10 = vpop.f32.mrb[47].mxu0 }
 0x1e8   : > { %v12853_v40 = vadd.f32 %v2138_v10, %v12782_v28  ;;  %v10992_v28 = vld [vmem:[%s14193_s1 + $0x1d8] sm:$0xff]  }
 0x1e9   : > { %9774 = vmatmul.mubr.bf16.gmra.mrb[68].mxu0 %v12847_v49 }
 0x1ea   : > { %9793 = vmatprep.mubr.bf16.mxu0 %v14598_v52  ;;  %v10991_v52 = vld [vmem:[%s14193_s1 + $0x1d0] sm:$0xff]  }
 0x1ec   : > { %v9639_v50 = vpop.f32.mrb[48].mxu0 }
 0x1ed   : > { %v12858_v5 = vadd.f32 %v9639_v50, %v12787_v9  ;;  %v2313_v53 = vpop.f32.mrb[49].mxu0 }
 0x1ee   : > { %v9640_v1 = vpop.f32.mrb[50].mxu0 }
 0x1ef   : > { %v12861_v38 = vadd.f32 %v9640_v1, %v12790_v46  ;;  %v2316_v22 = vpop.f32.mrb[51].mxu0  ;;  %v12901_v46 = vld [vmem:[%s11427_s25 + $0xe8] sm:$0xf] }
 0x1f0   : > { %v3091_v9 = vshll.u32 %v12901_v46, 16 }
 0x1f1   : > { %9794 = vmatmul.mubr.bf16.vlgmr.msra.gmra.mrb[72].mxu0 %v14599_v12  ;;  %v10993_v12 = vld [vmem:[%s14193_s1 + $0x1e0] sm:$0xff]  }
 0x1f2   : > { %9830 = vmatpush3.bf16.msra.mxu0 %v10989_v25  ;;  %9797 = vmatprep.mubr.bf16.mxu0 %v14600_v59  ;;  %v10994_v59 = vld [vmem:[%s14193_s1 + $0x1e8] sm:$0xff]   ;;  %v3095_v25 = vshrl.u32 %v12901_v46, 16  ;;  %v3093_v27 = vrot.slane %v3091_v9, 5 }
 0x1f3   : > { %9831 = vmatprep.subr.bf16.mxu0 %v10990_v19 }
 0x1f6   : > { %9832 = vmatpush3.bf16.msra.mxu0 %v10990_v19 }
 0x1f7   : > { %9833 = vmatprep.subr.bf16.mxu0 %v10991_v52 }
 0x1f9   : > { %9798 = vmatmul.mubr.bf16.gmra.mrb[4].mxu0 %v14601_v54  ;;  %v10995_v54 = vld [vmem:[%s14193_s1 + $0x1f0] sm:$0xff]  }
 0x1fa   : > { %9801 = vmatprep.mubr.bf16.mxu0 %v14602_v23  ;;  %9834 = vmatpush3.bf16.msra.mxu0 %v10991_v52  ;;  %v10996_v23 = vld [vmem:[%s14193_s1 + $0x1f8] sm:$0xff]  }
 0x1fb   : > { %9835 = vmatprep.subr.bf16.mxu0 %v10992_v28 }
 0x1fe   : > { %9836 = vmatpush3.bf16.msra.mxu0 %v10992_v28 }
 0x1ff   : > { %9837 = vmatprep.subr.bf16.mxu0 %v10993_v12 }
 0x201   : > { %9802 = vmatmul.mubr.bf16.gmra.mrb[8].mxu0 %v14603_v15  ;;  %v10997_v15 = vld [vmem:[%s14193_s1 + $0x200] sm:$0xff]  }
 0x202   : > { %9805 = vmatprep.mubr.bf16.mxu0 %v14604_v58  ;;  %9838 = vmatpush3.bf16.msra.mxu0 %v10993_v12  ;;  %v12898_v58 = vld [vmem:[%s11427_s25 + $0xe4] sm:$0xf] }
 0x203   : > { %9839 = vmatprep.subr.bf16.mxu0 %v10994_v59 }
 0x206   : > { %9840 = vmatpush3.bf16.msra.mxu0 %v10994_v59 }
 0x207   : > { %9841 = vmatprep.subr.bf16.mxu0 %v10995_v54 }
 0x209   : > { %9806 = vmatmul.mubr.bf16.gmra.mrb[12].mxu0 %v14605_v16  ;;  %v3082_v16 = vshrl.u32 %v12898_v58, 16 }
 0x20a   : > { %9809 = vmatprep.mubr.bf16.mxu0 %v14606_v56  ;;  %9842 = vmatpush3.bf16.msra.mxu0 %v10995_v54  ;;  %v3085_v56 = vshll.u32 %v12898_v58, 16 }
 0x20b   : > { %9843 = vmatprep.subr.bf16.mxu0 %v10996_v23 }
 0x20e   : > { %9844 = vmatpush3.bf16.msra.mxu0 %v10996_v23  ;;  %v10998_v23 = vld [vmem:[%s14193_s1 + $0x208] sm:$0xff]  }
 0x20f   : > { %9881 = vmatprep.subr.bf16.mxu0 %v10997_v15 }
 0x211   : > { %9810 = vmatmul.mubr.bf16.gmra.mrb[20].mxu0 %v14607_v20  ;;  %v3084_v20 = vrot.slane %v3082_v16, 4 }
 0x212   : > { %9813 = vmatprep.mubr.bf16.mxu0 %v14608_v11  ;;  %v3087_v11 = vrot.slane %v3085_v56, 5 }
 0x214   : > { %v3088_v34 = vor.u32 %v3087_v11, %v3084_v20  ;;  %v14654_v20 = vld [vmem:[#allocation46_spill] sm:$0xff]  ;;  %v14655_v11 = vld [vmem:[#allocation57_spill] sm:$0xff] }
 0x216   : > { %v3089_v63 = vrot.slane %v3088_v34, 4 }
 0x218   : > { %v3094_v10 = vsel %vm11644_vm5, %v3089_v63, %v3093_v27  ;;  %v14656_v63 = vld [vmem:[#allocation58_spill] sm:$0xff] }
 0x219   : > { %9814 = vmatmul.mubr.bf16.gmra.mrb[24].mxu0 %v14609_v62  ;;  %v3097_v62 = vrot.slane %v3095_v25, 4 }
 0x21a   : > { %9817 = vmatprep.mubr.bf16.mxu0 %v14610_v8  ;;  %v12918_v8 = vld [vmem:[%s11427_s25 + $0xec] sm:$0x3] }
 0x21b   : > { %v3098_v57 = vor.u32 %v3097_v62, %v3093_v27  ;;  %v3101_v35 = vshll.u32 %v12918_v8, 16  ;;  %v3392_v27 = vrot.slane %v12901_v46, 5  ;;  %v8744_v62 = vrot.slane %v12898_v58, 9 }
 0x21d   : > { %v3099_v30 = vrot.slane %v3098_v57, 4  ;;  %v3103_v18 = vrot.slane %v3101_v35, 5  ;;  %v3394_v34 = vrot.slane %v3392_v27, 4  ;;  %v3395_v57 = vrot.slane %v12918_v8, 5 }
 0x221   : > { %9818 = vmatmul.mubr.bf16.gmra.mrb[28].mxu0 %v12227_v61  ;;  %v3104_v61 = vsel %vm11644_vm5, %v3099_v30, %v3103_v18  ;;  %v3393_v18 = vsel %vm11443_vm2, %v8744_v62, %v3392_v27 }
 0x222   : > { %9821 = vmatprep.mubr.bf16.mxu0 %v12257_v24  ;;  %v8735_v53 = vcombine.low %v3094_v10, %v3104_v61 }
 0x229   : > { %9822 = vmatmul.mubr.bf16.gmra.mrb[32].mxu0 %v12299_v14 }
 0x22a   : > { %9825 = vmatprep.mubr.bf16.mxu0 %v12700_v47 }
 0x22c   : > { %v9671_v24 = vpop.f32.mrb[52].mxu0 }
 0x22d   : > { %v2441_v50 = vpop.f32.mrb[53].mxu0 }
 0x22e   : > { %v2488_v1 = vadd.f32 %v2441_v50, %v12850_v33  ;;  %v9672_v22 = vpop.f32.mrb[54].mxu0  ;;  %v11000_v33 = vld [vmem:[%s14193_s1 + $0x218] sm:$0xff]  }
 0x22f   : > { %v2444_v19 = vpop.f32.mrb[55].mxu0 }
 0x230   : > { %v2489_v52 = vadd.f32 %v2444_v19, %v12853_v40  ;;  %v14649_v40 = vld [vmem:[#allocation24_spill] sm:$0xff] }
 0x231   : > { %9826 = vmatmul.mubr.bf16.gmra.mrb[76].mxu0 %v8735_v53 }
 0x232   : > { %9845 = vmatprep.mubr.bf16.mxu0 %v14612_v44  ;;  %v10999_v44 = vld [vmem:[%s14193_s1 + $0x210] sm:$0xff]  }
 0x234   : > { %v9691_v14 = vpop.f32.mrb[56].mxu0 }
 0x235   : > { %v2750_v47 = vadd.f32 %v9691_v14, %v12858_v5  ;;  %v2605_v28 = vpop.f32.mrb[57].mxu0  ;;  %v14650_v5 = vld [vmem:[#allocation29_spill] sm:$0xff] }
 0x236   : > { %v9692_v12 = vpop.f32.mrb[58].mxu0 }
 0x237   : > { %v2751_v59 = vadd.f32 %v9692_v12, %v12861_v38  ;;  %v2608_v54 = vpop.f32.mrb[59].mxu0  ;;  %v14651_v38 = vld [vmem:[#allocation34_spill] sm:$0xff] }
 0x239   : > { %9846 = vmatmul.mubr.bf16.vlgmr.msra.gmra.mrb[80].mxu0 %v14613_v51  ;;  %v11001_v51 = vld [vmem:[%s14193_s1 + $0x220] sm:$0xff]  }
 0x23a   : > { %9882 = vmatpush3.bf16.msra.mxu0 %v10997_v15  ;;  %9849 = vmatprep.mubr.bf16.mxu0 %v14618_v43  ;;  %v11002_v43 = vld [vmem:[%s14193_s1 + $0x228] sm:$0xff]   ;;  %v14653_v15 = vld [vmem:[#allocation41_spill] sm:$0xff] }
 0x23b   : > { %9883 = vmatprep.subr.bf16.mxu0 %v10998_v23 }
 0x23e   : > { %9884 = vmatpush3.bf16.msra.mxu0 %v10998_v23 }
 0x23f   : > { %9885 = vmatprep.subr.bf16.mxu0 %v10999_v44 }
 0x241   : > { %9850 = vmatmul.mubr.bf16.gmra.mrb[4].mxu0 %v14619_v42  ;;  %v11003_v42 = vld [vmem:[%s14193_s1 + $0x230] sm:$0xff]  }
 0x242   : > { %9853 = vmatprep.mubr.bf16.mxu0 %v14621_v13  ;;  %9886 = vmatpush3.bf16.msra.mxu0 %v10999_v44  ;;  %v11004_v13 = vld [vmem:[%s14193_s1 + $0x238] sm:$0xff]  }
 0x243   : > { %9887 = vmatprep.subr.bf16.mxu0 %v11000_v33 }
 0x246   : > { %9888 = vmatpush3.bf16.msra.mxu0 %v11000_v33  ;;  %v14660_v33 = vmov 0 }
 0x247   : > { %9889 = vmatprep.subr.bf16.mxu0 %v11001_v51  ;;  %v14661_v33 = vsel %vm13021_vm11, 4294967295, %v14660_v33 }
 0x248   : > { %14662 = vst [vmem:[#allocation19_spill] sm:$0xff] %v14661_v33 }
 0x249   : > { %9854 = vmatmul.mubr.bf16.gmra.mrb[8].mxu0 %v14623_v41  ;;  %v14652_v41 = vld [vmem:[#allocation38_spill] sm:$0xff] }
 0x24a   : > { %9857 = vmatprep.mubr.bf16.mxu0 %v14649_v40  ;;  %9890 = vmatpush3.bf16.msra.mxu0 %v11001_v51  ;;  %v4228_v51 = vld [vmem:[#allocation2 + $0xc] sm:$0x1]  ;;  %v14663_v40 = vmov 0 }
 0x24b   : > { %9891 = vmatprep.subr.bf16.mxu0 %v11002_v43  ;;  %v14664_v40 = vsel %vm13028_vm13, 4294967295, %v14663_v40 }
 0x24c   : > { %14665 = vst [vmem:[#allocation20_spill] sm:$0xff] %v14664_v40 }
 0x24e   : > { %9892 = vmatpush3.bf16.msra.mxu0 %v11002_v43  ;;  %v4229_v43 = vsel %vm13021_vm11, 0, %v4228_v51 }
 0x24f   : > { %9893 = vmatprep.subr.bf16.mxu0 %v11003_v42  ;;  %4230 = vst [vmem:[#allocation2 + $0xc] sm:$0x1] %v4229_v43  ;;  %v4243_v43 = vld [vmem:[#allocation2 + $0x48] sm:$0x1] }
 0x251   : > { %9858 = vmatmul.mubr.bf16.gmra.mrb[12].mxu0 %v14650_v5 }
 0x252   : > { %9861 = vmatprep.mubr.bf16.mxu0 %v14651_v38  ;;  %9894 = vmatpush3.bf16.msra.mxu0 %v11003_v42  ;;  %v4284_v42 = vld [vmem:[#allocation2 + $0x14] sm:$0x1]  ;;  %v4234_v38 = vld [vmem:[#allocation2 + $0x24] sm:$0x1] }
 0x253   : > { %9895 = vmatprep.subr.bf16.mxu0 %v11004_v13  ;;  %v4285_v5 = vsel %vm13028_vm13, 0, %v4284_v42 }
 0x254   : > { %4286 = vst [vmem:[#allocation2 + $0x14] sm:$0x1] %v4285_v5  ;;  %v4302_v5 = vld [vmem:[#allocation2 + $0x5c] sm:$0x1] }
 0x256   : > { %9896 = vmatpush3.bf16.msra.mxu0 %v11004_v13  ;;  %v11006_v13 = vld [vmem:[#allocation3 + $0x48] sm:$0xff]  }
 0x257   : > { %9935 = vmatprep.subr.bf16.mxu1 %v11006_v13 }
 0x258   : > { %9936 = vmatpush3.bf16.msra.mxu1 %v11006_v13  ;;  %v4244_v13 = vsel %vm13021_vm11, 0, %v4243_v43  ;;  %v4320_v43 = vld [vmem:[#allocation2 + $0xa4] sm:$0x1] }
 0x259   : > { %9862 = vmatmul.mubr.bf16.gmra.mrb[20].mxu0 %v14652_v41  ;;  %v4235_v41 = vsel %vm13021_vm11, 0, %v4234_v38  ;;  %4245 = vst [vmem:[#allocation2 + $0x48] sm:$0x1] %v4244_v13  ;;  %v4321_v13 = vsel %vm13028_vm13, 0, %v4320_v43 }
 0x25a   : > { %9865 = vmatprep.mubr.bf16.mxu0 %v14653_v15  ;;  %v11007_v15 = vld [vmem:[#allocation3 + $0x50] sm:$0xff]   ;;  %4236 = vst [vmem:[#allocation2 + $0x24] sm:$0x1] %v4235_v41  ;;  %4322 = vst [vmem:[#allocation2 + $0xa4] sm:$0x1] %v4321_v13 }
 0x25b   : > { %9937 = vmatprep.subr.bf16.mxu1 %v11007_v15 }
 0x25c   : > { %9938 = vmatpush3.bf16.msra.mxu1 %v11007_v15  ;;  %v4303_v15 = vsel %vm13028_vm13, 0, %v4302_v5 }
 0x25d   : > { %4304 = vst [vmem:[#allocation2 + $0x5c] sm:$0x1] %v4303_v15  ;;  %v4267_v15 = vld [vmem:[#allocation2 + $0xa8] sm:$0x1] }
 0x261   : > { %9866 = vmatmul.mubr.bf16.gmra.mrb[24].mxu0 %v14654_v20  ;;  %v4231_v20 = vld [vmem:[#allocation2 + $0x18] sm:$0x1] }
 0x262   : > { %9869 = vmatprep.mubr.bf16.mxu0 %v14640_v36  ;;  %v3396_v36 = vsel %vm11443_vm2, %v3394_v34, %v3395_v57  ;;  %v4232_v27 = vsel %vm13021_vm11, 0, %v4231_v20  ;;  %v4290_v34 = vld [vmem:[#allocation2 + $0x2c] sm:$0x1]  ;;  %v4287_v57 = vld [vmem:[#allocation2 + $0x20] sm:$0x1] }
 0x263   : > { %v8761_v61 = vcombine.low %v3393_v18, %v3396_v36  ;;  %4233 = vst [vmem:[#allocation2 + $0x18] sm:$0x1] %v4232_v27  ;;  %v4288_v18 = vsel %vm13028_vm13, 0, %v4287_v57  ;;  %v11008_v36 = vld [vmem:[#allocation3 + $0x58] sm:$0xff]  }
 0x264   : > { %4289 = vst [vmem:[#allocation2 + $0x20] sm:$0x1] %v4288_v18  ;;  %9939 = vmatprep.subr.bf16.mxu1 %v11008_v36  ;;  %v4299_v20 = vld [vmem:[#allocation2 + $0x50] sm:$0x1] }
 0x265   : > { %9940 = vmatpush3.bf16.msra.mxu1 %v11008_v36  ;;  %v11012_v57 = vld [vmem:[#allocation3 + $0x78] sm:$0xff]  }
 0x269   : > { %9870 = vmatmul.mubr.bf16.gmra.mrb[28].mxu0 %v14641_v26 }
 0x26a   : > { %9873 = vmatprep.mubr.bf16.mxu0 %v14655_v11  ;;  %v4225_v11 = vld [vmem:[#allocation2] sm:$0x1] }
 0x26b   : > { %v4226_v62 = vsel %vm13021_vm11, 0, %v4225_v11 }
 0x26c   : > { %4227 = vst [vmem:[#allocation2] sm:$0x1] %v4226_v62 }
 0x271   : > { %9874 = vmatmul.mubr.bf16.gmra.mrb[32].mxu0 %v14656_v63  ;;  %v4291_v63 = vsel %vm13028_vm13, 0, %v4290_v34  ;;  %v4300_v34 = vsel %vm13028_vm13, 0, %v4299_v20  ;;  %v4326_v20 = vld [vmem:[#allocation2 + $0xbc] sm:$0x1] }
 0x272   : > { %9877 = vmatprep.mubr.bf16.mxu0 %v12650_v55  ;;  %4292 = vst [vmem:[#allocation2 + $0x2c] sm:$0x1] %v4291_v63  ;;  %4301 = vst [vmem:[#allocation2 + $0x50] sm:$0x1] %v4300_v34 }
 0x274   : > { %v9723_v26 = vpop.f32.mrb[60].mxu0 }
 0x275   : > { %v2733_v10 = vpop.f32.mrb[61].mxu0  ;;  %v11286_v26 = vmov 0.0|0.0  }
 0x276   : > { %v2780_v24 = vadd.f32 %v2733_v10, %v2488_v1  ;;  %v9724_v50 = vpop.f32.mrb[62].mxu0  ;;  %v14659_v1 = vld [vmem:[#allocation27_spill] sm:$0xff]  ;;  %v8796_v10 = vcombine.low %v11286_v26, %v11286_v26 }
 0x277   : > { %v2736_v53 = vpop.f32.mrb[63].mxu0 }
 0x278   : > { %v2781_v22 = vadd.f32 %v2736_v53, %v2489_v52  ;;  %v4429_v53 = vshrl.u32 %v8796_v10, 16 }
 0x279   : > { %9878 = vmatmul.mubr.bf16.gmra.mrb[84].mxu0 %v8761_v61  ;;  %v8797_v61 = vcombine.high %v11286_v26, %v11286_v26 }
 0x27a   : > { %9897 = vmatprep.mubr.bf16.mxu0 %v12338_v4  ;;  %v14658_v4 = vld [vmem:[#allocation26_spill] sm:$0xff] }
 0x27c   : > { %v9743_v19 = vpop.f32.mrb[64].mxu0 }
 0x27d   : > { %v3047_v14 = vadd.f32 %v9743_v19, %v2750_v47  ;;  %v2902_v28 = vpop.f32.mrb[65].mxu0  ;;  %v4432_v19 = vshll.u32 %v8796_v10, 16 }
 0x27e   : > { %v9744_v55 = vpop.f32.mrb[66].mxu0  ;;  %v14666_v28 = vmov 0 }
 0x27f   : > { %v3048_v12 = vadd.f32 %v9744_v55, %v2751_v59  ;;  %v2905_v54 = vpop.f32.mrb[67].mxu0  ;;  %v14667_v28 = vsel %vm13047_vm0, 4294967295, %v14666_v28  ;;  %v4240_v55 = vld [vmem:[#allocation2 + $0x3c] sm:$0x1] }
 0x280   : > { %14668 = vst [vmem:[#allocation21_spill] sm:$0xff] %v14667_v28 }
 0x281   : > { %9898 = vmatmul.mubr.bf16.vlgmr.msra.gmra.mrb[88].mxu0 %v12357_v17  ;;  %v3679_v17 = vrot.slane %v3082_v16, 5 }
 0x282   : > { %9901 = vmatprep.mubr.bf16.mxu0 %v12382_v21  ;;  %v3680_v21 = vrot.slane %v3085_v56, 6 }
 0x289   : > { %9902 = vmatmul.mubr.bf16.gmra.mrb[4].mxu0 %v12419_v6  ;;  %v3683_v6 = vrot.slane %v3095_v25, 5 }
 0x28a   : > { %9905 = vmatprep.mubr.bf16.mxu0 %v12426_v32  ;;  %v3684_v32 = vrot.slane %v3091_v9, 6 }
 0x291   : > { %9906 = vmatmul.mubr.bf16.gmra.mrb[8].mxu0 %v12461_v7  ;;  %v3688_v7 = vshrl.u32 %v12918_v8, 16 }
 0x292   : > { %9909 = vmatprep.mubr.bf16.mxu0 %v12471_v45  ;;  %v3681_v45 = vor.u32 %v3680_v21, %v3679_v17 }
 0x299   : > { %9910 = vmatmul.mubr.bf16.gmra.mrb[12].mxu0 %v12507_v31  ;;  %v3685_v31 = vor.u32 %v3684_v32, %v3683_v6  ;;  %v4791_v32 = vld [vmem:[#allocation2] sm:$0xf] }
 0x29a   : > { %9913 = vmatprep.mubr.bf16.mxu0 %v12509_v37  ;;  %v3690_v37 = vrot.slane %v3688_v7, 5  ;;  %v4237_v7 = vld [vmem:[#allocation2 + $0x30] sm:$0x1] }
 0x29b   : > { %v3687_v58 = vrot.slane %v3685_v31, 4 }
 0x2a1   : > { %9914 = vmatmul.mubr.bf16.gmra.mrb[20].mxu0 %v12545_v3  ;;  %v3691_v3 = vrot.slane %v3101_v35, 6 }
 0x2a2   : > { %9917 = vmatprep.mubr.bf16.mxu0 %v14658_v4 }
 0x2a3   : > { %v3692_v16 = vor.u32 %v3691_v3, %v3690_v37  ;;  %v4296_v3 = vld [vmem:[#allocation2 + $0x44] sm:$0x1] }
 0x2a9   : > { %9918 = vmatmul.mubr.bf16.gmra.mrb[24].mxu0 %v14659_v1  ;;  %v4241_v1 = vsel %vm13021_vm11, 0, %v4240_v55 }
 0x2aa   : > { %9921 = vmatprep.mubr.bf16.mxu0 %v12585_v29  ;;  %v3682_v29 = vrot.slane %v3681_v45, 4  ;;  %4242 = vst [vmem:[#allocation2 + $0x3c] sm:$0x1] %v4241_v1  ;;  %v4238_v45 = vsel %vm13021_vm11, 0, %v4237_v7 }
 0x2ab   : > { %4239 = vst [vmem:[#allocation2 + $0x30] sm:$0x1] %v4238_v45 }
 0x2ac   : > { %v3686_v46 = vsel %vm12263_vm8, %v3682_v29, %v3685_v31  ;;  %v11009_v29 = vld [vmem:[#allocation3 + $0x60] sm:$0xff]  }
 0x2ad   : > { %9941 = vmatprep.subr.bf16.mxu1 %v11009_v29 }
 0x2ae   : > { %9942 = vmatpush3.bf16.msra.mxu1 %v11009_v29 }
 0x2b1   : > { %9922 = vmatmul.mubr.bf16.gmra.mrb[28].mxu0 %v12612_v39  ;;  %v3693_v39 = vsel %vm12263_vm8, %v3687_v58, %v3692_v16  ;;  %v4297_v16 = vsel %vm13028_vm13, 0, %v4296_v3 }
 0x2b2   : > { %9925 = vmatprep.mubr.bf16.mxu0 %v12616_v2  ;;  %v8786_v9 = vcombine.low %v3686_v46, %v3693_v39  ;;  %4298 = vst [vmem:[#allocation2 + $0x44] sm:$0x1] %v4297_v16 }
 0x2b9   : > { %9926 = vmatmul.mubr.bf16.gmra.mrb[32].mxu0 %v12614_v60 }
 0x2ba   : > { %9929 = vmatprep.mubr.bf16.mxu0 %v12847_v49 }
 0x2bc   : > { %v9775_v2 = vpop.f32.mrb[68].mxu0 }
 0x2bd   : > { %v3030_v56 = vpop.f32.mrb[69].mxu0  ;;  %v4293_v2 = vld [vmem:[#allocation2 + $0x38] sm:$0x1] }
 0x2be   : > { %v13012_v25 = vadd.f32 %v3030_v56, %v2780_v24  ;;  %v9776_v8 = vpop.f32.mrb[70].mxu0  ;;  %v4281_v24 = vld [vmem:[#allocation2 + $0x8] sm:$0x1]  ;;  %v4294_v56 = vsel %vm13028_vm13, 0, %v4293_v2 }
 0x2bf   : > { %v3033_v35 = vpop.f32.mrb[71].mxu0  ;;  %v4282_v50 = vsel %vm13028_vm13, 0, %v4281_v24  ;;  %4295 = vst [vmem:[#allocation2 + $0x38] sm:$0x1] %v4294_v56 }
 0x2c0   : > { %v13014_v52 = vadd.f32 %v3033_v35, %v2781_v22  ;;  %v4437_v22 = vshrl.u32 %v8797_v61, 16  ;;  %4283 = vst [vmem:[#allocation2 + $0x8] sm:$0x1] %v4282_v50 }
 0x2c1   : > { %9930 = vmatmul.mubr.bf16.gmra.mrb[92].mxu0 %v8786_v9  ;;  %v11010_v9 = vld [vmem:[#allocation3 + $0x68] sm:$0xff]  }
 0x2c2   : > { %v13051_v54 = vrot.slane %v4437_v22, 7  ;;  %9943 = vmatprep.subr.bf16.mxu1 %v11010_v9 }
 0x2c3   : > { %9944 = vmatpush3.bf16.msra.mxu1 %v11010_v9  ;;  %v13103_v9 = vld [vmem:[#allocation3] sm:$0xff]  }
 0x2c4   : > { %v9795_v47 = vpop.f32.mrb[72].mxu0  ;;  %14669 = vst [vmem:[#allocation22_spill] sm:$0xff] %v13051_v54  ;;  %v14377_v58 = vrot.slane %v13051_v54, 4 }
 0x2c5   : > { %v13016_v60 = vadd.f32 %v9795_v47, %v3047_v14  ;;  %v3208_v49 = vpop.f32.mrb[73].mxu0  ;;  %v4440_v14 = vshll.u32 %v8797_v61, 16  ;;  %v4246_v47 = vld [vmem:[#allocation2 + $0x54] sm:$0x1] }
 0x2c6   : > { %v9796_v59 = vpop.f32.mrb[74].mxu0  ;;  %v11011_v49 = vld [vmem:[#allocation3 + $0x70] sm:$0xff]   ;;  %v4247_v51 = vsel %vm13021_vm11, 0, %v4246_v47 }
 0x2c7   : > { %v13018_v23 = vadd.f32 %v9796_v59, %v3048_v12  ;;  %v3211_v44 = vpop.f32.mrb[75].mxu0  ;;  %v4431_v12 = vrot.slane %v4429_v53, 7  ;;  %v4442_v6 = vor.u32 %v4440_v14, %v13051_v54  ;;  %v4797_v46 = vld [vmem:[#allocation2 + $0x8] sm:$0x1]  ;;  %4248 = vst [vmem:[#allocation2 + $0x54] sm:$0x1] %v4247_v51  ;;  %9945 = vmatprep.subr.bf16.mxu1 %v11011_v49 }
 0x2c8   : > { %v4798_v39 = vsel %vm13021_vm11, %v14377_v58, %v4797_v46  ;;  %9946 = vmatpush3.bf16.msra.mxu1 %v11011_v49  ;;  %v4252_v53 = vld [vmem:[#allocation2 + $0x6c] sm:$0x1]  ;;  %v4249_v14 = vld [vmem:[#allocation2 + $0x60] sm:$0x1] }
 0x2c9   : > { %v13060_v17 = vor.u32 %v4432_v19, %v4431_v12  ;;  %v4435_v21 = vrot.slane %v4431_v12, 4  ;;  %4799 = vst [vmem:[#allocation2 + $0x8] sm:$0x1] %v4798_v39  ;;  %9947 = vmatprep.subr.bf16.mxu1 %v11012_v57  ;;  %v4253_v19 = vsel %vm13021_vm11, 0, %v4252_v53  ;;  %v4250_v55 = vsel %vm13021_vm11, 0, %v4249_v14 }
 0x2ca   : > { %4254 = vst [vmem:[#allocation2 + $0x6c] sm:$0x1] %v4253_v19  ;;  %4251 = vst [vmem:[#allocation2 + $0x60] sm:$0x1] %v4250_v55  ;;  %v4308_v12 = vld [vmem:[#allocation2 + $0x74] sm:$0x1] }
 0x2cb   : > { %14672 = vst [vmem:[#allocation23_spill] sm:$0xff] %v13060_v17  ;;  %v4443_v31 = vsel %vm13054_vm1, %v4435_v21, %v4442_v6  ;;  %v4792_v37 = vsel %vm13047_vm0, %v13060_v17, %v4791_v32  ;;  %v4309_v1 = vsel %vm13028_vm13, 0, %v4308_v12  ;;  %v4305_v21 = vld [vmem:[#allocation2 + $0x68] sm:$0x1]  ;;  %v4314_v47 = vld [vmem:[#allocation2 + $0x8c] sm:$0x1] }
 0x2cc   : > { %4793 = vst [vmem:[#allocation2] sm:$0xf] %v4792_v37  ;;  %4794 = vst [vmem:[#allocation2 + $0x4] sm:$0xf] %v4443_v31  ;;  %9948 = vmatpush3.bf16.msra.mxu1 %v11012_v57  ;;  %v4306_v32 = vsel %vm13028_vm13, 0, %v4305_v21 }
 0x2cd   : > { %4915 = vst [vmem:[#allocation2 + $0xd0] sm:$0xf] %v4443_v31  ;;  %4310 = vst [vmem:[#allocation2 + $0x74] sm:$0x1] %v4309_v1  ;;  %9981 = vmatprep.subr.bf16.mxu1 %v13103_v9  ;;  %v13141_v19 = vld [vmem:[%s14194_s2] ss:$0 sm:$0xff] }
 0x2ce   : > { %4307 = vst [vmem:[#allocation2 + $0x68] sm:$0x1] %v4306_v32 }
 0x2d0   : > { %v4921_v38 = vld [vmem:[#allocation2 + $0x8] sm:$0x1] }
 0x2d1   : > { %v5009_v63 = vshll.u32 %v4921_v38, 16  ;;  %v4270_v38 = vld [vmem:[#allocation2 + $0xb4] sm:$0x1] }
 0x2d3   : > { %v4919_v8 = vld [vmem:[#allocation2] sm:$0xf]  ;;  %v4920_v35 = vld [vmem:[#allocation2 + $0x4] sm:$0xf]  ;;  %v5011_v26 = vrot.slane %v5009_v63, 5 }
 0x2d4   : > { %v4990_v59 = vshrl.u32 %v4919_v8, 16  ;;  %v4993_v44 = vshll.u32 %v4919_v8, 16  ;;  %v4999_v0 = vshll.u32 %v4920_v35, 16  ;;  %v5003_v42 = vshrl.u32 %v4920_v35, 16  ;;  %v4258_v8 = vld [vmem:[#allocation2 + $0x84] sm:$0x1] }
 0x2d5   : > { %v4259_v35 = vsel %vm13021_vm11, 0, %v4258_v8 }
 0x2d6   : > { %v4992_v41 = vrot.slane %v4990_v59, 4  ;;  %v4995_v11 = vrot.slane %v4993_v44, 5  ;;  %v5001_v27 = vrot.slane %v4999_v0, 5  ;;  %v5005_v62 = vrot.slane %v5003_v42, 4  ;;  %4260 = vst [vmem:[#allocation2 + $0x84] sm:$0x1] %v4259_v35 }
 0x2d7   : > { %v4264_v59 = vld [vmem:[#allocation2 + $0x9c] sm:$0x1]  ;;  %v4261_v0 = vld [vmem:[#allocation2 + $0x90] sm:$0x1]  ;;  %v4317_v42 = vld [vmem:[#allocation2 + $0x98] sm:$0x1] }
 0x2d8   : > { %v4996_v18 = vor.u32 %v4995_v11, %v4992_v41  ;;  %v5006_v36 = vor.u32 %v5005_v62, %v5001_v27  ;;  %v4265_v44 = vsel %vm13021_vm11, 0, %v4264_v59  ;;  %v4262_v51 = vsel %vm13021_vm11, 0, %v4261_v0  ;;  %v4323_v62 = vld [vmem:[#allocation2 + $0xb0] sm:$0x1] }
 0x2d9   : > { %4266 = vst [vmem:[#allocation2 + $0x9c] sm:$0x1] %v4265_v44  ;;  %4263 = vst [vmem:[#allocation2 + $0x90] sm:$0x1] %v4262_v51  ;;  %v4318_v5 = vsel %vm13028_vm13, 0, %v4317_v42  ;;  %v4271_v41 = vsel %vm13021_vm11, 0, %v4270_v38 }
 0x2da   : > { %v4997_v10 = vrot.slane %v4996_v18, 4  ;;  %v5007_v61 = vrot.slane %v5006_v36, 4  ;;  %4319 = vst [vmem:[#allocation2 + $0x98] sm:$0x1] %v4318_v5  ;;  %4272 = vst [vmem:[#allocation2 + $0xb4] sm:$0x1] %v4271_v41 }
 0x2db   : > { %v4268_v11 = vsel %vm13021_vm11, 0, %v4267_v15  ;;  %v4324_v34 = vsel %vm13028_vm13, 0, %v4323_v62  ;;  %v4273_v18 = vld [vmem:[#allocation2 + $0xc0] sm:$0x1]  ;;  %v4804_v42 = vld [vmem:[#allocation2 + $0x14] sm:$0x1] }
 0x2dc   : > { %v5002_v24 = vsel %vm11644_vm5, %v4997_v10, %v5001_v27  ;;  %v5012_v50 = vsel %vm11644_vm5, %v5007_v61, %v5011_v26  ;;  %v4327_v27 = vsel %vm13028_vm13, 0, %v4326_v20  ;;  %4269 = vst [vmem:[#allocation2 + $0xa8] sm:$0x1] %v4268_v11  ;;  %4325 = vst [vmem:[#allocation2 + $0xb0] sm:$0x1] %v4324_v34  ;;  %v4274_v10 = vsel %vm13021_vm11, 0, %v4273_v18 }
 0x2dd   : > { %v8832_v22 = vcombine.low %v5002_v24, %v5012_v50  ;;  %4328 = vst [vmem:[#allocation2 + $0xbc] sm:$0x1] %v4327_v27  ;;  %4275 = vst [vmem:[#allocation2 + $0xc0] sm:$0x1] %v4274_v10  ;;  %v4329_v50 = vld [vmem:[#allocation2 + $0xc8] sm:$0x1] }
 0x2de   : > { %v4330_v53 = vsel %vm13028_vm13, 0, %v4329_v50 }
 0x2df   : > { %9949 = vmatprep.mubr.bf16.mxu1 %v8832_v22  ;;  %4331 = vst [vmem:[#allocation2 + $0xc8] sm:$0x1] %v4330_v53  ;;  %v4814_v53 = vld [vmem:[#allocation2 + $0x24] sm:$0xf] }
 0x304   : > { %v9827_v6 = vpop.f32.mrb[76].mxu0 }
 0x305   : > { %v3336_v7 = vpop.f32.mrb[77].mxu0 }
 0x306   : > { %v3383_v45 = vadd.f32 %v3336_v7, %v13012_v25  ;;  %v9828_v31 = vpop.f32.mrb[78].mxu0  ;;  %v4255_v25 = vld [vmem:[#allocation2 + $0x78] sm:$0x1] }
 0x307   : > { %v3339_v37 = vpop.f32.mrb[79].mxu0 }
 0x308   : > { %v3384_v3 = vadd.f32 %v3339_v37, %v13014_v52  ;;  %v4256_v52 = vsel %vm13021_vm11, 0, %v4255_v25 }
 0x309   : > { %4257 = vst [vmem:[#allocation2 + $0x78] sm:$0x1] %v4256_v52 }
 0x30c   : > { %v9847_v29 = vpop.f32.mrb[80].mxu0 }
 0x30d   : > { %v3645_v16 = vadd.f32 %v9847_v29, %v13016_v60  ;;  %v3500_v46 = vpop.f32.mrb[81].mxu0  ;;  %v4315_v60 = vsel %vm13028_vm13, 0, %v4314_v47  ;;  %v4800_v47 = vld [vmem:[#allocation2 + $0xc] sm:$0xf] }
 0x30e   : > { %v9848_v39 = vpop.f32.mrb[82].mxu0  ;;  %4316 = vst [vmem:[#allocation2 + $0x8c] sm:$0x1] %v4315_v60 }
 0x30f   : > { %v3646_v2 = vadd.f32 %v9848_v39, %v13018_v23  ;;  %v3503_v56 = vpop.f32.mrb[83].mxu0  ;;  %v4311_v23 = vld [vmem:[#allocation2 + $0x80] sm:$0x1] }
 0x310   : > { %v4312_v49 = vsel %vm13028_vm13, 0, %v4311_v23 }
 0x311   : > { %4313 = vst [vmem:[#allocation2 + $0x80] sm:$0x1] %v4312_v49 }
 0x34c   : > { %v9879_v57 = vpop.f32.mrb[84].mxu0 }
 0x34d   : > { %v3628_v63 = vpop.f32.mrb[85].mxu0 }
 0x34e   : > { %v13130_v36 = vadd.f32 %v3628_v63, %v3383_v45  ;;  %v9880_v26 = vpop.f32.mrb[86].mxu0 }
 0x34f   : > { %v3631_v61 = vpop.f32.mrb[87].mxu0 }
 0x350   : > { %v13134_v24 = vadd.f32 %v3631_v61, %v3384_v3 }
 0x354   : > { %v9899_v22 = vpop.f32.mrb[88].mxu0 }
 0x355   : > { %v3942_v14 = vadd.f32 %v9899_v22, %v3645_v16  ;;  %v3797_v55 = vpop.f32.mrb[89].mxu0 }
 0x356   : > { %v9900_v12 = vpop.f32.mrb[90].mxu0 }
 0x357   : > { %v3985_v1 = vadd.f32 %v13141_v19, %v3942_v14  ;;  %v3943_v21 = vadd.f32 %v9900_v12, %v3646_v2  ;;  %v3800_v6 = vpop.f32.mrb[91].mxu0 }
 0x359   : > { %v4021_v32 = vmax.f32 %v3985_v1, 0.0  ;;  %v3986_v7 = vadd.f32 %v13141_v19, %v3943_v21 }
 0x35b   : > { %v8982_v45 = vpack.c.bf16 %v4021_v32, %v4021_v32  ;;  %v4022_v31 = vmax.f32 %v3986_v7, 0.0  ;;  %v4807_v32 = vld [vmem:[#allocation2 + $0x18] sm:$0xf] }
 0x35c   : > { %v9903_v37 = vpop.f32.mrb[4].mxu0 }
 0x35d   : > { %v4446_v3 = vshrl.u32 %v8982_v45, 16  ;;  %v8983_v29 = vpack.c.bf16 %v4022_v31, %v4022_v31  ;;  %v3989_v46 = vadd.f32 %v9903_v37, %v13141_v19  ;;  %v3813_v39 = vpop.f32.mrb[5].mxu0  ;;  %v4449_v35 = vshll.u32 %v8982_v45, 16 }
 0x35e   : > { %v3987_v56 = vadd.f32 %v13141_v19, %v3813_v39  ;;  %v9904_v16 = vpop.f32.mrb[6].mxu0 }
 0x35f   : > { %v4448_v8 = vrot.slane %v4446_v3, 7  ;;  %v4454_v25 = vshrl.u32 %v8983_v29, 16  ;;  %v4025_v52 = vmax.f32 %v3989_v46, 0.0  ;;  %v3816_v2 = vpop.f32.mrb[7].mxu0  ;;  %v3990_v23 = vadd.f32 %v9904_v16, %v13141_v19 }
 0x360   : > { %v4023_v60 = vmax.f32 %v3987_v56, 0.0  ;;  %v3988_v49 = vadd.f32 %v13141_v19, %v3816_v2  ;;  %v4457_v0 = vshll.u32 %v8983_v29, 16  ;;  %v4818_v56 = vld [vmem:[#allocation2 + $0x2c] sm:$0x1] }
 0x361   : > { %v4451_v59 = vor.u32 %v4449_v35, %v4448_v8  ;;  %v4456_v44 = vrot.slane %v4454_v25, 7  ;;  %v8986_v51 = vpack.c.bf16 %v4025_v52, %v4025_v52  ;;  %v4452_v43 = vrot.slane %v4448_v8, 4 }
 0x362   : > { %v8984_v13 = vpack.c.bf16 %v4023_v60, %v4023_v60  ;;  %v4026_v5 = vmax.f32 %v3990_v23, 0.0  ;;  %v4024_v38 = vmax.f32 %v3988_v49, 0.0 }
 0x363   : > { %v4801_v41 = vsel %vm13047_vm0, %v4451_v59, %v4800_v47  ;;  %v4459_v15 = vor.u32 %v4457_v0, %v4456_v44  ;;  %v4461_v20 = vrot.slane %v4456_v44, 4  ;;  %v4480_v11 = vshrl.u32 %v8986_v51, 16  ;;  %v4811_v47 = vld [vmem:[#allocation2 + $0x20] sm:$0x1] }
 0x364   : > { %4802 = vst [vmem:[#allocation2 + $0xc] sm:$0xf] %v4801_v41  ;;  %v4483_v27 = vshll.u32 %v8986_v51, 16  ;;  %v4463_v62 = vshrl.u32 %v8984_v13, 16  ;;  %v4466_v34 = vshll.u32 %v8984_v13, 16  ;;  %v8987_v57 = vpack.c.bf16 %v4026_v5, %v4026_v5  ;;  %v9907_v63 = vpop.f32.mrb[8].mxu0 }
 0x365   : > { %v4460_v18 = vsel %vm13054_vm1, %v4452_v43, %v4459_v15  ;;  %v4805_v26 = vsel %vm13021_vm11, %v4461_v20, %v4804_v42  ;;  %v4482_v10 = vrot.slane %v4480_v11, 7  ;;  %v8985_v61 = vpack.c.bf16 %v4024_v38, %v4024_v38  ;;  %v3829_v50 = vpop.f32.mrb[9].mxu0 }
 0x366   : > { %4803 = vst [vmem:[#allocation2 + $0x10] sm:$0xf] %v4460_v18  ;;  %4806 = vst [vmem:[#allocation2 + $0x14] sm:$0x1] %v4805_v26  ;;  %v4465_v22 = vrot.slane %v4463_v62, 7  ;;  %v4488_v14 = vshrl.u32 %v8987_v57, 16  ;;  %v3993_v12 = vadd.f32 %v9907_v63, %v13141_v19  ;;  %v3991_v8 = vadd.f32 %v13141_v19, %v3829_v50 }
 0x367   : > { %v4491_v55 = vshll.u32 %v8987_v57, 16  ;;  %v9908_v1 = vpop.f32.mrb[10].mxu0  ;;  %v4485_v21 = vor.u32 %v4483_v27, %v4482_v10  ;;  %v4486_v6 = vrot.slane %v4482_v10, 4  ;;  %v4471_v7 = vshrl.u32 %v8985_v61, 16  ;;  %v4828_v27 = vld [vmem:[#allocation2 + $0x3c] sm:$0xf] }
 0x368   : > { %v4474_v45 = vshll.u32 %v8985_v61, 16  ;;  %v3832_v31 = vpop.f32.mrb[11].mxu0  ;;  %v4468_v37 = vor.u32 %v4466_v34, %v4465_v22  ;;  %v4469_v3 = vrot.slane %v4465_v22, 4  ;;  %v4490_v29 = vrot.slane %v4488_v14, 7 }
 0x369   : > { %v4029_v46 = vmax.f32 %v3993_v12, 0.0  ;;  %v4815_v39 = vsel %vm13047_vm0, %v4485_v21, %v4814_v53  ;;  %v4473_v16 = vrot.slane %v4471_v7, 7  ;;  %v3994_v35 = vadd.f32 %v9908_v1, %v13141_v19  ;;  %v4821_v7 = vld [vmem:[#allocation2 + $0x30] sm:$0xf] }
 0x36a   : > { %4816 = vst [vmem:[#allocation2 + $0x24] sm:$0xf] %v4815_v39  ;;  %v4808_v25 = vsel %vm13047_vm0, %v4468_v37, %v4807_v32  ;;  %v4493_v52 = vor.u32 %v4491_v55, %v4490_v29  ;;  %v4495_v2 = vrot.slane %v4490_v29, 4  ;;  %v4027_v59 = vmax.f32 %v3991_v8, 0.0 }
 0x36b   : > { %v8990_v60 = vpack.c.bf16 %v4029_v46, %v4029_v46  ;;  %4809 = vst [vmem:[#allocation2 + $0x18] sm:$0xf] %v4808_v25  ;;  %v4476_v23 = vor.u32 %v4474_v45, %v4473_v16  ;;  %v4478_v49 = vrot.slane %v4473_v16, 4  ;;  %v4030_v44 = vmax.f32 %v3994_v35, 0.0  ;;  %v4832_v45 = vld [vmem:[#allocation2 + $0x44] sm:$0x1] }
 0x36c   : > { %v4494_v0 = vsel %vm13054_vm1, %v4486_v6, %v4493_v52  ;;  %v4819_v51 = vsel %vm13021_vm11, %v4495_v2, %v4818_v56  ;;  %v9911_v13 = vpop.f32.mrb[12].mxu0  ;;  %v8988_v41 = vpack.c.bf16 %v4027_v59, %v4027_v59  ;;  %v3992_v62 = vadd.f32 %v13141_v19, %v3832_v31 }
 0x36d   : > { %v4514_v43 = vshrl.u32 %v8990_v60, 16  ;;  %v4517_v42 = vshll.u32 %v8990_v60, 16  ;;  %4817 = vst [vmem:[#allocation2 + $0x28] sm:$0xf] %v4494_v0  ;;  %4820 = vst [vmem:[#allocation2 + $0x2c] sm:$0x1] %v4819_v51  ;;  %v4477_v5 = vsel %vm13054_vm1, %v4469_v3, %v4476_v23  ;;  %v4812_v38 = vsel %vm13021_vm11, %v4478_v49, %v4811_v47 }
 0x36e   : > { %v8991_v15 = vpack.c.bf16 %v4030_v44, %v4030_v44  ;;  %v3845_v20 = vpop.f32.mrb[13].mxu0  ;;  %4810 = vst [vmem:[#allocation2 + $0x1c] sm:$0xf] %v4477_v5  ;;  %4813 = vst [vmem:[#allocation2 + $0x20] sm:$0x1] %v4812_v38  ;;  %v3997_v34 = vadd.f32 %v9911_v13, %v13141_v19  ;;  %v4497_v18 = vshrl.u32 %v8988_v41, 16 }
 0x36f   : > { %v4516_v11 = vrot.slane %v4514_v43, 7  ;;  %v3995_v57 = vadd.f32 %v13141_v19, %v3845_v20  ;;  %v9912_v63 = vpop.f32.mrb[14].mxu0  ;;  %v4500_v26 = vshll.u32 %v8988_v41, 16  ;;  %v4028_v14 = vmax.f32 %v3992_v62, 0.0  ;;  %v4825_v23 = vld [vmem:[#allocation2 + $0x38] sm:$0x1] }
 0x370   : > { %v4522_v10 = vshrl.u32 %v8991_v15, 16  ;;  %v4525_v61 = vshll.u32 %v8991_v15, 16  ;;  %v3848_v50 = vpop.f32.mrb[15].mxu0  ;;  %v4033_v55 = vmax.f32 %v3997_v34, 0.0  ;;  %v4499_v12 = vrot.slane %v4497_v18, 7  ;;  %v14673_v41 = vld [vmem:[#allocation28_spill] sm:$0xff] }
 0x371   : > { %v4519_v53 = vor.u32 %v4517_v42, %v4516_v11  ;;  %v4520_v22 = vrot.slane %v4516_v11, 4  ;;  %v4031_v21 = vmax.f32 %v3995_v57, 0.0  ;;  %v3998_v6 = vadd.f32 %v9912_v63, %v13141_v19  ;;  %v4842_v13 = vld [vmem:[#allocation2 + $0x54] sm:$0xf]  ;;  %v14674_v20 = vld [vmem:[#allocation31_spill] sm:$0xff] }
 0x372   : > { %v4524_v1 = vrot.slane %v4522_v10, 7  ;;  %v8989_v31 = vpack.c.bf16 %v4028_v14, %v4028_v14  ;;  %v8994_v37 = vpack.c.bf16 %v4033_v55, %v4033_v55  ;;  %v3996_v3 = vadd.f32 %v13141_v19, %v3848_v50  ;;  %v4835_v14 = vld [vmem:[#allocation2 + $0x48] sm:$0xf]  ;;  %v13640_v48 = vld [vmem:[#allocation2 + $0x18] sm:$0xf] }
 0x373   : > { %v4829_v32 = vsel %vm13047_vm0, %v4519_v53, %v4828_v27  ;;  %v4502_v29 = vor.u32 %v4500_v26, %v4499_v12  ;;  %v4503_v46 = vrot.slane %v4499_v12, 4  ;;  %v8992_v49 = vpack.c.bf16 %v4031_v21, %v4031_v21 }
 0x374   : > { %4830 = vst [vmem:[#allocation2 + $0x3c] sm:$0xf] %v4829_v32  ;;  %v4527_v39 = vor.u32 %v4525_v61, %v4524_v1  ;;  %v4529_v56 = vrot.slane %v4524_v1, 4  ;;  %v4505_v16 = vshrl.u32 %v8989_v31, 16  ;;  %v4508_v8 = vshll.u32 %v8989_v31, 16  ;;  %v9915_v52 = vpop.f32.mrb[20].mxu0 }
 0x375   : > { %v4548_v35 = vshrl.u32 %v8994_v37, 16  ;;  %v4551_v25 = vshll.u32 %v8994_v37, 16  ;;  %v4822_v2 = vsel %vm13047_vm0, %v4502_v29, %v4821_v7  ;;  %v3861_v59 = vpop.f32.mrb[21].mxu0  ;;  %v4034_v51 = vmax.f32 %v3998_v6, 0.0  ;;  %v4922_v32 = vld [vmem:[#allocation2 + $0xc] sm:$0xf] }
 0x376   : > { %v4528_v47 = vsel %vm13054_vm1, %v4520_v22, %v4527_v39  ;;  %v4833_v60 = vsel %vm13021_vm11, %v4529_v56, %v4832_v45  ;;  %4823 = vst [vmem:[#allocation2 + $0x30] sm:$0xf] %v4822_v2  ;;  %v4507_v44 = vrot.slane %v4505_v16, 7  ;;  %v4032_v43 = vmax.f32 %v3996_v3, 0.0  ;;  %v9916_v42 = vpop.f32.mrb[22].mxu0  ;;  %v14675_v39 = vld [vmem:[#allocation32_spill] sm:$0xff] }
 0x377   : > { %4831 = vst [vmem:[#allocation2 + $0x40] sm:$0xf] %v4528_v47  ;;  %4834 = vst [vmem:[#allocation2 + $0x44] sm:$0x1] %v4833_v60  ;;  %v4550_v0 = vrot.slane %v4548_v35, 7  ;;  %v4531_v5 = vshrl.u32 %v8992_v49, 16  ;;  %v10381_v15 = vadd.f32 %v9915_v52, %v14673_v41  ;;  %v10382_v11 = vadd.f32 %v3861_v59, %v14674_v20 }
 0x378   : > { %v4534_v38 = vshll.u32 %v8992_v49, 16  ;;  %v3864_v27 = vpop.f32.mrb[23].mxu0  ;;  %v4510_v62 = vor.u32 %v4508_v8, %v4507_v44  ;;  %v4512_v34 = vrot.slane %v4507_v44, 4  ;;  %v8995_v26 = vpack.c.bf16 %v4034_v51, %v4034_v51  ;;  %v14676_v16 = vld [vmem:[#allocation33_spill] sm:$0xff]  ;;  %v4839_v44 = vld [vmem:[#allocation2 + $0x50] sm:$0x1] }
 0x379   : > { %v4553_v57 = vor.u32 %v4551_v25, %v4550_v0  ;;  %v4554_v63 = vrot.slane %v4550_v0, 4  ;;  %v4533_v18 = vrot.slane %v4531_v5, 7  ;;  %v8993_v10 = vpack.c.bf16 %v4032_v43, %v4032_v43  ;;  %v4846_v25 = vld [vmem:[#allocation2 + $0x5c] sm:$0x1] }
 0x37a   : > { %v4001_v61 = vadd.f32 %v10381_v15, %v13141_v19  ;;  %v4511_v50 = vsel %vm13054_vm1, %v4503_v46, %v4510_v62  ;;  %v4826_v53 = vsel %vm13021_vm11, %v4512_v34, %v4825_v23  ;;  %v3999_v55 = vadd.f32 %v10382_v11, %v13141_v19 }
 0x37b   : > { %v4843_v22 = vsel %vm13047_vm0, %v4553_v57, %v4842_v13  ;;  %4824 = vst [vmem:[#allocation2 + $0x34] sm:$0xf] %v4511_v50  ;;  %4827 = vst [vmem:[#allocation2 + $0x38] sm:$0x1] %v4826_v53  ;;  %v4536_v12 = vor.u32 %v4534_v38, %v4533_v18  ;;  %v4537_v1 = vrot.slane %v4533_v18, 4  ;;  %v4556_v21 = vshrl.u32 %v8995_v26, 16 }
 0x37c   : > { %4844 = vst [vmem:[#allocation2 + $0x54] sm:$0xf] %v4843_v22  ;;  %v4559_v6 = vshll.u32 %v8995_v26, 16  ;;  %v4539_v7 = vshrl.u32 %v8993_v10, 16  ;;  %v4542_v45 = vshll.u32 %v8993_v10, 16  ;;  %v4037_v31 = vmax.f32 %v4001_v61, 0.0 }
 0x37d   : > { %v4035_v37 = vmax.f32 %v3999_v55, 0.0  ;;  %v13193_v3 = vpop.f32.mrb[24].mxu0  ;;  %v4836_v29 = vsel %vm13047_vm0, %v4536_v12, %v4835_v14  ;;  %v4558_v46 = vrot.slane %v4556_v21, 7  ;;  %v10383_v56 = vadd.f32 %v9916_v42, %v14675_v39  ;;  %v4856_v26 = vld [vmem:[#allocation2 + $0x6c] sm:$0xf] }
 0x37e   : > { %v10384_v8 = vadd.f32 %v3864_v27, %v14676_v16  ;;  %v13199_v35 = vpop.f32.mrb[25].mxu0  ;;  %4837 = vst [vmem:[#allocation2 + $0x48] sm:$0xf] %v4836_v29  ;;  %v4541_v52 = vrot.slane %v4539_v7, 7  ;;  %v8998_v2 = vpack.c.bf16 %v4037_v31, %v4037_v31  ;;  %v5014_v60 = vshrl.u32 %v4922_v32, 16 }
 0x37f   : > { %v8996_v47 = vpack.c.bf16 %v4035_v37, %v4035_v37  ;;  %v9920_v23 = vpop.f32.mrb[26].mxu0  ;;  %v4561_v49 = vor.u32 %v4559_v6, %v4558_v46  ;;  %v4563_v59 = vrot.slane %v4558_v46, 4  ;;  %v4002_v0 = vadd.f32 %v10383_v56, %v13141_v19  ;;  %v4923_v27 = vld [vmem:[#allocation2 + $0x10] sm:$0xf]  ;;  %v4849_v14 = vld [vmem:[#allocation2 + $0x60] sm:$0xf] }
 0x380   : > { %v4000_v51 = vadd.f32 %v10384_v8, %v13141_v19  ;;  %v13203_v43 = vpop.f32.mrb[27].mxu0  ;;  %v4544_v42 = vor.u32 %v4542_v45, %v4541_v52  ;;  %v4546_v13 = vrot.slane %v4541_v52, 4  ;;  %v4582_v5 = vshrl.u32 %v8998_v2, 16  ;;  %v4924_v45 = vld [vmem:[#allocation2 + $0x14] sm:$0x1] }
 0x381   : > { %v4585_v38 = vshll.u32 %v8998_v2, 16  ;;  %v4562_v41 = vsel %vm13054_vm1, %v4554_v63, %v4561_v49  ;;  %v4847_v15 = vsel %vm13021_vm11, %v4563_v59, %v4846_v25  ;;  %v4565_v20 = vshrl.u32 %v8996_v47, 16  ;;  %v14677_v59 = vld [vmem:[#allocation36_spill] sm:$0xff] }
 0x382   : > { %v4568_v11 = vshll.u32 %v8996_v47, 16  ;;  %4845 = vst [vmem:[#allocation2 + $0x58] sm:$0xf] %v4562_v41  ;;  %4848 = vst [vmem:[#allocation2 + $0x5c] sm:$0x1] %v4847_v15  ;;  %v4545_v62 = vsel %vm13054_vm1, %v4537_v1, %v4544_v42  ;;  %v4840_v34 = vsel %vm13021_vm11, %v4546_v13, %v4839_v44  ;;  %v4584_v57 = vrot.slane %v4582_v5, 7 }
 0x383   : > { %v4038_v18 = vmax.f32 %v4002_v0, 0.0  ;;  %4838 = vst [vmem:[#allocation2 + $0x4c] sm:$0xf] %v4545_v62  ;;  %4841 = vst [vmem:[#allocation2 + $0x50] sm:$0x1] %v4840_v34  ;;  %v4567_v63 = vrot.slane %v4565_v20, 7  ;;  %v10385_v44 = vadd.f32 %v13193_v3, %v14677_v59 }
 0x384   : > { %v4036_v10 = vmax.f32 %v4000_v51, 0.0  ;;  %v5016_v61 = vrot.slane %v5014_v60, 4  ;;  %v5017_v50 = vshll.u32 %v4922_v32, 16  ;;  %v4587_v53 = vor.u32 %v4585_v38, %v4584_v57  ;;  %v13213_v21 = vpop.f32.mrb[28].mxu0  ;;  %v4860_v0 = vld [vmem:[#allocation2 + $0x74] sm:$0x1] }
 0x385   : > { %v4588_v22 = vrot.slane %v4584_v57, 4  ;;  %v8999_v55 = vpack.c.bf16 %v4038_v18, %v4038_v18  ;;  %v5023_v12 = vshll.u32 %v4923_v27, 16  ;;  %v4570_v1 = vor.u32 %v4568_v11, %v4567_v63  ;;  %v13215_v37 = vpop.f32.mrb[29].mxu0  ;;  %v14678_v13 = vld [vmem:[#allocation37_spill] sm:$0xff]  ;;  %v14679_v38 = vld [vmem:[#allocation40_spill] sm:$0xff] }
 0x386   : > { %v4571_v6 = vrot.slane %v4567_v63, 4  ;;  %v8997_v7 = vpack.c.bf16 %v4036_v10, %v4036_v10  ;;  %v5019_v31 = vrot.slane %v5017_v50, 5  ;;  %v4857_v29 = vsel %vm13047_vm0, %v4587_v53, %v4856_v26  ;;  %v13219_v56 = vpop.f32.mrb[30].mxu0  ;;  %v4853_v11 = vld [vmem:[#allocation2 + $0x68] sm:$0x1] }
 0x387   : > { %v4590_v46 = vshrl.u32 %v8999_v55, 16  ;;  %v4593_v39 = vshll.u32 %v8999_v55, 16  ;;  %v5025_v32 = vrot.slane %v5023_v12, 5  ;;  %4858 = vst [vmem:[#allocation2 + $0x6c] sm:$0xf] %v4857_v29  ;;  %v4850_v16 = vsel %vm13047_vm0, %v4570_v1, %v4849_v14  ;;  %v13223_v2 = vpop.f32.mrb[31].mxu0 }
 0x388   : > { %v4573_v8 = vshrl.u32 %v8997_v7, 16  ;;  %v4576_v25 = vshll.u32 %v8997_v7, 16  ;;  %v5020_v52 = vor.u32 %v5019_v31, %v5016_v61  ;;  %4851 = vst [vmem:[#allocation2 + $0x60] sm:$0xf] %v4850_v16  ;;  %v5027_v60 = vshrl.u32 %v4923_v27, 16 }
 0x389   : > { %v4592_v47 = vrot.slane %v4590_v46, 7  ;;  %v5033_v49 = vshll.u32 %v4924_v45, 16  ;;  %v10386_v5 = vadd.f32 %v13199_v35, %v14678_v13  ;;  %v10387_v41 = vadd.f32 %v9920_v23, %v14679_v38  ;;  %v4925_v26 = vld [vmem:[#allocation2 + $0x18] sm:$0xf]  ;;  %v13238_v61 = vld [vmem:[#allocation2 + $0x1c] sm:$0xf] }
 0x38a   : > { %v4575_v51 = vrot.slane %v4573_v8, 7  ;;  %v5021_v42 = vrot.slane %v5020_v52, 4  ;;  %v5029_v62 = vrot.slane %v5027_v60, 4  ;;  %v4005_v3 = vadd.f32 %v10385_v44, %v13141_v19  ;;  %v14680_v45 = vld [vmem:[#allocation43_spill] sm:$0xff]  ;;  %v4927_v38 = vld [vmem:[#allocation2 + $0x20] sm:$0x1] }
 0x38b   : > { %v4595_v15 = vor.u32 %v4593_v39, %v4592_v47  ;;  %v4597_v20 = vrot.slane %v4592_v47, 4  ;;  %v5035_v34 = vrot.slane %v5033_v49, 5  ;;  %v4003_v10 = vadd.f32 %v10386_v5, %v13141_v19 }
 0x38c   : > { %v4578_v57 = vor.u32 %v4576_v25, %v4575_v51  ;;  %v4580_v18 = vrot.slane %v4575_v51, 4  ;;  %v5026_v27 = vsel %vm11644_vm5, %v5021_v42, %v5025_v32  ;;  %v5030_v23 = vor.u32 %v5029_v62, %v5025_v32  ;;  %v13240_v50 = vpop.f32.mrb[32].mxu0  ;;  %v4870_v51 = vld [vmem:[#allocation2 + $0x84] sm:$0xf] }
 0x38d   : > { %v4596_v63 = vsel %vm13054_vm1, %v4588_v22, %v4595_v15  ;;  %v4861_v35 = vsel %vm13021_vm11, %v4597_v20, %v4860_v0  ;;  %v4041_v55 = vmax.f32 %v4005_v3, 0.0  ;;  %v4006_v22 = vadd.f32 %v10387_v41, %v13141_v19  ;;  %v13247_v12 = vpop.f32.mrb[33].mxu0  ;;  %v11014_v0 = vld [vmem:[#allocation3 + $0x8] sm:$0xff]   ;;  %v4863_v20 = vld [vmem:[#allocation2 + $0x78] sm:$0xf] }
 0x38e   : > { %4859 = vst [vmem:[#allocation2 + $0x70] sm:$0xf] %v4596_v63  ;;  %4862 = vst [vmem:[#allocation2 + $0x74] sm:$0x1] %v4861_v35  ;;  %v4579_v53 = vsel %vm13054_vm1, %v4571_v6, %v4578_v57  ;;  %v4854_v14 = vsel %vm13021_vm11, %v4580_v18, %v4853_v11  ;;  %v5031_v1 = vrot.slane %v5030_v23, 4  ;;  %v4039_v7 = vmax.f32 %v4003_v10, 0.0 }
 0x38f   : > { %4852 = vst [vmem:[#allocation2 + $0x64] sm:$0xf] %v4579_v53  ;;  %4855 = vst [vmem:[#allocation2 + $0x68] sm:$0x1] %v4854_v14  ;;  %v10388_v31 = vadd.f32 %v13203_v43, %v14680_v45  ;;  %v5038_v29 = vshrl.u32 %v4925_v26, 16  ;;  %v13251_v46 = vpop.f32.mrb[34].mxu0  ;;  %v9002_v39 = vpack.c.bf16 %v4041_v55, %v4041_v55 }
 0x390   : > { %v4042_v6 = vmax.f32 %v4006_v22, 0.0  ;;  %v5041_v32 = vshll.u32 %v4925_v26, 16  ;;  %v5047_v16 = vshll.u32 %v13238_v61, 16  ;;  %v13254_v8 = vpop.f32.mrb[35].mxu0  ;;  %v5036_v25 = vsel %vm11644_vm5, %v5031_v1, %v5035_v34  ;;  %v4874_v18 = vld [vmem:[#allocation2 + $0x8c] sm:$0x1] }
 0x391   : > { %v9000_v52 = vpack.c.bf16 %v4039_v7, %v4039_v7  ;;  %v4004_v47 = vadd.f32 %v10388_v31, %v13141_v19  ;;  %v5040_v60 = vrot.slane %v5038_v29, 4  ;;  %v13259_v49 = vcombine.low %v5026_v27, %v5036_v25  ;;  %v11015_v14 = vld [vmem:[#allocation3 + $0x10] sm:$0xff]  }
 0x392   : > { %v4616_v43 = vshrl.u32 %v9002_v39, 16  ;;  %v4619_v59 = vshll.u32 %v9002_v39, 16  ;;  %v9003_v44 = vpack.c.bf16 %v4042_v6, %v4042_v6  ;;  %v5043_v41 = vrot.slane %v5041_v32, 5  ;;  %v13272_v32 = vld [vmem:[#allocation2 + $0x28] sm:$0xf] }
 0x393   : > { %14681 = vst [vmem:[#allocation25_spill] sm:$0xff] %v13259_v49  ;;  %v4599_v42 = vshrl.u32 %v9000_v52, 16  ;;  %v4602_v13 = vshll.u32 %v9000_v52, 16  ;;  %v4040_v5 = vmax.f32 %v4004_v47, 0.0  ;;  %9950 = vmatmul.mubr.bf16.vlgmr.msra.gmra.mrb[20].mxu1 %v13259_v49  ;;  %v13262_v34 = vrot.slane %v5047_v16, 5 }
 0x394   : > { %v4618_v15 = vrot.slane %v4616_v43, 7  ;;  %v4624_v11 = vshrl.u32 %v9003_v44, 16  ;;  %v4627_v62 = vshll.u32 %v9003_v44, 16  ;;  %9982 = vmatpush3.bf16.msra.mxu1 %v13103_v9  ;;  %v5044_v3 = vor.u32 %v5043_v41, %v5040_v60  ;;  %v9931_v63 = vpop.f32.mrb[92].mxu0  ;;  %v13268_v9 = vld [vmem:[#allocation2 + $0x24] sm:$0xf] }
 0x395   : > { %v4601_v57 = vrot.slane %v4599_v42, 7  ;;  %v9001_v27 = vpack.c.bf16 %v4040_v5, %v4040_v5  ;;  %v5051_v26 = vshrl.u32 %v13238_v61, 16  ;;  %v5057_v53 = vshll.u32 %v4927_v38, 16  ;;  %9983 = vmatprep.subr.bf16.mxu1 %v11014_v0  ;;  %v13266_v55 = vpop.f32.mrb[93].mxu0  ;;  %v4930_v43 = vld [vmem:[#allocation2 + $0x2c] sm:$0x1] }
 0x396   : > { %v4621_v35 = vor.u32 %v4619_v59, %v4618_v15  ;;  %v4622_v23 = vrot.slane %v4618_v15, 4  ;;  %v4626_v10 = vrot.slane %v4624_v11, 7  ;;  %v9932_v31 = vpop.f32.mrb[94].mxu0  ;;  %v5045_v6 = vrot.slane %v5044_v3, 4  ;;  %v11016_v5 = vld [vmem:[#allocation3 + $0x18] sm:$0xff]  }
 0x397   : > { %v4604_v22 = vor.u32 %v4602_v13, %v4601_v57  ;;  %v4605_v1 = vrot.slane %v4601_v57, 4  ;;  %v4607_v7 = vshrl.u32 %v9001_v27, 16  ;;  %v4610_v45 = vshll.u32 %v9001_v27, 16  ;;  %v13274_v16 = vpop.f32.mrb[95].mxu0 }
 0x398   : > { %v4871_v29 = vsel %vm13047_vm0, %v4621_v35, %v4870_v51  ;;  %v4629_v61 = vor.u32 %v4627_v62, %v4626_v10  ;;  %v4631_v39 = vrot.slane %v4626_v10, 4  ;;  %v5053_v47 = vrot.slane %v5051_v26, 4  ;;  %9984 = vmatpush3.bf16.msra.mxu1 %v11014_v0  ;;  %v4867_v51 = vld [vmem:[#allocation2 + $0x80] sm:$0x1] }
 0x399   : > { %4872 = vst [vmem:[#allocation2 + $0x84] sm:$0xf] %v4871_v29  ;;  %v4864_v25 = vsel %vm13047_vm0, %v4604_v22, %v4863_v20  ;;  %v4609_v52 = vrot.slane %v4607_v7, 7  ;;  %v5059_v60 = vrot.slane %v5057_v53, 5  ;;  %v5050_v42 = vsel %vm11644_vm5, %v5045_v6, %v13262_v34  ;;  %9985 = vmatprep.subr.bf16.mxu1 %v11015_v14  ;;  %v13296_v53 = vld [vmem:[#allocation2 + $0x30] sm:$0xf] }
 0x39a   : > { %4865 = vst [vmem:[#allocation2 + $0x78] sm:$0xf] %v4864_v25  ;;  %v4630_v59 = vsel %vm13054_vm1, %v4622_v23, %v4629_v61  ;;  %v4875_v44 = vsel %vm13021_vm11, %v4631_v39, %v4874_v18  ;;  %v5062_v13 = vshrl.u32 %v13268_v9, 16  ;;  %v5054_v41 = vor.u32 %v5053_v47, %v13262_v34  ;;  %v14682_v23 = vld [vmem:[#allocation44_spill] sm:$0xff]  ;;  %v11017_v22 = vld [vmem:[#allocation3 + $0x20] sm:$0xff]  }
 0x39b   : > { %4873 = vst [vmem:[#allocation2 + $0x88] sm:$0xf] %v4630_v59  ;;  %4876 = vst [vmem:[#allocation2 + $0x8c] sm:$0x1] %v4875_v44  ;;  %v4612_v38 = vor.u32 %v4610_v45, %v4609_v52  ;;  %v4614_v0 = vrot.slane %v4609_v52, 4  ;;  %v5065_v15 = vshll.u32 %v13268_v9, 16  ;;  %v10389_v10 = vadd.f32 %v13213_v21, %v14682_v23 }
 0x39c   : > { %v5064_v20 = vrot.slane %v5062_v13, 4  ;;  %v5071_v11 = vshll.u32 %v13272_v32, 16  ;;  %v5075_v62 = vshrl.u32 %v13272_v32, 16  ;;  %v5081_v57 = vshll.u32 %v4930_v43, 16  ;;  %9986 = vmatpush3.bf16.msra.mxu1 %v11015_v14  ;;  %v14683_v45 = vld [vmem:[#allocation45_spill] sm:$0xff]  ;;  %v14684_v14 = vld [vmem:[#allocation48_spill] sm:$0xff] }
 0x39d   : > { %v4613_v18 = vsel %vm13054_vm1, %v4605_v1, %v4612_v38  ;;  %v4868_v27 = vsel %vm13021_vm11, %v4614_v0, %v4867_v51  ;;  %v5055_v3 = vrot.slane %v5054_v41, 4  ;;  %v5067_v26 = vrot.slane %v5065_v15, 5  ;;  %9987 = vmatprep.subr.bf16.mxu1 %v11016_v5  ;;  %v14686_v21 = vld [vmem:[#allocation49_spill] sm:$0xff]  ;;  %v13314_v44 = vld [vmem:[#allocation2 + $0x34] sm:$0xf] }
 0x39e   : > { %4866 = vst [vmem:[#allocation2 + $0x7c] sm:$0xf] %v4613_v18  ;;  %4869 = vst [vmem:[#allocation2 + $0x80] sm:$0x1] %v4868_v27  ;;  %v5073_v34 = vrot.slane %v5071_v11, 5  ;;  %v5077_v63 = vrot.slane %v5075_v62, 4  ;;  %v10390_v31 = vadd.f32 %v13215_v37, %v14683_v45  ;;  %v10391_v29 = vadd.f32 %v13219_v56, %v14684_v14 }
 0x39f   : > { %v5083_v35 = vrot.slane %v5081_v57, 5  ;;  %v5060_v1 = vsel %vm11644_vm5, %v5055_v3, %v5059_v60  ;;  %v5068_v7 = vor.u32 %v5067_v26, %v5064_v20  ;;  %v4009_v6 = vadd.f32 %v10389_v10, %v13141_v19 }
 0x3a0   : > { %v13304_v61 = vcombine.low %v5050_v42, %v5060_v1  ;;  %v5078_v39 = vor.u32 %v5077_v63, %v5073_v34  ;;  %v10392_v25 = vadd.f32 %v13223_v2, %v14686_v21  ;;  %v4007_v47 = vadd.f32 %v10390_v31, %v13141_v19  ;;  %9988 = vmatpush3.bf16.msra.mxu1 %v11016_v5  ;;  %v11018_v2 = vld [vmem:[#allocation3 + $0x28] sm:$0xff]   ;;  %v11019_v63 = vld [vmem:[#allocation3 + $0x30] sm:$0xff]   ;;  %v4884_v31 = vld [vmem:[#allocation2 + $0x9c] sm:$0xf] }
 0x3a1   : > { %v5069_v52 = vrot.slane %v5068_v7, 4  ;;  %v4010_v60 = vadd.f32 %v10391_v29, %v13141_v19  ;;  %v5086_v43 = vshrl.u32 %v13296_v53, 16  ;;  %v4045_v56 = vmax.f32 %v4009_v6, 0.0  ;;  %9989 = vmatprep.subr.bf16.mxu1 %v11017_v22  ;;  %v4933_v7 = vld [vmem:[#allocation2 + $0x38] sm:$0x1] }
 0x3a2   : > { %14685 = vst [vmem:[#allocation30_spill] sm:$0xff] %v13304_v61  ;;  %9953 = vmatprep.mubr.bf16.mxu1 %v13304_v61  ;;  %v5079_v37 = vrot.slane %v5078_v39, 4  ;;  %v4008_v59 = vadd.f32 %v10392_v25, %v13141_v19  ;;  %v5089_v51 = vshll.u32 %v13296_v53, 16  ;;  %v4043_v13 = vmax.f32 %v4007_v47, 0.0  ;;  %v4877_v6 = vld [vmem:[#allocation2 + $0x90] sm:$0xf] }
 0x3a3   : > { %v5074_v42 = vsel %vm11644_vm5, %v5069_v52, %v5073_v34  ;;  %v4046_v38 = vmax.f32 %v4010_v60, 0.0  ;;  %v5088_v0 = vrot.slane %v5086_v43, 4  ;;  %v9006_v41 = vpack.c.bf16 %v4045_v56, %v4045_v56  ;;  %v4888_v43 = vld [vmem:[#allocation2 + $0xa4] sm:$0x1] }
 0x3a4   : > { %v5084_v5 = vsel %vm11644_vm5, %v5079_v37, %v5083_v35  ;;  %v4044_v15 = vmax.f32 %v4008_v59, 0.0  ;;  %v5091_v20 = vrot.slane %v5089_v51, 5  ;;  %v9004_v62 = vpack.c.bf16 %v4043_v13, %v4043_v13  ;;  %9990 = vmatpush3.bf16.msra.mxu1 %v11017_v22  ;;  %v11020_v59 = vld [vmem:[#allocation3 + $0x38] sm:$0xff]  }
 0x3a5   : > { %v13321_v11 = vcombine.low %v5074_v42, %v5084_v5  ;;  %v9007_v57 = vpack.c.bf16 %v4046_v38, %v4046_v38  ;;  %v5095_v18 = vshll.u32 %v13314_v44, 16  ;;  %v4650_v27 = vshrl.u32 %v9006_v41, 16  ;;  %9991 = vmatprep.subr.bf16.mxu1 %v11018_v2  ;;  %v13330_v5 = vld [vmem:[#allocation2 + $0x3c] sm:$0xf] }
 0x3a6   : > { %v4653_v3 = vshll.u32 %v9006_v41, 16  ;;  %v9005_v26 = vpack.c.bf16 %v4044_v15, %v4044_v15  ;;  %v5092_v34 = vor.u32 %v5091_v20, %v5088_v0  ;;  %v4633_v23 = vshrl.u32 %v9004_v62, 16  ;;  %v4881_v0 = vld [vmem:[#allocation2 + $0x98] sm:$0x1] }
 0x3a7   : > { %14687 = vst [vmem:[#allocation35_spill] sm:$0xff] %v13321_v11  ;;  %9954 = vmatmul.mubr.bf16.gmra.mrb[24].mxu1 %v13321_v11  ;;  %v4636_v35 = vshll.u32 %v9004_v62, 16  ;;  %v4658_v10 = vshrl.u32 %v9007_v57, 16  ;;  %v4661_v1 = vshll.u32 %v9007_v57, 16  ;;  %v4652_v45 = vrot.slane %v4650_v27, 7 }
 0x3a8   : > { %v4641_v14 = vshrl.u32 %v9005_v26, 16  ;;  %v4644_v29 = vshll.u32 %v9005_v26, 16  ;;  %v13325_v39 = vrot.slane %v5092_v34, 4  ;;  %v4635_v22 = vrot.slane %v4633_v23, 7  ;;  %9992 = vmatpush3.bf16.msra.mxu1 %v11018_v2  ;;  %v13338_v62 = vld [vmem:[#allocation2 + $0x40] sm:$0xf] }
 0x3a9   : > { %v4660_v21 = vrot.slane %v4658_v10, 7  ;;  %v13327_v25 = vrot.slane %v5095_v18, 5  ;;  %v5099_v52 = vshrl.u32 %v13314_v44, 16  ;;  %v4655_v47 = vor.u32 %v4653_v3, %v4652_v45  ;;  %9993 = vmatprep.subr.bf16.mxu1 %v11019_v63  ;;  %v13346_v26 = vld [vmem:[#allocation2 + $0x44] sm:$0x1] }
 0x3aa   : > { %v4656_v60 = vrot.slane %v4652_v45, 4  ;;  %v4643_v37 = vrot.slane %v4641_v14, 7  ;;  %v5105_v56 = vshll.u32 %v4933_v7, 16  ;;  %v4638_v51 = vor.u32 %v4636_v35, %v4635_v22 }
 0x3ab   : > { %v4639_v42 = vrot.slane %v4635_v22, 4  ;;  %v4663_v13 = vor.u32 %v4661_v1, %v4660_v21  ;;  %v4665_v38 = vrot.slane %v4660_v21, 4  ;;  %v4885_v41 = vsel %vm13047_vm0, %v4655_v47, %v4884_v31  ;;  %v13353_v1 = vld [vmem:[#allocation3 + $0x80] sm:$0xff]  }
 0x3ac   : > { %v4646_v15 = vor.u32 %v4644_v29, %v4643_v37  ;;  %v4648_v20 = vrot.slane %v4643_v37, 4  ;;  %v5098_v2 = vsel %vm11644_vm5, %v13325_v39, %v13327_v25  ;;  %4886 = vst [vmem:[#allocation2 + $0x9c] sm:$0xf] %v4885_v41  ;;  %v4878_v57 = vsel %vm13047_vm0, %v4638_v51, %v4877_v6  ;;  %9994 = vmatpush3.bf16.msra.mxu1 %v11019_v63  ;;  %v14688_v39 = vld [vmem:[#allocation50_spill] sm:$0xff]  ;;  %v14689_v6 = vld [vmem:[#allocation53_spill] sm:$0xff]  ;;  %v14690_v51 = vld [vmem:[#allocation56_spill] sm:$0xff] }
 0x3ad   : > { %v4664_v18 = vsel %vm13054_vm1, %v4656_v60, %v4663_v13  ;;  %v4889_v27 = vsel %vm13021_vm11, %v4665_v38, %v4888_v43  ;;  %v5101_v3 = vrot.slane %v5099_v52, 4  ;;  %4879 = vst [vmem:[#allocation2 + $0x90] sm:$0xf] %v4878_v57  ;;  %v5107_v35 = vrot.slane %v5105_v56, 5  ;;  %9995 = vmatprep.subr.bf16.mxu1 %v11020_v59  ;;  %v13368_v13 = vld [vmem:[#allocation2 + $0x48] sm:$0xf] }
 0x3ae   : > { %4887 = vst [vmem:[#allocation2 + $0xa0] sm:$0xf] %v4664_v18  ;;  %4890 = vst [vmem:[#allocation2 + $0xa4] sm:$0x1] %v4889_v27  ;;  %v4647_v34 = vsel %vm13054_vm1, %v4639_v42, %v4646_v15  ;;  %v4882_v23 = vsel %vm13021_vm11, %v4648_v20, %v4881_v0  ;;  %v5110_v10 = vshrl.u32 %v13330_v5, 16  ;;  %v5113_v63 = vshll.u32 %v13330_v5, 16 }
 0x3af   : > { %4880 = vst [vmem:[#allocation2 + $0x94] sm:$0xf] %v4647_v34  ;;  %4883 = vst [vmem:[#allocation2 + $0x98] sm:$0x1] %v4882_v23  ;;  %v5102_v7 = vor.u32 %v5101_v3, %v13327_v25  ;;  %v5119_v45 = vshll.u32 %v13338_v62, 16  ;;  %v5123_v31 = vshrl.u32 %v13338_v62, 16  ;;  %v10393_v22 = vadd.f32 %v13240_v50, %v14688_v39 }
 0x3b0   : > { %v5112_v14 = vrot.slane %v5110_v10, 4  ;;  %v5129_v29 = vshll.u32 %v13346_v26, 16  ;;  %v10394_v21 = vadd.f32 %v13247_v12, %v14689_v6  ;;  %v5115_v47 = vrot.slane %v5113_v63, 5  ;;  %9996 = vmatpush3.bf16.msra.mxu1 %v11020_v59  ;;  %v14691_v0 = vld [vmem:[#allocation18_spill] sm:$0xff]  ;;  %v13386_v63 = vld [vmem:[#allocation2 + $0x4c] sm:$0xf] }
 0x3b1   : > { %v5103_v52 = vrot.slane %v5102_v7, 4  ;;  %v5121_v60 = vrot.slane %v5119_v45, 5  ;;  %v5125_v43 = vrot.slane %v5123_v31, 4  ;;  %v4013_v37 = vadd.f32 %v10393_v22, %v13141_v19  ;;  %10029 = vmatprep.subr.bf16.mxu1 %v13353_v1  ;;  %v4898_v39 = vld [vmem:[#allocation2 + $0xb4] sm:$0xf] }
 0x3b2   : > { %v5131_v25 = vrot.slane %v5129_v29, 5  ;;  %v4011_v56 = vadd.f32 %v10394_v21, %v13141_v19  ;;  %v10395_v42 = vadd.f32 %v13251_v46, %v14690_v51  ;;  %v5116_v12 = vor.u32 %v5115_v47, %v5112_v14 }
 0x3b3   : > { %v5108_v50 = vsel %vm11644_vm5, %v5103_v52, %v5107_v35  ;;  %v5126_v38 = vor.u32 %v5125_v43, %v5121_v60  ;;  %v10396_v59 = vadd.f32 %v13254_v8, %v14691_v0  ;;  %v4049_v15 = vmax.f32 %v4013_v37, 0.0  ;;  %v4891_v43 = vld [vmem:[#allocation2 + $0xa8] sm:$0xf] }
 0x3b4   : > { %v13375_v41 = vcombine.low %v5098_v2, %v5108_v50  ;;  %v4047_v20 = vmax.f32 %v4011_v56, 0.0  ;;  %v4014_v57 = vadd.f32 %v10395_v42, %v13141_v19  ;;  %v5117_v18 = vrot.slane %v5116_v12, 4  ;;  %v13393_v12 = vld [vmem:[#allocation2 + $0x50] sm:$0x1] }
 0x3b5   : > { %v5127_v46 = vrot.slane %v5126_v38, 4  ;;  %v4012_v27 = vadd.f32 %v10396_v59, %v13141_v19  ;;  %v5134_v3 = vshrl.u32 %v13368_v13, 16  ;;  %v9010_v34 = vpack.c.bf16 %v4049_v15, %v4049_v15 }
 0x3b6   : > { %14692 = vst [vmem:[#allocation39_spill] sm:$0xff] %v13375_v41  ;;  %9957 = vmatprep.mubr.bf16.mxu1 %v13375_v41  ;;  %v9008_v23 = vpack.c.bf16 %v4047_v20, %v4047_v20  ;;  %v4050_v35 = vmax.f32 %v4014_v57, 0.0  ;;  %v5137_v10 = vshll.u32 %v13368_v13, 16  ;;  %v5122_v8 = vsel %vm11644_vm5, %v5117_v18, %v5121_v60  ;;  %v13505_v58 = vld [vmem:[#allocation2 + $0x94] sm:$0xf] }
 0x3b7   : > { %v5132_v2 = vsel %vm11644_vm5, %v5127_v46, %v5131_v25  ;;  %v4048_v7 = vmax.f32 %v4012_v27, 0.0  ;;  %v5136_v45 = vrot.slane %v5134_v3, 4  ;;  %v4684_v31 = vshrl.u32 %v9010_v34, 16  ;;  %v13395_v27 = vld [vmem:[#allocation2 + $0x54] sm:$0xf] }
 0x3b8   : > { %v13388_v19 = vcombine.low %v5122_v8, %v5132_v2  ;;  %v4687_v14 = vshll.u32 %v9010_v34, 16  ;;  %v4667_v29 = vshrl.u32 %v9008_v23, 16  ;;  %v4670_v22 = vshll.u32 %v9008_v23, 16  ;;  %v4902_v23 = vld [vmem:[#allocation2 + $0xbc] sm:$0x1] }
 0x3b9   : > { %v9011_v6 = vpack.c.bf16 %v4050_v35, %v4050_v35  ;;  %v9009_v21 = vpack.c.bf16 %v4048_v7, %v4048_v7  ;;  %v5139_v52 = vrot.slane %v5137_v10, 5  ;;  %v4686_v47 = vrot.slane %v4684_v31, 7  ;;  %v4895_v35 = vld [vmem:[#allocation2 + $0xb0] sm:$0x1] }
 0x3ba   : > { %14693 = vst [vmem:[#allocation42_spill] sm:$0xff] %v13388_v19  ;;  %9958 = vmatmul.mubr.bf16.gmra.mrb[28].mxu1 %v13388_v19  ;;  %v4669_v60 = vrot.slane %v4667_v29, 7  ;;  %v5143_v25 = vshll.u32 %v13386_v63, 16  ;;  %v5147_v37 = vshrl.u32 %v13386_v63, 16  ;;  %v5153_v8 = vshll.u32 %v13393_v12, 16 }
 0x3bb   : > { %v4692_v56 = vshrl.u32 %v9011_v6, 16  ;;  %v4695_v51 = vshll.u32 %v9011_v6, 16  ;;  %v4675_v42 = vshrl.u32 %v9009_v21, 16  ;;  %v4678_v50 = vshll.u32 %v9009_v21, 16 }
 0x3bc   : > { %v4689_v38 = vor.u32 %v4687_v14, %v4686_v47  ;;  %v4690_v0 = vrot.slane %v4686_v47, 4  ;;  %v4672_v59 = vor.u32 %v4670_v22, %v4669_v60  ;;  %v4673_v15 = vrot.slane %v4669_v60, 4  ;;  %v13402_v14 = vld [vmem:[#allocation2 + $0x58] sm:$0xf] }
 0x3bd   : > { %v4694_v20 = vrot.slane %v4692_v56, 7  ;;  %v4677_v57 = vrot.slane %v4675_v42, 7  ;;  %v5140_v18 = vor.u32 %v5139_v52, %v5136_v45  ;;  %v5145_v46 = vrot.slane %v5143_v25, 5  ;;  %v13415_v25 = vld [vmem:[#allocation2 + $0x60] sm:$0xf] }
 0x3be   : > { %v4899_v3 = vsel %vm13047_vm0, %v4689_v38, %v4898_v39  ;;  %v4892_v34 = vsel %vm13047_vm0, %v4672_v59, %v4891_v43  ;;  %v5149_v10 = vrot.slane %v5147_v37, 4  ;;  %v5155_v6 = vrot.slane %v5153_v8, 5  ;;  %v13404_v39 = vld [vmem:[#allocation2 + $0x5c] sm:$0x1] }
 0x3bf   : > { %4900 = vst [vmem:[#allocation2 + $0xb4] sm:$0xf] %v4899_v3  ;;  %4893 = vst [vmem:[#allocation2 + $0xa8] sm:$0xf] %v4892_v34  ;;  %v4697_v2 = vor.u32 %v4695_v51, %v4694_v20  ;;  %v4699_v7 = vrot.slane %v4694_v20, 4  ;;  %v4680_v31 = vor.u32 %v4678_v50, %v4677_v57  ;;  %v4682_v45 = vrot.slane %v4677_v57, 4 }
 0x3c0   : > { %v5141_v29 = vrot.slane %v5140_v18, 4  ;;  %v5150_v22 = vor.u32 %v5149_v10, %v5145_v46  ;;  %v5158_v21 = vshrl.u32 %v13395_v27, 16  ;;  %v5161_v42 = vshll.u32 %v13395_v27, 16  ;;  %v13429_v18 = vld [vmem:[#allocation2 + $0x64] sm:$0xf] }
 0x3c1   : > { %v4698_v52 = vsel %vm13054_vm1, %v4690_v0, %v4697_v2  ;;  %v4903_v47 = vsel %vm13021_vm11, %v4699_v7, %v4902_v23  ;;  %v4681_v60 = vsel %vm13054_vm1, %v4673_v15, %v4680_v31  ;;  %v4896_v43 = vsel %vm13021_vm11, %v4682_v45, %v4895_v35  ;;  %v13434_v10 = vld [vmem:[#allocation2 + $0x68] sm:$0x1] }
 0x3c2   : > { %4901 = vst [vmem:[#allocation2 + $0xb8] sm:$0xf] %v4698_v52  ;;  %4904 = vst [vmem:[#allocation2 + $0xbc] sm:$0x1] %v4903_v47  ;;  %v5146_v37 = vsel %vm11644_vm5, %v5141_v29, %v5145_v46  ;;  %v5151_v56 = vrot.slane %v5150_v22, 4  ;;  %v5160_v51 = vrot.slane %v5158_v21, 4  ;;  %v3972_v59 = vadd.f32 %v13266_v55, %v13130_v36 }
 0x3c3   : > { %4894 = vst [vmem:[#allocation2 + $0xac] sm:$0xf] %v4681_v60  ;;  %4897 = vst [vmem:[#allocation2 + $0xb0] sm:$0x1] %v4896_v43  ;;  %v5167_v50 = vshll.u32 %v13402_v14, 16  ;;  %v5171_v38 = vshrl.u32 %v13402_v14, 16  ;;  %v3973_v57 = vadd.f32 %v13274_v16, %v13134_v24 }
 0x3c4   : > { %v5177_v0 = vshll.u32 %v13404_v39, 16  ;;  %v5156_v15 = vsel %vm11644_vm5, %v5151_v56, %v5155_v6  ;;  %v5163_v20 = vrot.slane %v5161_v42, 5  ;;  %v5182_v46 = vshrl.u32 %v13415_v25, 16  ;;  %v11106_v36 = vld [vmem:[%s14194_s2] ss:$0 sm:$0xff] }
 0x3c5   : > { %v13432_v3 = vcombine.low %v5146_v37, %v5156_v15  ;;  %v5169_v34 = vrot.slane %v5167_v50, 5  ;;  %v5173_v23 = vrot.slane %v5171_v38, 4  ;;  %v4015_v55 = vadd.f32 %v11106_v36, %v3972_v59  ;;  %v13444_v52 = vld [vmem:[#allocation2 + $0x6c] sm:$0xf]  ;;  %v13450_v15 = vld [vmem:[#allocation2 + $0x70] sm:$0xf] }
 0x3c6   : > { %v5179_v35 = vrot.slane %v5177_v0, 5  ;;  %v5164_v8 = vor.u32 %v5163_v20, %v5160_v51  ;;  %v4016_v2 = vadd.f32 %v11106_v36, %v3973_v57  ;;  %v5184_v7 = vrot.slane %v5182_v46, 4  ;;  %v13455_v36 = vld [vmem:[#allocation2 + $0x74] sm:$0x1] }
 0x3c7   : > { %14694 = vst [vmem:[#allocation47_spill] sm:$0xff] %v13432_v3  ;;  %9961 = vmatprep.mubr.bf16.mxu1 %v13432_v3  ;;  %v5174_v24 = vor.u32 %v5173_v23, %v5169_v34  ;;  %v5185_v16 = vshll.u32 %v13415_v25, 16  ;;  %v5191_v31 = vshll.u32 %v13429_v18, 16  ;;  %v5195_v45 = vshrl.u32 %v13429_v18, 16 }
 0x3c8   : > { %v5165_v29 = vrot.slane %v5164_v8, 4  ;;  %v4051_v22 = vmax.f32 %v4015_v55, 0.0  ;;  %v4052_v6 = vmax.f32 %v4016_v2, 0.0  ;;  %v5201_v21 = vshll.u32 %v13434_v10, 16 }
 0x3c9   : > { %v5175_v47 = vrot.slane %v5174_v24, 4  ;;  %v5187_v60 = vrot.slane %v5185_v16, 5  ;;  %v5193_v43 = vrot.slane %v5191_v31, 5  ;;  %v5197_v37 = vrot.slane %v5195_v45, 4 }
 0x3ca   : > { %v5170_v56 = vsel %vm11644_vm5, %v5165_v29, %v5169_v34  ;;  %v9012_v51 = vpack.c.bf16 %v4051_v22, %v4051_v22  ;;  %v9013_v42 = vpack.c.bf16 %v4052_v6, %v4052_v6  ;;  %v5203_v50 = vrot.slane %v5201_v21, 5  ;;  %v4909_v29 = vld [vmem:[#allocation2 + $0xc8] sm:$0x1] }
 0x3cb   : > { %v5180_v38 = vsel %vm11644_vm5, %v5175_v47, %v5179_v35  ;;  %v5188_v0 = vor.u32 %v5187_v60, %v5184_v7  ;;  %v5198_v59 = vor.u32 %v5197_v37, %v5193_v43  ;;  %v5206_v20 = vshrl.u32 %v13444_v52, 16  ;;  %v4905_v7 = vld [vmem:[#allocation2 + $0xc0] sm:$0xf]  ;;  %v13466_v60 = vld [vmem:[#allocation2 + $0x84] sm:$0xf] }
 0x3cc   : > { %v13453_v57 = vcombine.low %v5170_v56, %v5180_v38  ;;  %v4701_v46 = vshrl.u32 %v9012_v51, 16  ;;  %v4704_v23 = vshll.u32 %v9012_v51, 16  ;;  %v4709_v8 = vshrl.u32 %v9013_v42, 16  ;;  %v13468_v38 = vld [vmem:[#allocation2 + $0x78] sm:$0xf] }
 0x3cd   : > { %v4712_v34 = vshll.u32 %v9013_v42, 16  ;;  %v5189_v55 = vrot.slane %v5188_v0, 4  ;;  %v5199_v2 = vrot.slane %v5198_v59, 4  ;;  %v5208_v24 = vrot.slane %v5206_v20, 4  ;;  %v13470_v0 = vld [vmem:[#allocation2 + $0x7c] sm:$0xf] }
 0x3ce   : > { %14695 = vst [vmem:[#allocation52_spill] sm:$0xff] %v13453_v57  ;;  %9962 = vmatmul.mubr.bf16.gmra.mrb[32].mxu1 %v13453_v57  ;;  %v4703_v35 = vrot.slane %v4701_v46, 7  ;;  %v4711_v16 = vrot.slane %v4709_v8, 7  ;;  %v5209_v31 = vshll.u32 %v13444_v52, 16  ;;  %v5215_v45 = vshll.u32 %v13450_v15, 16 }
 0x3cf   : > { %v5194_v22 = vsel %vm11644_vm5, %v5189_v55, %v5193_v43  ;;  %v5204_v6 = vsel %vm11644_vm5, %v5199_v2, %v5203_v50  ;;  %v5219_v21 = vshrl.u32 %v13450_v15, 16  ;;  %v5225_v47 = vshll.u32 %v13455_v36, 16  ;;  %v13474_v50 = vld [vmem:[#allocation2 + $0x80] sm:$0x1] }
 0x3d0   : > { %v4706_v37 = vor.u32 %v4704_v23, %v4703_v35  ;;  %v4707_v56 = vrot.slane %v4703_v35, 4  ;;  %v4714_v51 = vor.u32 %v4712_v34, %v4711_v16  ;;  %v4716_v42 = vrot.slane %v4711_v16, 4 }
 0x3d1   : > { %v13472_v59 = vcombine.low %v5194_v22, %v5204_v6  ;;  %v5211_v43 = vrot.slane %v5209_v31, 5  ;;  %v5217_v20 = vrot.slane %v5215_v45, 5  ;;  %v5221_v46 = vrot.slane %v5219_v21, 4  ;;  %v13488_v22 = vld [vmem:[#allocation2 + $0x88] sm:$0xf] }
 0x3d2   : > { %v4906_v8 = vsel %vm13047_vm0, %v4706_v37, %v4905_v7  ;;  %v4715_v23 = vsel %vm13054_vm1, %v4707_v56, %v4714_v51  ;;  %v4910_v34 = vsel %vm13021_vm11, %v4716_v42, %v4909_v29  ;;  %v5227_v55 = vrot.slane %v5225_v47, 5 }
 0x3d3   : > { %14696 = vst [vmem:[#allocation55_spill] sm:$0xff] %v13472_v59  ;;  %4907 = vst [vmem:[#allocation2 + $0xc0] sm:$0xf] %v4906_v8  ;;  %9965 = vmatprep.mubr.bf16.mxu1 %v13472_v59  ;;  %v5212_v2 = vor.u32 %v5211_v43, %v5208_v24  ;;  %v5222_v35 = vor.u32 %v5221_v46, %v5217_v20  ;;  %v5230_v16 = vshrl.u32 %v13468_v38, 16  ;;  %v5233_v31 = vshll.u32 %v13468_v38, 16 }
 0x3d4   : > { %4908 = vst [vmem:[#allocation2 + $0xc4] sm:$0xf] %v4715_v23  ;;  %4911 = vst [vmem:[#allocation2 + $0xc8] sm:$0x1] %v4910_v34  ;;  %v5239_v7 = vshll.u32 %v13470_v0, 16  ;;  %v5243_v4 = vshrl.u32 %v13470_v0, 16 }
 0x3d5   : > { %v5249_v45 = vshll.u32 %v13474_v50, 16  ;;  %v5254_v29 = vshrl.u32 %v13466_v60, 16  ;;  %v5213_v6 = vrot.slane %v5212_v2, 4  ;;  %v5223_v21 = vrot.slane %v5222_v35, 4  ;;  %v13491_v24 = vld [vmem:[#allocation2 + $0x8c] sm:$0x1] }
 0x3d6   : > { %v5232_v47 = vrot.slane %v5230_v16, 4  ;;  %v5235_v37 = vrot.slane %v5233_v31, 5  ;;  %v5241_v56 = vrot.slane %v5239_v7, 5  ;;  %v5245_v51 = vrot.slane %v5243_v4, 4  ;;  %v13493_v46 = vld [vmem:[#allocation2 + $0x90] sm:$0xf] }
 0x3d7   : > { %v5251_v42 = vrot.slane %v5249_v45, 5  ;;  %v5256_v43 = vrot.slane %v5254_v29, 4  ;;  %v5218_v8 = vsel %vm11644_vm5, %v5213_v6, %v5217_v20  ;;  %v5228_v23 = vsel %vm11644_vm5, %v5223_v21, %v5227_v55 }
 0x3d8   : > { %v5236_v34 = vor.u32 %v5235_v37, %v5232_v47  ;;  %v5257_v2 = vshll.u32 %v13466_v60, 16  ;;  %v13500_v35 = vcombine.low %v5218_v8, %v5228_v23  ;;  %v5246_v16 = vor.u32 %v5245_v51, %v5241_v56  ;;  %v13509_v47 = vld [vmem:[#allocation2 + $0x98] sm:$0x1] }
 0x3d9   : > { %v5263_v31 = vshll.u32 %v13488_v22, 16  ;;  %v5267_v7 = vshrl.u32 %v13488_v22, 16  ;;  %v5273_v29 = vshll.u32 %v13491_v24, 16  ;;  %v5278_v20 = vshrl.u32 %v13493_v46, 16 }
 0x3da   : > { %14697 = vst [vmem:[#allocation10_spill] sm:$0xff] %v13500_v35  ;;  %v5237_v4 = vrot.slane %v5236_v34, 4  ;;  %v5259_v45 = vrot.slane %v5257_v2, 5  ;;  %9966 = vmatmul.mubr.bf16.gmra.mrb[36].mxu1 %v13500_v35  ;;  %v5247_v55 = vrot.slane %v5246_v16, 4  ;;  %v5281_v37 = vshll.u32 %v13493_v46, 16 }
 0x3db   : > { %v5265_v6 = vrot.slane %v5263_v31, 5  ;;  %v5269_v21 = vrot.slane %v5267_v7, 4  ;;  %v5275_v23 = vrot.slane %v5273_v29, 5  ;;  %v5280_v34 = vrot.slane %v5278_v20, 4  ;;  %v13514_v2 = vld [vmem:[#allocation2 + $0x9c] sm:$0xf] }
 0x3dc   : > { %v5242_v51 = vsel %vm11644_vm5, %v5237_v4, %v5241_v56  ;;  %v5260_v8 = vor.u32 %v5259_v45, %v5256_v43  ;;  %v5252_v54 = vsel %vm11644_vm5, %v5247_v55, %v5251_v42  ;;  %v5283_v28 = vrot.slane %v5281_v37, 5  ;;  %v13523_v56 = vld [vmem:[#allocation2 + $0xa0] sm:$0xf]  ;;  %v13525_v29 = vld [vmem:[#allocation2 + $0xa4] sm:$0x1] }
 0x3dd   : > { %v5270_v40 = vor.u32 %v5269_v21, %v5265_v6  ;;  %v5287_v16 = vshll.u32 %v13505_v58, 16  ;;  %v13519_v31 = vcombine.low %v5242_v51, %v5252_v54  ;;  %v5291_v17 = vshrl.u32 %v13505_v58, 16  ;;  %v13532_v37 = vld [vmem:[#allocation2 + $0xa8] sm:$0xf] }
 0x3de   : > { %v5261_v7 = vrot.slane %v5260_v8, 4  ;;  %v5297_v33 = vshll.u32 %v13509_v47, 16  ;;  %v5284_v4 = vor.u32 %v5283_v28, %v5280_v34  ;;  %v5302_v42 = vshrl.u32 %v13514_v2, 16 }
 0x3df   : > { %14698 = vst [vmem:[#allocation11_spill] sm:$0xff] %v13519_v31  ;;  %v5271_v43 = vrot.slane %v5270_v40, 4  ;;  %v5289_v45 = vrot.slane %v5287_v16, 5  ;;  %9969 = vmatprep.mubr.bf16.mxu1 %v13519_v31  ;;  %v5293_v20 = vrot.slane %v5291_v17, 4  ;;  %v5305_v21 = vshll.u32 %v13514_v2, 16 }
 0x3e0   : > { %v5266_v54 = vsel %vm11644_vm5, %v5261_v7, %v5265_v6  ;;  %v5299_v55 = vrot.slane %v5297_v33, 5  ;;  %v5285_v28 = vrot.slane %v5284_v4, 4  ;;  %v5304_v51 = vrot.slane %v5302_v42, 4  ;;  %v13540_v6 = vld [vmem:[#allocation2 + $0xac] sm:$0xf] }
 0x3e1   : > { %v5276_v40 = vsel %vm11644_vm5, %v5271_v43, %v5275_v23  ;;  %v5311_v8 = vshll.u32 %v13523_v56, 16  ;;  %v5294_v16 = vor.u32 %v5293_v20, %v5289_v45  ;;  %v5307_v31 = vrot.slane %v5305_v21, 5 }
 0x3e2   : > { %v13537_v34 = vcombine.low %v5266_v54, %v5276_v40  ;;  %v5315_v35 = vshrl.u32 %v13523_v56, 16  ;;  %v5290_v33 = vsel %vm11644_vm5, %v5285_v28, %v5289_v45  ;;  %v5321_v7 = vshll.u32 %v13525_v29, 16  ;;  %v13547_v54 = vld [vmem:[#allocation2 + $0xb0] sm:$0x1]  ;;  %v13552_v28 = vld [vmem:[#allocation2 + $0xb4] sm:$0xf] }
 0x3e3   : > { %v5313_v17 = vrot.slane %v5311_v8, 5  ;;  %v5326_v23 = vshrl.u32 %v13532_v37, 16  ;;  %v5295_v43 = vrot.slane %v5294_v16, 4  ;;  %v5308_v4 = vor.u32 %v5307_v31, %v5304_v51  ;;  %v13556_v31 = vld [vmem:[#allocation2 + $0xb8] sm:$0xf] }
 0x3e4   : > { %14699 = vst [vmem:[#allocation12_spill] sm:$0xff] %v13537_v34  ;;  %9970 = vmatmul.mubr.bf16.gmra.mrb[40].mxu1 %v13537_v34  ;;  %v5317_v42 = vrot.slane %v5315_v35, 4  ;;  %v5329_v20 = vshll.u32 %v13532_v37, 16  ;;  %v5323_v21 = vrot.slane %v5321_v7, 5  ;;  %v5335_v59 = vshll.u32 %v13540_v6, 16 }
 0x3e5   : > { %v5328_v40 = vrot.slane %v5326_v23, 4  ;;  %v5339_v45 = vshrl.u32 %v13540_v6, 16  ;;  %v5300_v8 = vsel %vm11644_vm5, %v5295_v43, %v5299_v55  ;;  %v5309_v57 = vrot.slane %v5308_v4, 4  ;;  %v13565_v4 = vld [vmem:[#allocation2 + $0xbc] sm:$0x1] }
 0x3e6   : > { %v5318_v34 = vor.u32 %v5317_v42, %v5313_v17  ;;  %v5331_v16 = vrot.slane %v5329_v20, 5  ;;  %v13558_v35 = vcombine.low %v5290_v33, %v5300_v8  ;;  %v5337_v51 = vrot.slane %v5335_v59, 5 }
 0x3e7   : > { %v5341_v3 = vrot.slane %v5339_v45, 4  ;;  %v5345_v7 = vshll.u32 %v13547_v54, 16  ;;  %v5314_v23 = vsel %vm11644_vm5, %v5309_v57, %v5313_v17  ;;  %v5350_v11 = vshrl.u32 %v13552_v28, 16 }
 0x3e8   : > { %14700 = vst [vmem:[#allocation13_spill] sm:$0xff] %v13558_v35  ;;  %v5319_v19 = vrot.slane %v5318_v34, 4  ;;  %v5332_v41 = vor.u32 %v5331_v16, %v5328_v40  ;;  %9973 = vmatprep.mubr.bf16.mxu1 %v13558_v35  ;;  %v5353_v33 = vshll.u32 %v13552_v28, 16  ;;  %v5359_v59 = vshll.u32 %v13556_v31, 16  ;;  %v11029_v35 = vld [vmem:[#allocation3 + $0x90] sm:$0xff]  }
 0x3e9   : > { %v5342_v55 = vor.u32 %v5341_v3, %v5337_v51  ;;  %v5347_v43 = vrot.slane %v5345_v7, 5  ;;  %v5352_v45 = vrot.slane %v5350_v11, 4  ;;  %v5363_v57 = vshrl.u32 %v13556_v31, 16 }
 0x3ea   : > { %v5324_v42 = vsel %vm11644_vm5, %v5319_v19, %v5323_v21  ;;  %v5333_v20 = vrot.slane %v5332_v41, 4  ;;  %v5355_v40 = vrot.slane %v5353_v33, 5  ;;  %v5361_v8 = vrot.slane %v5359_v59, 5  ;;  %v13584_v33 = vld [vmem:[#allocation2 + $0x4] sm:$0xf] }
 0x3eb   : > { %v13572_v34 = vcombine.low %v5314_v23, %v5324_v42  ;;  %v5343_v17 = vrot.slane %v5342_v55, 4  ;;  %v5365_v3 = vrot.slane %v5363_v57, 4  ;;  %v5369_v16 = vshll.u32 %v13565_v4, 16  ;;  %v13582_v55 = vld [vmem:[#allocation2] sm:$0xf] }
 0x3ec   : > { %v5338_v7 = vsel %vm11644_vm5, %v5333_v20, %v5337_v51  ;;  %v5356_v41 = vor.u32 %v5355_v40, %v5352_v45  ;;  %v8856_v59 = vcombine.low %v13582_v55, %v13584_v33  ;;  %v13591_v51 = vcombine.low %v13395_v27, %v13402_v14 }
 0x3ed   : > { %14701 = vst [vmem:[#allocation14_spill] sm:$0xff] %v13572_v34  ;;  %9974 = vmatmul.mubr.bf16.gmra.mrb[44].mxu1 %v13572_v34  ;;  %v5348_v19 = vsel %vm11644_vm5, %v5343_v17, %v5347_v43  ;;  %v5366_v21 = vor.u32 %v5365_v3, %v5361_v8  ;;  %v5371_v42 = vrot.slane %v5369_v16, 5  ;;  %v13595_v43 = vcombine.low %v13415_v25, %v13429_v18 }
 0x3ee   : > { %v13580_v11 = vcombine.low %v5338_v7, %v5348_v19  ;;  %v5357_v23 = vrot.slane %v5356_v41, 4  ;;  %v13599_v20 = vcombine.low %v13444_v52, %v13450_v15  ;;  %v13605_v17 = vcombine.low %v13468_v38, %v13470_v0 }
 0x3ef   : > { %v5367_v57 = vrot.slane %v5366_v21, 4  ;;  %v13609_v40 = vcombine.low %v13466_v60, %v13488_v22  ;;  %v13613_v3 = vcombine.low %v13493_v46, %v13505_v58  ;;  %v13619_v7 = vcombine.low %v13514_v2, %v13523_v56  ;;  %v13632_v21 = vld [vmem:[#allocation2 + $0xc] sm:$0xf] }
 0x3f0   : > { %14702 = vst [vmem:[#allocation15_spill] sm:$0xff] %v13580_v11  ;;  %9977 = vmatprep.mubr.bf16.mxu1 %v13580_v11  ;;  %v5362_v45 = vsel %vm11644_vm5, %v5357_v23, %v5361_v8  ;;  %v13623_v8 = vcombine.low %v13532_v37, %v13540_v6  ;;  %v13627_v19 = vcombine.low %v13552_v28, %v13556_v31  ;;  %v13634_v23 = vld [vmem:[#allocation2 + $0x10] sm:$0xf]  ;;  %v13642_v11 = vld [vmem:[#allocation2 + $0x1c] sm:$0xf]  ;;  %v8888_v61 = vrot.slane %v13415_v25, 9 }
 0x3f1   : > { %v5372_v16 = vsel %vm11644_vm5, %v5367_v57, %v5371_v42  ;;  %v13638_v42 = vcombine.low %v13632_v21, %v13634_v23  ;;  %v11026_v57 = vld [vmem:[#allocation3 + $0x88] sm:$0xff]   ;;  %v13659_v34 = vcombine.low %v13296_v53, %v13314_v44  ;;  %v6042_v49 = vrot.slane %v13429_v18, 5 }
 0x3f2   : > { %v13629_v41 = vcombine.low %v5362_v45, %v5372_v16  ;;  %v13646_v45 = vcombine.low %v13640_v48, %v13642_v11  ;;  %v6035_v16 = vrot.slane %v13402_v14, 5  ;;  %v6045_v25 = vrot.slane %v13434_v10, 5 }
 0x3f3   : > { %v6043_v53 = vsel %vm11443_vm2, %v8888_v61, %v6042_v49  ;;  %v6044_v44 = vrot.slane %v6042_v49, 4  ;;  %v8889_v18 = vrot.slane %v13444_v52, 9  ;;  %v8890_v49 = vrot.slane %v13468_v38, 9 }
 0x3f4   : > { %14703 = vst [vmem:[#allocation17_spill] sm:$0xff] %v13629_v41  ;;  %14704 = vst [vmem:[#allocation51_spill] sm:$0xff] %v13646_v45  ;;  %v6037_v14 = vrot.slane %v6035_v16, 4  ;;  %v6056_v10 = vrot.slane %v13470_v0, 5  ;;  %v6063_v38 = vrot.slane %v13488_v22, 5 }
 0x3f5   : > { %9978 = vmatmul.mubr.bf16.gmra.mrb[48].mxu1 %v13629_v41  ;;  %v13655_v41 = vcombine.low %v13268_v9, %v13272_v32  ;;  %v6038_v9 = vrot.slane %v13404_v39, 5  ;;  %v13672_v32 = vcombine.low %v13368_v13, %v13386_v63  ;;  %v6052_v39 = vrot.slane %v13455_v36, 5 }
 0x3f6   : > { %9997 = vmatprep.mubr.bf16.mxu1 %v8856_v59  ;;  %v8887_v59 = vrot.slane %v13395_v27, 9  ;;  %v6046_v61 = vsel %vm11443_vm2, %v6044_v44, %v6045_v25  ;;  %v6057_v36 = vsel %vm11443_vm2, %v8890_v49, %v6056_v10  ;;  %v6070_v44 = vrot.slane %v13505_v58, 5  ;;  %v11035_v25 = vld [vmem:[#allocation3 + $0xa0] sm:$0xff]  }
 0x3f7   : > { %v6080_v49 = vrot.slane %v13525_v29, 5  ;;  %v6087_v29 = vrot.slane %v13547_v54, 5 }
 0x3f8   : > { %v6036_v27 = vsel %vm11443_vm2, %v8887_v59, %v6035_v16  ;;  %v6049_v59 = vrot.slane %v13450_v15, 5  ;;  %v11032_v16 = vld [vmem:[#allocation3 + $0x98] sm:$0xff]   ;;  %v6059_v15 = vrot.slane %v13474_v50, 5  ;;  %v8892_v50 = vrot.slane %v13493_v46, 9 }
 0x3f9   : > { %v6073_v46 = vrot.slane %v13509_v47, 5  ;;  %v11038_v47 = vld [vmem:[#allocation3 + $0xa8] sm:$0xff]  }
 0x3fa   : > { %v6050_v52 = vsel %vm11443_vm2, %v8889_v18, %v6049_v59 }
 0x3fd   : > { %9998 = vmatmul.mubr.bf16.vlgmr.msra.gmra.mrb[20].mxu1 %v13638_v42 }
 0x3fe   : > { %10001 = vmatprep.mubr.bf16.mxu1 %v13646_v45  ;;  %10030 = vmatpush3.bf16.msra.mxu1 %v13353_v1  ;;  %v13665_v1 = vcombine.low %v13330_v5, %v13338_v62  ;;  %v6039_v5 = vsel %vm11443_vm2, %v6037_v14, %v6038_v9  ;;  %v6051_v14 = vrot.slane %v6049_v59, 4  ;;  %v8891_v9 = vrot.slane %v13466_v60, 9 }
 0x3ff   : > { %10031 = vmatprep.subr.bf16.mxu1 %v11026_v57  ;;  %v13682_v45 = vcombine.low %v6036_v27, %v6039_v5  ;;  %v6058_v27 = vrot.slane %v6056_v10, 4  ;;  %v6072_v59 = vrot.slane %v6070_v44, 4 }
 0x400   : > { %v6053_v0 = vsel %vm11443_vm2, %v6051_v14, %v6052_v39  ;;  %v6064_v22 = vsel %vm11443_vm2, %v8891_v9, %v6063_v38  ;;  %v8893_v39 = vrot.slane %v13514_v2, 9  ;;  %v8894_v14 = vrot.slane %v13532_v37, 9 }
 0x401   : > { %v13704_v5 = vcombine.low %v6050_v52, %v6053_v0  ;;  %v6060_v60 = vsel %vm11443_vm2, %v6058_v27, %v6059_v15  ;;  %v6074_v52 = vsel %vm11443_vm2, %v6072_v59, %v6073_v46  ;;  %v6084_v15 = vrot.slane %v13540_v6, 5  ;;  %v11044_v59 = vld [vmem:[#allocation3 + $0xb8] sm:$0xff]  }
 0x402   : > { %10032 = vmatpush3.bf16.msra.mxu1 %v11026_v57  ;;  %v13688_v57 = vcombine.low %v6043_v53, %v6046_v61  ;;  %v6066_v53 = vrot.slane %v13491_v24, 5  ;;  %v13710_v18 = vcombine.low %v6057_v36, %v6060_v60  ;;  %v6071_v24 = vsel %vm11443_vm2, %v8892_v50, %v6070_v44  ;;  %v13748_v50 = vld [vmem:[#allocation2 + $0xc4] sm:$0xf]  ;;  %v11041_v44 = vld [vmem:[#allocation3 + $0xb0] sm:$0xff]  }
 0x403   : > { %10033 = vmatprep.subr.bf16.mxu1 %v11029_v35  ;;  %v6077_v61 = vrot.slane %v13523_v56, 5  ;;  %v13726_v36 = vcombine.low %v6071_v24, %v6074_v52  ;;  %v6086_v27 = vrot.slane %v6084_v15, 4  ;;  %v8895_v9 = vrot.slane %v13552_v28, 9  ;;  %v11045_v52 = vld [vmem:[#allocation3 + $0xc0] sm:$0xff]  }
 0x404   : > { %v6091_v37 = vrot.slane %v13556_v31, 5  ;;  %v13746_v31 = vld [vmem:[#allocation2 + $0xc0] sm:$0xf]  ;;  %v6971_v24 = vrot.slane %v13748_v50, 5 }
 0x405   : > { %10002 = vmatmul.mubr.bf16.gmra.mrb[24].mxu1 %v13655_v41  ;;  %v6078_v2 = vsel %vm11443_vm2, %v8893_v39, %v6077_v61  ;;  %v6079_v56 = vrot.slane %v6077_v61, 4  ;;  %v6088_v54 = vsel %vm11443_vm2, %v6086_v27, %v6087_v29  ;;  %v5993_v27 = vrot.slane %v13634_v23, 5 }
 0x406   : > { %10005 = vmatprep.mubr.bf16.mxu1 %v13659_v34  ;;  %10034 = vmatpush3.bf16.msra.mxu1 %v11029_v35  ;;  %v6065_v35 = vrot.slane %v6063_v38, 4  ;;  %v6094_v38 = vrot.slane %v13565_v4, 5  ;;  %v6092_v28 = vsel %vm11443_vm2, %v8895_v9, %v6091_v37  ;;  %v6000_v9 = vrot.slane %v13642_v11, 5 }
 0x407   : > { %10035 = vmatprep.subr.bf16.mxu1 %v11032_v16  ;;  %v6081_v6 = vsel %vm11443_vm2, %v6079_v56, %v6080_v49  ;;  %v8882_v23 = vrot.slane %v13640_v48, 9 }
 0x408   : > { %v6067_v58 = vsel %vm11443_vm2, %v6065_v35, %v6066_v53  ;;  %v13740_v0 = vcombine.low %v6078_v2, %v6081_v6  ;;  %v6093_v53 = vrot.slane %v6091_v37, 4  ;;  %v8938_v35 = vrot.slane %v13746_v31, 9  ;;  %v11113_v2 = vld [vmem:[#allocation2 + $0x8] sm:$0x1]  ;;  %v11114_v6 = vld [vmem:[#allocation2 + $0x14] sm:$0x1] }
 0x409   : > { %v13720_v10 = vcombine.low %v6064_v22, %v6067_v58  ;;  %v6973_v58 = vrot.slane %v6971_v24, 4  ;;  %v5989_v56 = vrot.slane %v11113_v2, 5  ;;  %v5995_v37 = vrot.slane %v5993_v27, 4  ;;  %v11119_v2 = vld [vmem:[#allocation2 + $0x38] sm:$0x1] }
 0x40a   : > { %10036 = vmatpush3.bf16.msra.mxu1 %v11032_v16  ;;  %v6085_v16 = vsel %vm11443_vm2, %v8894_v14, %v6084_v15  ;;  %v6095_v4 = vsel %vm11443_vm2, %v6093_v53, %v6094_v38  ;;  %v6972_v46 = vsel %vm11443_vm2, %v8938_v35, %v6971_v24  ;;  %v5986_v14 = vrot.slane %v13584_v33, 5  ;;  %v11117_v24 = vld [vmem:[#allocation2 + $0x34] sm:$0xf] }
 0x40b   : > { %10037 = vmatprep.subr.bf16.mxu1 %v11035_v25  ;;  %v13750_v60 = vcombine.low %v6085_v16, %v6088_v54  ;;  %v13756_v22 = vcombine.low %v6092_v28, %v6095_v4  ;;  %v8880_v15 = vrot.slane %v13582_v55, 9  ;;  %v6002_v55 = vrot.slane %v6000_v9, 4  ;;  %v11115_v54 = vld [vmem:[#allocation2 + $0x20] sm:$0x1]  ;;  %v11116_v4 = vld [vmem:[#allocation2 + $0x28] sm:$0xf] }
 0x40c   : > { %v5996_v38 = vrot.slane %v11114_v6, 5  ;;  %v6003_v28 = vrot.slane %v11115_v54, 5  ;;  %v8881_v53 = vrot.slane %v13632_v21, 9  ;;  %v6007_v35 = vrot.slane %v11116_v4, 5 }
 0x40d   : > { %10006 = vmatmul.mubr.bf16.gmra.mrb[28].mxu1 %v13665_v1  ;;  %v5987_v29 = vsel %vm11443_vm2, %v8880_v15, %v5986_v14  ;;  %v6001_v21 = vsel %vm11443_vm2, %v8882_v23, %v6000_v9  ;;  %v11118_v15 = vld [vmem:[#allocation2 + $0x2c] sm:$0x1]  ;;  %v11049_v23 = vld [vmem:[#allocation3 + $0xe0] sm:$0xff]  }
 0x40e   : > { %10009 = vmatprep.mubr.bf16.mxu1 %v13672_v32  ;;  %10038 = vmatpush3.bf16.msra.mxu1 %v11035_v25  ;;  %v13754_v25 = vld [vmem:[#allocation2 + $0xc8] sm:$0x1]  ;;  %v6004_v11 = vsel %vm11443_vm2, %v6002_v55, %v6003_v28 }
 0x40f   : > { %10039 = vmatprep.subr.bf16.mxu1 %v11038_v47  ;;  %v6974_v39 = vrot.slane %v13754_v25, 5 }
 0x411   : > { %v6975_v61 = vsel %vm11443_vm2, %v6973_v58, %v6974_v39  ;;  %v11046_v39 = vld [vmem:[#allocation3 + $0xc8] sm:$0xff]  }
 0x412   : > { %10040 = vmatpush3.bf16.msra.mxu1 %v11038_v47  ;;  %v13767_v49 = vcombine.low %v6972_v46, %v6975_v61  ;;  %v5988_v47 = vrot.slane %v5986_v14, 4  ;;  %v5994_v46 = vsel %vm11443_vm2, %v8881_v53, %v5993_v27  ;;  %v13796_v61 = vcombine.low %v6001_v21, %v6004_v11  ;;  %v11048_v53 = vld [vmem:[#allocation3 + $0xd8] sm:$0xff]   ;;  %v11122_v11 = vld [vmem:[#allocation2 + $0x3c] sm:$0xf] }
 0x413   : > { %10041 = vmatprep.subr.bf16.mxu1 %v11041_v44  ;;  %v6009_v14 = vrot.slane %v6007_v35, 4 }
 0x414   : > { %v5990_v16 = vsel %vm11443_vm2, %v5988_v47, %v5989_v56  ;;  %v6010_v47 = vrot.slane %v11118_v15, 5  ;;  %v6017_v56 = vrot.slane %v11119_v2, 5  ;;  %v11052_v15 = vld [vmem:[#allocation3 + $0xf8] sm:$0xff]   ;;  %v11054_v2 = vld [vmem:[#allocation3 + $0x108] sm:$0xff]  }
 0x415   : > { %10010 = vmatmul.mubr.bf16.gmra.mrb[32].mxu1 %v13591_v51  ;;  %v8896_v33 = vcombine.low %v5987_v29, %v5990_v16  ;;  %v11047_v29 = vld [vmem:[#allocation3 + $0xd0] sm:$0xff]   ;;  %v11120_v16 = vld [vmem:[#allocation2 + $0x24] sm:$0xf] }
 0x416   : > { %10013 = vmatprep.mubr.bf16.mxu1 %v13595_v43  ;;  %10042 = vmatpush3.bf16.msra.mxu1 %v11041_v44  ;;  %v5997_v44 = vsel %vm11443_vm2, %v5995_v37, %v5996_v38  ;;  %v8883_v27 = vrot.slane %v11120_v16, 9  ;;  %v6011_v9 = vsel %vm11443_vm2, %v6009_v14, %v6010_v47  ;;  %v11121_v37 = vld [vmem:[#allocation2 + $0x30] sm:$0xf]  ;;  %v11050_v14 = vld [vmem:[#allocation3 + $0xe8] sm:$0xff]   ;;  %v11053_v47 = vld [vmem:[#allocation3 + $0x100] sm:$0xff]  }
 0x417   : > { %10043 = vmatprep.subr.bf16.mxu1 %v11044_v59  ;;  %v13792_v58 = vcombine.low %v5994_v46, %v5997_v44  ;;  %v8884_v55 = vrot.slane %v11121_v37, 9  ;;  %v8886_v46 = vrot.slane %v13368_v13, 9  ;;  %v11051_v13 = vld [vmem:[#allocation3 + $0xf0] sm:$0xff]   ;;  %v11056_v16 = vld [vmem:[#allocation3 + $0x118] sm:$0xff]   ;;  %v11062_v37 = vld [vmem:[#allocation3 + $0x140] sm:$0xff]  }
 0x418   : > { %v6008_v38 = vsel %vm11443_vm2, %v8883_v27, %v6007_v35  ;;  %v6031_v35 = vrot.slane %v13393_v12, 5  ;;  %v11057_v27 = vld [vmem:[#allocation3 + $0x120] sm:$0xff]  }
 0x419   : > { %v13808_v54 = vcombine.low %v6008_v38, %v6011_v9  ;;  %v11059_v9 = vld [vmem:[#allocation3 + $0x130] sm:$0xff]   ;;  %v14707_v38 = vld [vmem:[#allocation30_spill] sm:$0xff] }
 0x41a   : > { %10044 = vmatpush3.bf16.msra.mxu1 %v11044_v59  ;;  %v6014_v59 = vrot.slane %v11117_v24, 5  ;;  %v8885_v24 = vrot.slane %v11122_v11, 9  ;;  %v14711_v11 = vld [vmem:[#allocation47_spill] sm:$0xff] }
 0x41b   : > { %10077 = vmatprep.subr.bf16.mxu1 %v11045_v52 }
 0x41c   : > { %v6016_v48 = vrot.slane %v6014_v59, 4  ;;  %v6015_v28 = vsel %vm11443_vm2, %v8884_v55, %v6014_v59  ;;  %v13859_v55 = vcombine.low %v13746_v31, %v13748_v50 }
 0x41d   : > { %10014 = vmatmul.mubr.bf16.gmra.mrb[36].mxu1 %v13599_v20 }
 0x41e   : > { %10017 = vmatprep.mubr.bf16.mxu1 %v13605_v17  ;;  %v6018_v6 = vsel %vm11443_vm2, %v6016_v48, %v6017_v56  ;;  %v14705_v56 = vld [vmem:[#allocation51_spill] sm:$0xff] }
 0x41f   : > { %v13812_v44 = vcombine.low %v6015_v28, %v6018_v6  ;;  %v14706_v6 = vld [vmem:[#allocation25_spill] sm:$0xff]  ;;  %v14708_v28 = vld [vmem:[#allocation35_spill] sm:$0xff] }
 0x425   : > { %10018 = vmatmul.mubr.bf16.gmra.mrb[40].mxu1 %v13609_v40 }
 0x426   : > { %10021 = vmatprep.mubr.bf16.mxu1 %v13613_v3 }
 0x42d   : > { %10022 = vmatmul.mubr.bf16.gmra.mrb[44].mxu1 %v13619_v7 }
 0x42e   : > { %10025 = vmatprep.mubr.bf16.mxu1 %v13623_v8 }
 0x435   : > { %10026 = vmatmul.mubr.bf16.gmra.mrb[48].mxu1 %v13627_v19 }
 0x436   : > { %10045 = vmatprep.mubr.bf16.mxu1 %v8896_v33  ;;  %v6021_v33 = vrot.slane %v13338_v62, 5 }
 0x438   : > { %v6023_v62 = vrot.slane %v6021_v33, 4 }
 0x43d   : > { %10046 = vmatmul.mubr.bf16.vlgmr.msra.gmra.mrb[20].mxu1 %v13792_v58 }
 0x43e   : > { %10049 = vmatprep.mubr.bf16.mxu1 %v13796_v61  ;;  %10078 = vmatpush3.bf16.msra.mxu1 %v11045_v52  ;;  %v6028_v52 = vrot.slane %v13386_v63, 5  ;;  %v6024_v63 = vrot.slane %v13346_v26, 5 }
 0x43f   : > { %10079 = vmatprep.subr.bf16.mxu1 %v11046_v39 }
 0x440   : > { %v6030_v4 = vrot.slane %v6028_v52, 4  ;;  %v6025_v59 = vsel %vm11443_vm2, %v6023_v62, %v6024_v63  ;;  %v6029_v12 = vsel %vm11443_vm2, %v8886_v46, %v6028_v52  ;;  %v11063_v52 = vld [vmem:[#allocation3 + $0x148] sm:$0xff]   ;;  %v11065_v62 = vld [vmem:[#allocation3 + $0x158] sm:$0xff]  }
 0x441   : > { %v14710_v63 = vld [vmem:[#allocation42_spill] sm:$0xff]  ;;  %v11069_v46 = vld [vmem:[#allocation3 + $0x178] sm:$0xff]  }
 0x442   : > { %10080 = vmatpush3.bf16.msra.mxu1 %v11046_v39  ;;  %v6032_v21 = vsel %vm11443_vm2, %v6030_v4, %v6031_v35  ;;  %v6022_v39 = vsel %vm11443_vm2, %v8885_v24, %v6021_v33  ;;  %v11061_v33 = vld [vmem:[#allocation3 + $0x138] sm:$0xff]   ;;  %v14709_v4 = vld [vmem:[#allocation39_spill] sm:$0xff]  ;;  %v11066_v35 = vld [vmem:[#allocation3 + $0x160] sm:$0xff]  }
 0x443   : > { %10081 = vmatprep.subr.bf16.mxu1 %v11047_v29  ;;  %v13825_v26 = vcombine.low %v6022_v39, %v6025_v59  ;;  %v13829_v48 = vcombine.low %v6029_v12, %v6032_v21  ;;  %v14712_v24 = vld [vmem:[#allocation52_spill] sm:$0xff]  ;;  %v11068_v59 = vld [vmem:[#allocation3 + $0x170] sm:$0xff]   ;;  %v14714_v39 = vld [vmem:[#allocation10_spill] sm:$0xff] }
 0x444   : > { %v14713_v21 = vld [vmem:[#allocation55_spill] sm:$0xff]  ;;  %v11070_v12 = vld [vmem:[#allocation3 + $0x180] sm:$0xff]  }
 0x445   : > { %10050 = vmatmul.mubr.bf16.gmra.mrb[24].mxu1 %v13808_v54 }
 0x446   : > { %10053 = vmatprep.mubr.bf16.mxu1 %v13812_v44  ;;  %10082 = vmatpush3.bf16.msra.mxu1 %v11047_v29  ;;  %v11055_v29 = vld [vmem:[#allocation3 + $0x110] sm:$0xff]  }
 0x447   : > { %10083 = vmatprep.subr.bf16.mxu1 %v11048_v53 }
 0x44a   : > { %10084 = vmatpush3.bf16.msra.mxu1 %v11048_v53  ;;  %v11064_v53 = vld [vmem:[#allocation3 + $0x150] sm:$0xff]  }
 0x44b   : > { %10085 = vmatprep.subr.bf16.mxu1 %v11049_v23 }
 0x44d   : > { %10054 = vmatmul.mubr.bf16.gmra.mrb[28].mxu1 %v13825_v26 }
 0x44e   : > { %10057 = vmatprep.mubr.bf16.mxu1 %v13829_v48  ;;  %10086 = vmatpush3.bf16.msra.mxu1 %v11049_v23  ;;  %v11067_v23 = vld [vmem:[#allocation3 + $0x168] sm:$0xff]  }
 0x44f   : > { %10087 = vmatprep.subr.bf16.mxu1 %v11050_v14 }
 0x452   : > { %10088 = vmatpush3.bf16.msra.mxu1 %v11050_v14  ;;  %v14715_v14 = vld [vmem:[#allocation11_spill] sm:$0xff] }
 0x453   : > { %10089 = vmatprep.subr.bf16.mxu1 %v11051_v13 }
 0x455   : > { %10058 = vmatmul.mubr.bf16.gmra.mrb[32].mxu1 %v13682_v45 }
 0x456   : > { %10061 = vmatprep.mubr.bf16.mxu1 %v13688_v57  ;;  %10090 = vmatpush3.bf16.msra.mxu1 %v11051_v13  ;;  %v14716_v13 = vld [vmem:[#allocation12_spill] sm:$0xff] }
 0x457   : > { %10091 = vmatprep.subr.bf16.mxu1 %v11052_v15 }
 0x45a   : > { %10092 = vmatpush3.bf16.msra.mxu1 %v11052_v15  ;;  %v6696_v15 = vshrl.u32 %v13748_v50, 16 }
 0x45b   : > { %10125 = vmatprep.subr.bf16.mxu1 %v11053_v47 }
 0x45d   : > { %10062 = vmatmul.mubr.bf16.gmra.mrb[36].mxu1 %v13704_v5 }
 0x45e   : > { %10065 = vmatprep.mubr.bf16.mxu1 %v13710_v18 }
 0x465   : > { %10066 = vmatmul.mubr.bf16.gmra.mrb[40].mxu1 %v13720_v10 }
 0x466   : > { %10069 = vmatprep.mubr.bf16.mxu1 %v13726_v36 }
 0x46d   : > { %10070 = vmatmul.mubr.bf16.gmra.mrb[44].mxu1 %v13740_v0 }
 0x46e   : > { %10073 = vmatprep.mubr.bf16.mxu1 %v13750_v60 }
 0x475   : > { %10074 = vmatmul.mubr.bf16.gmra.mrb[48].mxu1 %v13756_v22 }
 0x476   : > { %10093 = vmatprep.mubr.bf16.mxu1 %v13638_v42  ;;  %v11058_v42 = vld [vmem:[#allocation3 + $0x128] sm:$0xff]  }
 0x47d   : > { %10094 = vmatmul.mubr.bf16.vlgmr.msra.gmra.mrb[20].mxu1 %v14705_v56 }
 0x47e   : > { %10097 = vmatprep.mubr.bf16.mxu1 %v13655_v41  ;;  %10126 = vmatpush3.bf16.msra.mxu1 %v11053_v47  ;;  %v6692_v47 = vshll.u32 %v13748_v50, 16  ;;  %v14720_v50 = vld [vmem:[#allocation17_spill] sm:$0xff] }
 0x47f   : > { %10127 = vmatprep.subr.bf16.mxu1 %v11054_v2 }
 0x482   : > { %10128 = vmatpush3.bf16.msra.mxu1 %v11054_v2  ;;  %v6683_v2 = vshrl.u32 %v13746_v31, 16 }
 0x483   : > { %10129 = vmatprep.subr.bf16.mxu1 %v11055_v29 }
 0x485   : > { %10098 = vmatmul.mubr.bf16.gmra.mrb[24].mxu1 %v13659_v34 }
 0x486   : > { %10101 = vmatprep.mubr.bf16.mxu1 %v13665_v1  ;;  %10130 = vmatpush3.bf16.msra.mxu1 %v11055_v29  ;;  %v6686_v29 = vshll.u32 %v13746_v31, 16  ;;  %v4276_v31 = vld [vmem:[#allocation2 + $0xcc] sm:$0x1] }
 0x487   : > { %10131 = vmatprep.subr.bf16.mxu1 %v11056_v16 }
 0x48a   : > { %10132 = vmatpush3.bf16.msra.mxu1 %v11056_v16  ;;  %v6694_v16 = vrot.slane %v6692_v47, 5  ;;  %v11128_v47 = vld [vmem:[%s11427_s25 + $0x20] sm:$0x3] }
 0x48b   : > { %10133 = vmatprep.subr.bf16.mxu1 %v11057_v27 }
 0x48d   : > { %10102 = vmatmul.mubr.bf16.gmra.mrb[28].mxu1 %v13672_v32 }
 0x48e   : > { %10105 = vmatprep.mubr.bf16.mxu1 %v13591_v51  ;;  %10134 = vmatpush3.bf16.msra.mxu1 %v11057_v27  ;;  %v6698_v27 = vrot.slane %v6696_v15, 4  ;;  %v4277_v15 = vsel %vm13021_vm11, 0, %v4276_v31 }
 0x48f   : > { %10135 = vmatprep.subr.bf16.mxu1 %v11058_v42  ;;  %4278 = vst [vmem:[#allocation2 + $0xcc] sm:$0x1] %v4277_v15 }
 0x492   : > { %10136 = vmatpush3.bf16.msra.mxu1 %v11058_v42  ;;  %v14717_v42 = vld [vmem:[#allocation13_spill] sm:$0xff] }
 0x493   : > { %10137 = vmatprep.subr.bf16.mxu1 %v11059_v9 }
 0x495   : > { %10106 = vmatmul.mubr.bf16.gmra.mrb[32].mxu1 %v13595_v43 }
 0x496   : > { %10109 = vmatprep.mubr.bf16.mxu1 %v13599_v20  ;;  %10138 = vmatpush3.bf16.msra.mxu1 %v11059_v9  ;;  %v14718_v9 = vld [vmem:[#allocation14_spill] sm:$0xff] }
 0x497   : > { %10139 = vmatprep.subr.bf16.mxu1 %v11061_v33 }
 0x49a   : > { %10140 = vmatpush3.bf16.msra.mxu1 %v11061_v33  ;;  %v6685_v33 = vrot.slane %v6683_v2, 4 }
 0x49b   : > { %10173 = vmatprep.subr.bf16.mxu1 %v11062_v37 }
 0x49d   : > { %10110 = vmatmul.mubr.bf16.gmra.mrb[36].mxu1 %v13605_v17 }
 0x49e   : > { %10113 = vmatprep.mubr.bf16.mxu1 %v13609_v40 }
 0x4a5   : > { %10114 = vmatmul.mubr.bf16.gmra.mrb[40].mxu1 %v13613_v3 }
 0x4a6   : > { %10117 = vmatprep.mubr.bf16.mxu1 %v13619_v7 }
 0x4ad   : > { %10118 = vmatmul.mubr.bf16.gmra.mrb[44].mxu1 %v13623_v8 }
 0x4ae   : > { %10121 = vmatprep.mubr.bf16.mxu1 %v13627_v19 }
 0x4b5   : > { %10122 = vmatmul.mubr.bf16.gmra.mrb[48].mxu1 %v13859_v55 }
 0x4b6   : > { %10141 = vmatprep.mubr.bf16.mxu1 %v14706_v6  ;;  %v6699_v6 = vor.u32 %v6698_v27, %v6694_v16  ;;  %v14723_v27 = vld [vmem:[#allocation23_spill] sm:$0xff] }
 0x4bd   : > { %10142 = vmatmul.mubr.bf16.vlgmr.msra.gmra.mrb[20].mxu1 %v14707_v38 }
 0x4be   : > { %10145 = vmatprep.mubr.bf16.mxu1 %v14708_v28  ;;  %10174 = vmatpush3.bf16.msra.mxu1 %v11062_v37  ;;  %v6688_v37 = vrot.slane %v6686_v29, 5 }
 0x4bf   : > { %10175 = vmatprep.subr.bf16.mxu1 %v11063_v52 }
 0x4c2   : > { %10176 = vmatpush3.bf16.msra.mxu1 %v11063_v52  ;;  %v6689_v52 = vor.u32 %v6688_v37, %v6685_v33  ;;  %v11079_v33 = vld [vmem:[#allocation3 + $0x1c8] sm:$0xff]  }
 0x4c3   : > { %10177 = vmatprep.subr.bf16.mxu1 %v11064_v53 }
 0x4c5   : > { %10146 = vmatmul.mubr.bf16.gmra.mrb[24].mxu1 %v14709_v4 }
 0x4c6   : > { %10149 = vmatprep.mubr.bf16.mxu1 %v14710_v63  ;;  %10178 = vmatpush3.bf16.msra.mxu1 %v11064_v53  ;;  %v6702_v53 = vshll.u32 %v13754_v25, 16  ;;  %v4912_v25 = vld [vmem:[#allocation2 + $0xcc] sm:$0xf] }
 0x4c7   : > { %10179 = vmatprep.subr.bf16.mxu1 %v11065_v62  ;;  %v4913_v37 = vsel %vm13047_vm0, %v14723_v27, %v4912_v25 }
 0x4c8   : > { %4914 = vst [vmem:[#allocation2 + $0xcc] sm:$0xf] %v4913_v37  ;;  %v11080_v37 = vld [vmem:[#allocation3 + $0x1d0] sm:$0xff]  }
 0x4ca   : > { %10180 = vmatpush3.bf16.msra.mxu1 %v11065_v62  ;;  %v6700_v62 = vrot.slane %v6699_v6, 4  ;;  %v11071_v6 = vld [vmem:[#allocation3 + $0x188] sm:$0xff]  }
 0x4cb   : > { %10181 = vmatprep.subr.bf16.mxu1 %v11066_v35 }
 0x4cd   : > { %10150 = vmatmul.mubr.bf16.gmra.mrb[28].mxu1 %v14711_v11 }
 0x4ce   : > { %10153 = vmatprep.mubr.bf16.mxu1 %v14712_v24  ;;  %10182 = vmatpush3.bf16.msra.mxu1 %v11066_v35  ;;  %v14719_v35 = vld [vmem:[#allocation15_spill] sm:$0xff] }
 0x4cf   : > { %10183 = vmatprep.subr.bf16.mxu1 %v11067_v23 }
 0x4d2   : > { %10184 = vmatpush3.bf16.msra.mxu1 %v11067_v23  ;;  %v6690_v23 = vrot.slane %v6689_v52, 4  ;;  %v11075_v52 = vld [vmem:[#allocation3 + $0x1a8] sm:$0xff]  }
 0x4d3   : > { %10185 = vmatprep.subr.bf16.mxu1 %v11068_v59 }
 0x4d4   : > { %v6695_v2 = vsel %vm11644_vm5, %v6690_v23, %v6694_v16  ;;  %v11072_v16 = vld [vmem:[#allocation3 + $0x190] sm:$0xff]   ;;  %v4332_v23 = vld [vmem:[#allocation2 + $0xd4] sm:$0x1] }
 0x4d5   : > { %10154 = vmatmul.mubr.bf16.gmra.mrb[32].mxu1 %v14713_v21  ;;  %v4333_v31 = vsel %vm13028_vm13, 0, %v4332_v23 }
 0x4d6   : > { %10157 = vmatprep.mubr.bf16.mxu1 %v14714_v39  ;;  %10186 = vmatpush3.bf16.msra.mxu1 %v11068_v59  ;;  %v6704_v59 = vrot.slane %v6702_v53, 5  ;;  %v11077_v53 = vld [vmem:[#allocation3 + $0x1b8] sm:$0xff]   ;;  %4334 = vst [vmem:[#allocation2 + $0xd4] sm:$0x1] %v4333_v31 }
 0x4d7   : > { %10187 = vmatprep.subr.bf16.mxu1 %v11069_v46 }
 0x4d8   : > { %v6705_v30 = vsel %vm11644_vm5, %v6700_v62, %v6704_v59  ;;  %v11078_v62 = vld [vmem:[#allocation3 + $0x1c0] sm:$0xff]  }
 0x4d9   : > { %v13888_v29 = vcombine.low %v6695_v2, %v6705_v30  ;;  %v11073_v30 = vld [vmem:[#allocation3 + $0x198] sm:$0xff]   ;;  %v14726_v2 = vld [vmem:[#allocation22_spill] sm:$0xff] }
 0x4da   : > { %10188 = vmatpush3.bf16.msra.mxu1 %v11069_v46  ;;  %v14727_v25 = vrot.slane %v14726_v2, 4  ;;  %v11083_v46 = vld [vmem:[#allocation3 + $0x1e8] sm:$0xff]  }
 0x4db   : > { %10221 = vmatprep.subr.bf16.mxu1 %v11070_v12 }
 0x4dd   : > { %10158 = vmatmul.mubr.bf16.gmra.mrb[36].mxu1 %v14715_v14  ;;  %v4916_v15 = vld [vmem:[#allocation2 + $0xd4] sm:$0x1] }
 0x4de   : > { %10161 = vmatprep.mubr.bf16.mxu1 %v14716_v13  ;;  %v4917_v27 = vsel %vm13021_vm11, %v14727_v25, %v4916_v15  ;;  %v13991_v15 = vld [vmem:[%s14196_s4] ss:$0 sm:$0xff] }
 0x4df   : > { %4918 = vst [vmem:[#allocation2 + $0xd4] sm:$0x1] %v4917_v27 }
 0x4e5   : > { %10162 = vmatmul.mubr.bf16.gmra.mrb[40].mxu1 %v14717_v42 }
 0x4e6   : > { %10165 = vmatprep.mubr.bf16.mxu1 %v14718_v9 }
 0x4ed   : > { %10166 = vmatmul.mubr.bf16.gmra.mrb[44].mxu1 %v14719_v35 }
 0x4ee   : > { %10169 = vmatprep.mubr.bf16.mxu1 %v14720_v50 }
 0x4f5   : > { %10170 = vmatmul.mubr.bf16.gmra.mrb[48].mxu1 %v13888_v29 }
 0x4f6   : > { %10189 = vmatprep.mubr.bf16.mxu1 %v13792_v58  ;;  %v11074_v58 = vld [vmem:[#allocation3 + $0x1a0] sm:$0xff]  }
 0x4fd   : > { %10190 = vmatmul.mubr.bf16.vlgmr.msra.gmra.mrb[20].mxu1 %v13796_v61 }
 0x4fe   : > { %10193 = vmatprep.mubr.bf16.mxu1 %v13808_v54  ;;  %10222 = vmatpush3.bf16.msra.mxu1 %v11070_v12  ;;  %v11076_v12 = vld [vmem:[#allocation3 + $0x1b0] sm:$0xff]  }
 0x4ff   : > { %10223 = vmatprep.subr.bf16.mxu1 %v11071_v6 }
 0x502   : > { %10224 = vmatpush3.bf16.msra.mxu1 %v11071_v6  ;;  %v11081_v6 = vld [vmem:[#allocation3 + $0x1d8] sm:$0xff]  }
 0x503   : > { %10225 = vmatprep.subr.bf16.mxu1 %v11072_v16 }
 0x505   : > { %10194 = vmatmul.mubr.bf16.gmra.mrb[24].mxu1 %v13812_v44 }
 0x506   : > { %10197 = vmatprep.mubr.bf16.mxu1 %v13825_v26  ;;  %10226 = vmatpush3.bf16.msra.mxu1 %v11072_v16 }
 0x507   : > { %10227 = vmatprep.subr.bf16.mxu1 %v11073_v30 }
 0x50a   : > { %10228 = vmatpush3.bf16.msra.mxu1 %v11073_v30 }
 0x50b   : > { %10229 = vmatprep.subr.bf16.mxu1 %v11074_v58 }
 0x50d   : > { %10198 = vmatmul.mubr.bf16.gmra.mrb[28].mxu1 %v13829_v48 }
 0x50e   : > { %10201 = vmatprep.mubr.bf16.mxu1 %v13682_v45  ;;  %10230 = vmatpush3.bf16.msra.mxu1 %v11074_v58 }
 0x50f   : > { %10231 = vmatprep.subr.bf16.mxu1 %v11075_v52 }
 0x512   : > { %10232 = vmatpush3.bf16.msra.mxu1 %v11075_v52 }
 0x513   : > { %10233 = vmatprep.subr.bf16.mxu1 %v11076_v12 }
 0x515   : > { %10202 = vmatmul.mubr.bf16.gmra.mrb[32].mxu1 %v13688_v57 }
 0x516   : > { %10205 = vmatprep.mubr.bf16.mxu1 %v13704_v5  ;;  %10234 = vmatpush3.bf16.msra.mxu1 %v11076_v12 }
 0x517   : > { %10235 = vmatprep.subr.bf16.mxu1 %v11077_v53 }
 0x51a   : > { %10236 = vmatpush3.bf16.msra.mxu1 %v11077_v53 }
 0x51b   : > { %10269 = vmatprep.subr.bf16.mxu1 %v11078_v62 }
 0x51d   : > { %10206 = vmatmul.mubr.bf16.gmra.mrb[36].mxu1 %v13710_v18 }
 0x51e   : > { %10209 = vmatprep.mubr.bf16.mxu1 %v13720_v10 }
 0x525   : > { %10210 = vmatmul.mubr.bf16.gmra.mrb[40].mxu1 %v13726_v36 }
 0x526   : > { %10213 = vmatprep.mubr.bf16.mxu1 %v13740_v0 }
 0x52d   : > { %10214 = vmatmul.mubr.bf16.gmra.mrb[44].mxu1 %v13750_v60 }
 0x52e   : > { %10217 = vmatprep.mubr.bf16.mxu1 %v13756_v22 }
 0x535   : > { %10218 = vmatmul.mubr.bf16.gmra.mrb[48].mxu1 %v13767_v49 }
 0x536   : > { %10237 = vmatprep.mubr.bf16.mxu1 %v14705_v56  ;;  %v11082_v56 = vld [vmem:[#allocation3 + $0x1e0] sm:$0xff]  }
 0x53d   : > { %10238 = vmatmul.mubr.bf16.vlgmr.msra.gmra.mrb[20].mxu1 %v13655_v41  ;;  %v11086_v41 = vld [vmem:[#allocation3 + $0x1f8] sm:$0xff]  }
 0x53e   : > { %10241 = vmatprep.mubr.bf16.mxu1 %v13659_v34  ;;  %10270 = vmatpush3.bf16.msra.mxu1 %v11078_v62  ;;  %v11084_v34 = vld [vmem:[#allocation3 + $0x1f0] sm:$0xff]  }
 0x53f   : > { %10271 = vmatprep.subr.bf16.mxu1 %v11079_v33 }
 0x542   : > { %10272 = vmatpush3.bf16.msra.mxu1 %v11079_v33 }
 0x543   : > { %10273 = vmatprep.subr.bf16.mxu1 %v11080_v37 }
 0x545   : > { %10242 = vmatmul.mubr.bf16.gmra.mrb[24].mxu1 %v13665_v1  ;;  %v11087_v1 = vld [vmem:[#allocation3 + $0x200] sm:$0xff]  }
 0x546   : > { %10245 = vmatprep.mubr.bf16.mxu1 %v13672_v32  ;;  %10274 = vmatpush3.bf16.msra.mxu1 %v11080_v37  ;;  %v11094_v32 = vld [vmem:[#allocation3 + $0x238] sm:$0xff]   ;;  %v11129_v37 = vld [vmem:[%s11427_s25 + $0x3c] sm:$0xf] }
 0x547   : > { %10275 = vmatprep.subr.bf16.mxu1 %v11081_v6 }
 0x54a   : > { %10276 = vmatpush3.bf16.msra.mxu1 %v11081_v6  ;;  %v8067_v6 = vunpack.c.l.bf16 %v11129_v37 }
 0x54b   : > { %10277 = vmatprep.subr.bf16.mxu1 %v11082_v56 }
 0x54d   : > { %10246 = vmatmul.mubr.bf16.gmra.mrb[28].mxu1 %v13591_v51  ;;  %v13931_v51 = vld [vmem:[#allocation2 + $0xcc] sm:$0xf] }
 0x54e   : > { %10249 = vmatprep.mubr.bf16.mxu1 %v13595_v43  ;;  %10278 = vmatpush3.bf16.msra.mxu1 %v11082_v56  ;;  %v13933_v43 = vld [vmem:[#allocation2 + $0xd0] sm:$0xf]  ;;  %v11130_v56 = vld [vmem:[%s11427_s25 + $0x40] sm:$0xf] }
 0x54f   : > { %10279 = vmatprep.subr.bf16.mxu1 %v11083_v46 }
 0x552   : > { %10280 = vmatpush3.bf16.msra.mxu1 %v11083_v46  ;;  %v8068_v46 = vunpack.c.l.bf16 %v11130_v56 }
 0x553   : > { %10281 = vmatprep.subr.bf16.mxu1 %v11084_v34 }
 0x555   : > { %10250 = vmatmul.mubr.bf16.gmra.mrb[32].mxu1 %v13599_v20  ;;  %v8948_v20 = vcombine.low %v13931_v51, %v13933_v43 }
 0x556   : > { %10253 = vmatprep.mubr.bf16.mxu1 %v13605_v17  ;;  %10282 = vmatpush3.bf16.msra.mxu1 %v11084_v34  ;;  %v11088_v17 = vld [vmem:[#allocation3 + $0x208] sm:$0xff]  }
 0x557   : > { %10283 = vmatprep.subr.bf16.mxu1 %v11086_v41 }
 0x55a   : > { %10284 = vmatpush3.bf16.msra.mxu1 %v11086_v41 }
 0x55b   : > { %10317 = vmatprep.subr.bf16.mxu1 %v11087_v1 }
 0x55d   : > { %10254 = vmatmul.mubr.bf16.gmra.mrb[36].mxu1 %v13609_v40  ;;  %v11089_v40 = vld [vmem:[#allocation3 + $0x210] sm:$0xff]  }
 0x55e   : > { %10257 = vmatprep.mubr.bf16.mxu1 %v13613_v3  ;;  %v11090_v3 = vld [vmem:[#allocation3 + $0x218] sm:$0xff]  }
 0x565   : > { %10258 = vmatmul.mubr.bf16.gmra.mrb[40].mxu1 %v13619_v7  ;;  %v11091_v7 = vld [vmem:[#allocation3 + $0x220] sm:$0xff]  }
 0x566   : > { %10261 = vmatprep.mubr.bf16.mxu1 %v13623_v8  ;;  %v11092_v8 = vld [vmem:[#allocation3 + $0x228] sm:$0xff]  }
 0x56d   : > { %10262 = vmatmul.mubr.bf16.gmra.mrb[44].mxu1 %v13627_v19  ;;  %v11093_v19 = vld [vmem:[#allocation3 + $0x230] sm:$0xff]  }
 0x56e   : > { %10265 = vmatprep.mubr.bf16.mxu1 %v13859_v55  ;;  %v7503_v55 = vshrl.u32 %v13931_v51, 16 }
 0x575   : > { %10266 = vmatmul.mubr.bf16.gmra.mrb[48].mxu1 %v8948_v20  ;;  %v11132_v20 = vld [vmem:[%s11427_s25 + $0x34] sm:$0xf] }
 0x576   : > { %10285 = vmatprep.mubr.bf16.mxu1 %v14707_v38  ;;  %v7506_v38 = vshll.u32 %v13931_v51, 16 }
 0x57d   : > { %10286 = vmatmul.mubr.bf16.vlgmr.msra.gmra.mrb[20].mxu1 %v14708_v28  ;;  %v7516_v28 = vshrl.u32 %v13933_v43, 16 }
 0x57e   : > { %10289 = vmatprep.mubr.bf16.mxu1 %v14709_v4  ;;  %10318 = vmatpush3.bf16.msra.mxu1 %v11087_v1  ;;  %v7512_v4 = vshll.u32 %v13933_v43, 16 }
 0x57f   : > { %10319 = vmatprep.subr.bf16.mxu1 %v11088_v17 }
 0x582   : > { %10320 = vmatpush3.bf16.msra.mxu1 %v11088_v17  ;;  %v8065_v17 = vunpack.c.l.bf16 %v11132_v20 }
 0x583   : > { %10321 = vmatprep.subr.bf16.mxu1 %v11089_v40 }
 0x585   : > { %10290 = vmatmul.mubr.bf16.gmra.mrb[24].mxu1 %v14710_v63  ;;  %v7505_v63 = vrot.slane %v7503_v55, 4 }
 0x586   : > { %10293 = vmatprep.mubr.bf16.mxu1 %v14711_v11  ;;  %10322 = vmatpush3.bf16.msra.mxu1 %v11089_v40  ;;  %v7508_v11 = vrot.slane %v7506_v38, 5 }
 0x587   : > { %10323 = vmatprep.subr.bf16.mxu1 %v11090_v3 }
 0x58a   : > { %10324 = vmatpush3.bf16.msra.mxu1 %v11090_v3 }
 0x58b   : > { %10325 = vmatprep.subr.bf16.mxu1 %v11091_v7 }
 0x58d   : > { %10294 = vmatmul.mubr.bf16.gmra.mrb[28].mxu1 %v14712_v24  ;;  %v7514_v24 = vrot.slane %v7512_v4, 5  ;;  %v11134_v4 = vld [vmem:[%s11427_s25 + $0x38] sm:$0x3] }
 0x58e   : > { %10297 = vmatprep.mubr.bf16.mxu1 %v14713_v21  ;;  %10326 = vmatpush3.bf16.msra.mxu1 %v11091_v7  ;;  %v7518_v21 = vrot.slane %v7516_v28, 4 }
 0x58f   : > { %10327 = vmatprep.subr.bf16.mxu1 %v11092_v8 }
 0x592   : > { %10328 = vmatpush3.bf16.msra.mxu1 %v11092_v8  ;;  %v11133_v8 = vld [vmem:[%s11427_s25 + $0x44] sm:$0x3] }
 0x593   : > { %10329 = vmatprep.subr.bf16.mxu1 %v11093_v19 }
 0x595   : > { %10298 = vmatmul.mubr.bf16.gmra.mrb[32].mxu1 %v14714_v39  ;;  %v4972_v39 = vld [vmem:[#allocation2 + $0xd4] sm:$0x1] }
 0x596   : > { %10301 = vmatprep.mubr.bf16.mxu1 %v14715_v14  ;;  %10330 = vmatpush3.bf16.msra.mxu1 %v11093_v19  ;;  %v7509_v14 = vor.u32 %v7508_v11, %v7505_v63  ;;  %v7522_v16 = vshll.u32 %v4972_v39, 16  ;;  %v8069_v19 = vunpack.c.l.bf16 %v11133_v8  ;;  %v8066_v63 = vunpack.c.l.bf16 %v11134_v4  ;;  %v11143_v4 = vld [vmem:[%s11427_s25 + $0x60] sm:$0xf] }
 0x597   : > { %10331 = vmatprep.subr.bf16.mxu1 %v11094_v32 }
 0x598   : > { %v7510_v30 = vrot.slane %v7509_v14, 4  ;;  %v7524_v52 = vrot.slane %v7522_v16, 5 }
 0x59a   : > { %10332 = vmatpush3.bf16.msra.mxu1 %v11094_v32 }
 0x59d   : > { %10302 = vmatmul.mubr.bf16.gmra.mrb[36].mxu1 %v14716_v13  ;;  %v7519_v13 = vor.u32 %v7518_v21, %v7514_v24  ;;  %v8170_v21 = vrot.slane %v8067_v6, 2 }
 0x59e   : > { %10305 = vmatprep.mubr.bf16.mxu1 %v14717_v42  ;;  %v7515_v42 = vsel %vm11644_vm5, %v7510_v30, %v7514_v24  ;;  %v8166_v30 = vrot.slane %v8065_v17, 2 }
 0x59f   : > { %v7520_v58 = vrot.slane %v7519_v13, 4 }
 0x5a1   : > { %v7525_v12 = vsel %vm11644_vm5, %v7520_v58, %v7524_v52 }
 0x5a2   : > { %v8957_v53 = vcombine.low %v7515_v42, %v7525_v12  ;;  %v8173_v42 = vrot.slane %v8069_v19, 2  ;;  %v11142_v19 = vld [vmem:[%s11427_s25 + $0x70] sm:$0xf] }
 0x5a5   : > { %10306 = vmatmul.mubr.bf16.gmra.mrb[40].mxu1 %v14718_v9 }
 0x5a6   : > { %10309 = vmatprep.mubr.bf16.mxu1 %v14719_v35  ;;  %v11126_v35 = vld [vmem:[%s11427_s25 + $0x1c] sm:$0xf] }
 0x5ad   : > { %10310 = vmatmul.mubr.bf16.gmra.mrb[44].mxu1 %v14720_v50  ;;  %v11127_v50 = vld [vmem:[%s11427_s25 + $0x2c] sm:$0x3] }
 0x5ae   : > { %10313 = vmatprep.mubr.bf16.mxu1 %v13888_v29  ;;  %v8060_v29 = vunpack.c.l.bf16 %v11128_v47 }
 0x5b0   : > { %v8158_v25 = vrot.slane %v8060_v29, 2 }
 0x5b5   : > { %10314 = vmatmul.mubr.bf16.gmra.mrb[48].mxu1 %v8957_v53  ;;  %v8168_v53 = vrot.slane %v8066_v63, 2  ;;  %v8076_v63 = vunpack.c.l.bf16 %v11143_v4 }
 0x5b6   : > { %10333 = vmatprep.mubr.bf16.mxu1 %v13796_v61  ;;  %v7791_v61 = vrot.slane %v13933_v43, 5 }
 0x5bd   : > { %10334 = vmatmul.mubr.bf16.vlgmr.msra.gmra.mrb[20].mxu1 %v13808_v54 }
 0x5be   : > { %10337 = vmatprep.mubr.bf16.mxu1 %v13812_v44  ;;  %v11124_v44 = vld [vmem:[%s11427_s25 + $0x28] sm:$0xf] }
 0x5c5   : > { %10338 = vmatmul.mubr.bf16.gmra.mrb[24].mxu1 %v13825_v26  ;;  %v8062_v26 = vunpack.c.l.bf16 %v11124_v44  ;;  %v11137_v44 = vld [vmem:[%s11427_s25 + $0x48] sm:$0xf] }
 0x5c6   : > { %10341 = vmatprep.mubr.bf16.mxu1 %v13829_v48  ;;  %v11125_v48 = vld [vmem:[%s11427_s25 + $0x18] sm:$0xf] }
 0x5c7   : > { %v8058_v9 = vunpack.c.l.bf16 %v11125_v48  ;;  %v8161_v23 = vrot.slane %v8062_v26, 2  ;;  %v8070_v26 = vunpack.c.l.bf16 %v11137_v44  ;;  %v11138_v48 = vld [vmem:[%s11427_s25 + $0x4c] sm:$0xf] }
 0x5c9   : > { %v8155_v59 = vrot.slane %v8058_v9, 2  ;;  %v8071_v9 = vunpack.c.l.bf16 %v11138_v48 }
 0x5cd   : > { %10342 = vmatmul.mubr.bf16.gmra.mrb[28].mxu1 %v13682_v45  ;;  %v8966_v45 = vrot.slane %v13931_v51, 9  ;;  %v11131_v51 = vld [vmem:[%s11427_s25 + $0x30] sm:$0xf] }
 0x5ce   : > { %10345 = vmatprep.mubr.bf16.mxu1 %v13688_v57  ;;  %v7793_v57 = vrot.slane %v7791_v61, 4  ;;  %v8064_v43 = vunpack.c.l.bf16 %v11131_v51 }
 0x5d0   : > { %v8165_v16 = vrot.slane %v8064_v43, 2 }
 0x5d5   : > { %10346 = vmatmul.mubr.bf16.gmra.mrb[32].mxu1 %v13704_v5  ;;  %v7794_v5 = vrot.slane %v4972_v39, 5  ;;  %v8171_v39 = vrot.slane %v8068_v46, 2  ;;  %v8175_v46 = vrot.slane %v8070_v26, 2 }
 0x5d6   : > { %10349 = vmatprep.mubr.bf16.mxu1 %v13710_v18 }
 0x5dd   : > { %10350 = vmatmul.mubr.bf16.gmra.mrb[36].mxu1 %v13720_v10  ;;  %v7792_v10 = vsel %vm11443_vm2, %v8966_v45, %v7791_v61 }
 0x5de   : > { %10353 = vmatprep.mubr.bf16.mxu1 %v13726_v36  ;;  %v7795_v36 = vsel %vm11443_vm2, %v7793_v57, %v7794_v5  ;;  %vm8154_vm2 = vcmask 1045504   ;;  %v11135_v5 = vld [vmem:[%s11427_s25 + $0x54] sm:$0xf] }
 0x5df   : > { %v8172_v57 = vsel %vm8154_vm2, %v8170_v21, %v8171_v39  ;;  %v8073_v18 = vunpack.c.l.bf16 %v11135_v5 }
 0x5e5   : > { %10354 = vmatmul.mubr.bf16.gmra.mrb[40].mxu1 %v13740_v0  ;;  %v8967_v0 = vcombine.low %v7792_v10, %v7795_v36  ;;  %v11136_v10 = vld [vmem:[%s11427_s25 + $0x58] sm:$0xf] }
 0x5e6   : > { %10357 = vmatprep.mubr.bf16.mxu1 %v13750_v60  ;;  %v11123_v60 = vld [vmem:[%s11427_s25 + $0x24] sm:$0xf]  ;;  %v8074_v36 = vunpack.c.l.bf16 %v11136_v10 }
 0x5e7   : > { %v8061_v54 = vunpack.c.l.bf16 %v11123_v60 }
 0x5e8   : > { %v8181_v37 = vrot.slane %v8074_v36, 2  ;;  %v8185_v36 = vrot.slane %v8076_v63, 2 }
 0x5e9   : > { %v8160_v62 = vrot.slane %v8061_v54, 2  ;;  %v8167_v54 = vsel %vm8154_vm2, %v8165_v16, %v8166_v30 }
 0x5eb   : > { %v8162_v33 = vsel %vm8154_vm2, %v8160_v62, %v8161_v23 }
 0x5ed   : > { %10358 = vmatmul.mubr.bf16.gmra.mrb[44].mxu1 %v13756_v22  ;;  %v8059_v22 = vunpack.c.l.bf16 %v11126_v35 }
 0x5ee   : > { %10361 = vmatprep.mubr.bf16.mxu1 %v13767_v49  ;;  %v8063_v49 = vunpack.c.l.bf16 %v11127_v50  ;;  %v8174_v50 = vsel %vm8154_vm2, %v8171_v39, %v8173_v42 }
 0x5ef   : > { %v8156_v31 = vrot.slane %v8059_v22, 2 }
 0x5f0   : > { %v8163_v2 = vrot.slane %v8063_v49, 2  ;;  %v11139_v49 = vld [vmem:[%s11427_s25 + $0x5c] sm:$0x3] }
 0x5f1   : > { %v8157_v1 = vsel %vm8154_vm2, %v8155_v59, %v8156_v31  ;;  %v8159_v28 = vsel %vm8154_vm2, %v8156_v31, %v8158_v25  ;;  %v8075_v47 = vunpack.c.l.bf16 %v11139_v49  ;;  %v8169_v59 = vsel %vm8154_vm2, %v8166_v30, %v8168_v53  ;;  %v11140_v31 = vld [vmem:[%s11427_s25 + $0x50] sm:$0x3] }
 0x5f2   : > { %v8164_v7 = vsel %vm8154_vm2, %v8161_v23, %v8163_v2  ;;  %v8072_v2 = vunpack.c.l.bf16 %v11140_v31  ;;  %v11149_v31 = vld [vmem:[%s11427_s25 + $0x78] sm:$0xf] }
 0x5f3   : > { %v8183_v51 = vrot.slane %v8075_v47, 2  ;;  %v11148_v47 = vld [vmem:[%s11427_s25 + $0x88] sm:$0xf] }
 0x5f4   : > { %v8178_v20 = vrot.slane %v8072_v2, 2  ;;  %v8082_v2 = vunpack.c.l.bf16 %v11149_v31 }
 0x5f5   : > { %10362 = vmatmul.mubr.bf16.gmra.mrb[48].mxu1 %v8967_v0 }
 0x690   : > { %v10335_v27 = vpop.f32.mrb[20].mxu1 }
 0x691   : > { %v8276_v34 = vadd.f32 %v10335_v27, %v13991_v15  ;;  %v7899_v41 = vpop.f32.mrb[21].mxu1 }
 0x692   : > { %v8274_v40 = vadd.f32 %v13991_v15, %v7899_v41  ;;  %v10336_v3 = vpop.f32.mrb[22].mxu1 }
 0x693   : > { %v8308_v32 = vadd.f32 %v8276_v34, %v8162_v33  ;;  %v8277_v55 = vadd.f32 %v10336_v3, %v13991_v15  ;;  %v7902_v38 = vpop.f32.mrb[23].mxu1  ;;  %v8180_v33 = vrot.slane %v8073_v18, 2  ;;  %v8176_v34 = vrot.slane %v8071_v9, 2 }
 0x694   : > { %v8306_v11 = vadd.f32 %v8274_v40, %v8157_v1  ;;  %v8275_v24 = vadd.f32 %v13991_v15, %v7902_v38 }
 0x695   : > { %v8340_v14 = vmax.f32 %v8308_v32, 0.0  ;;  %v8309_v13 = vadd.f32 %v8277_v55, %v8164_v7  ;;  %v8182_v3 = vsel %vm8154_vm2, %v8180_v33, %v8181_v37  ;;  %v11141_v7 = vld [vmem:[%s11427_s25 + $0x6c] sm:$0xf]  ;;  %v8080_v32 = vunpack.c.l.bf16 %v11142_v19 }
 0x696   : > { %v8338_v58 = vmax.f32 %v8306_v11, 0.0  ;;  %v8307_v52 = vadd.f32 %v8275_v24, %v8159_v28  ;;  %v8079_v8 = vunpack.c.l.bf16 %v11141_v7  ;;  %v8177_v28 = vsel %vm8154_vm2, %v8175_v46, %v8176_v34  ;;  %v11144_v11 = vld [vmem:[%s11427_s25 + $0x64] sm:$0xf] }
 0x697   : > { %8372 = vst [vmem:[%s14009_s15 + $0x10] sm:$0xff] %v8340_v14  ;;  %v8341_v12 = vmax.f32 %v8309_v13, 0.0  ;;  %v8077_v24 = vunpack.c.l.bf16 %v11144_v11  ;;  %v8184_v14 = vsel %vm8154_vm2, %v8181_v37, %v8183_v51  ;;  %v11145_v13 = vld [vmem:[%s11427_s25 + $0x74] sm:$0x3]  ;;  %v8179_v42 = vsel %vm8154_vm2, %v8176_v34, %v8178_v20 }
 0x698   : > { %8370 = vst [vmem:[%s14009_s15] sm:$0xff] %v8338_v58  ;;  %v8339_v61 = vmax.f32 %v8307_v52, 0.0  ;;  %v10339_v45 = vpop.f32.mrb[24].mxu1  ;;  %v8081_v16 = vunpack.c.l.bf16 %v11145_v13  ;;  %v8191_v5 = vrot.slane %v8080_v32, 2  ;;  %v8195_v32 = vrot.slane %v8082_v2, 2 }
 0x699   : > { %8373 = vst [vmem:[%s14009_s15 + $0x18] sm:$0xff] %v8341_v12  ;;  %v8280_v0 = vadd.f32 %v10339_v45, %v13991_v15  ;;  %v7915_v60 = vpop.f32.mrb[25].mxu1  ;;  %v11146_v12 = vld [vmem:[%s11427_s25 + $0x68] sm:$0x3] }
 0x69a   : > { %8371 = vst [vmem:[%s14009_s15 + $0x8] sm:$0xff] %v8339_v61  ;;  %v8278_v35 = vadd.f32 %v13991_v15, %v7915_v60  ;;  %v10340_v22 = vpop.f32.mrb[26].mxu1  ;;  %v8078_v53 = vunpack.c.l.bf16 %v11146_v12  ;;  %v8193_v44 = vrot.slane %v8081_v16, 2  ;;  %v11154_v16 = vld [vmem:[%s11427_s25 + $0xa0] sm:$0xf] }
 0x69b   : > { %v8312_v29 = vadd.f32 %v8280_v0, %v8172_v57  ;;  %v8281_v62 = vadd.f32 %v10340_v22, %v13991_v15  ;;  %v7918_v23 = vpop.f32.mrb[27].mxu1  ;;  %v8190_v57 = vrot.slane %v8079_v8, 2  ;;  %v8186_v0 = vrot.slane %v8077_v24, 2  ;;  %v11155_v12 = vld [vmem:[%s11427_s25 + $0x90] sm:$0xf] }
 0x69c   : > { %v8310_v25 = vadd.f32 %v8278_v35, %v8167_v54  ;;  %v8279_v27 = vadd.f32 %v13991_v15, %v7918_v23  ;;  %v8188_v48 = vrot.slane %v8078_v53, 2  ;;  %v8088_v53 = vunpack.c.l.bf16 %v11155_v12 }
 0x69d   : > { %v8344_v6 = vmax.f32 %v8312_v29, 0.0  ;;  %v8313_v56 = vadd.f32 %v8281_v62, %v8174_v50  ;;  %v8192_v22 = vsel %vm8154_vm2, %v8190_v57, %v8191_v5  ;;  %v11147_v50 = vld [vmem:[%s11427_s25 + $0x84] sm:$0xf]  ;;  %v8086_v29 = vunpack.c.l.bf16 %v11148_v47 }
 0x69e   : > { %v8342_v41 = vmax.f32 %v8310_v25, 0.0  ;;  %v8311_v1 = vadd.f32 %v8279_v27, %v8169_v59  ;;  %v8085_v49 = vunpack.c.l.bf16 %v11147_v50  ;;  %v8187_v59 = vsel %vm8154_vm2, %v8185_v36, %v8186_v0  ;;  %v11150_v25 = vld [vmem:[%s11427_s25 + $0x7c] sm:$0xf] }
 0x69f   : > { %8376 = vst [vmem:[%s14009_s15 + $0x30] sm:$0xff] %v8344_v6  ;;  %v8345_v43 = vmax.f32 %v8313_v56, 0.0  ;;  %v8083_v27 = vunpack.c.l.bf16 %v11150_v25  ;;  %v8194_v6 = vsel %vm8154_vm2, %v8191_v5, %v8193_v44  ;;  %v11151_v56 = vld [vmem:[%s11427_s25 + $0x8c] sm:$0x3]  ;;  %v8189_v51 = vsel %vm8154_vm2, %v8186_v0, %v8188_v48 }
 0x6a0   : > { %8374 = vst [vmem:[%s14009_s15 + $0x20] sm:$0xff] %v8342_v41  ;;  %v8343_v17 = vmax.f32 %v8311_v1, 0.0  ;;  %v10343_v40 = vpop.f32.mrb[28].mxu1  ;;  %v8087_v46 = vunpack.c.l.bf16 %v11151_v56  ;;  %v8201_v7 = vrot.slane %v8086_v29, 2  ;;  %v8205_v29 = vrot.slane %v8088_v53, 2 }
 0x6a1   : > { %8377 = vst [vmem:[%s14009_s15 + $0x38] sm:$0xff] %v8345_v43  ;;  %v8284_v55 = vadd.f32 %v10343_v40, %v13991_v15  ;;  %v7931_v38 = vpop.f32.mrb[29].mxu1  ;;  %v11152_v43 = vld [vmem:[%s11427_s25 + $0x80] sm:$0x3] }
 0x6a2   : > { %8375 = vst [vmem:[%s14009_s15 + $0x28] sm:$0xff] %v8343_v17  ;;  %v8282_v21 = vadd.f32 %v13991_v15, %v7931_v38  ;;  %v10344_v39 = vpop.f32.mrb[30].mxu1  ;;  %v8084_v20 = vunpack.c.l.bf16 %v11152_v43  ;;  %v8203_v4 = vrot.slane %v8087_v46, 2  ;;  %v11160_v46 = vld [vmem:[%s11427_s25 + $0xb8] sm:$0xf] }
 0x6a3   : > { %v8316_v30 = vadd.f32 %v8284_v55, %v8182_v3  ;;  %v8285_v58 = vadd.f32 %v10344_v39, %v13991_v15  ;;  %v7934_v52 = vpop.f32.mrb[31].mxu1  ;;  %v8200_v3 = vrot.slane %v8085_v49, 2  ;;  %v8196_v55 = vrot.slane %v8083_v27, 2  ;;  %v11161_v43 = vld [vmem:[%s11427_s25 + $0xa8] sm:$0xf] }
 0x6a4   : > { %v8314_v61 = vadd.f32 %v8282_v21, %v8177_v28  ;;  %v8283_v45 = vadd.f32 %v13991_v15, %v7934_v52  ;;  %v8198_v11 = vrot.slane %v8084_v20, 2  ;;  %v8094_v20 = vunpack.c.l.bf16 %v11161_v43 }
 0x6a5   : > { %v8348_v18 = vmax.f32 %v8316_v30, 0.0  ;;  %v8317_v10 = vadd.f32 %v8285_v58, %v8184_v14  ;;  %v8202_v39 = vsel %vm8154_vm2, %v8200_v3, %v8201_v7  ;;  %v11153_v14 = vld [vmem:[%s11427_s25 + $0x9c] sm:$0xf]  ;;  %v8092_v30 = vunpack.c.l.bf16 %v11154_v16 }
 0x6a6   : > { %v8346_v60 = vmax.f32 %v8314_v61, 0.0  ;;  %v8315_v54 = vadd.f32 %v8283_v45, %v8179_v42  ;;  %v8091_v13 = vunpack.c.l.bf16 %v11153_v14  ;;  %v8197_v42 = vsel %vm8154_vm2, %v8195_v32, %v8196_v55  ;;  %v11156_v61 = vld [vmem:[%s11427_s25 + $0x94] sm:$0xf] }
 0x6a7   : > { %8380 = vst [vmem:[%s14009_s15 + $0x50] sm:$0xff] %v8348_v18  ;;  %v8349_v26 = vmax.f32 %v8317_v10, 0.0  ;;  %v8089_v45 = vunpack.c.l.bf16 %v11156_v61  ;;  %v8204_v18 = vsel %vm8154_vm2, %v8201_v7, %v8203_v4  ;;  %v11157_v10 = vld [vmem:[%s11427_s25 + $0xa4] sm:$0x3]  ;;  %v8199_v44 = vsel %vm8154_vm2, %v8196_v55, %v8198_v11 }
 0x6a8   : > { %8378 = vst [vmem:[%s14009_s15 + $0x40] sm:$0xff] %v8346_v60  ;;  %v8347_v9 = vmax.f32 %v8315_v54, 0.0  ;;  %v10347_v35 = vpop.f32.mrb[32].mxu1  ;;  %v8093_v36 = vunpack.c.l.bf16 %v11157_v10  ;;  %v8211_v50 = vrot.slane %v8092_v30, 2  ;;  %v8215_v30 = vrot.slane %v8094_v20, 2 }
 0x6a9   : > { %8381 = vst [vmem:[%s14009_s15 + $0x58] sm:$0xff] %v8349_v26  ;;  %v8288_v62 = vadd.f32 %v10347_v35, %v13991_v15  ;;  %v7947_v23 = vpop.f32.mrb[33].mxu1  ;;  %v11158_v26 = vld [vmem:[%s11427_s25 + $0x98] sm:$0x3] }
 0x6aa   : > { %8379 = vst [vmem:[%s14009_s15 + $0x48] sm:$0xff] %v8347_v9  ;;  %v8286_v33 = vadd.f32 %v13991_v15, %v7947_v23  ;;  %v10348_v37 = vpop.f32.mrb[34].mxu1  ;;  %v8090_v48 = vunpack.c.l.bf16 %v11158_v26  ;;  %v8213_v31 = vrot.slane %v8093_v36, 2  ;;  %v11166_v36 = vld [vmem:[%s11427_s25 + $0xd0] sm:$0xf] }
 0x6ab   : > { %v8320_v34 = vadd.f32 %v8288_v62, %v8192_v22  ;;  %v8289_v41 = vadd.f32 %v10348_v37, %v13991_v15  ;;  %v7950_v1 = vpop.f32.mrb[35].mxu1  ;;  %v8210_v22 = vrot.slane %v8091_v13, 2  ;;  %v8206_v62 = vrot.slane %v8089_v45, 2  ;;  %v11167_v26 = vld [vmem:[%s11427_s25 + $0xc0] sm:$0xf] }
 0x6ac   : > { %v8318_v17 = vadd.f32 %v8286_v33, %v8187_v59  ;;  %v8287_v40 = vadd.f32 %v13991_v15, %v7950_v1  ;;  %v8208_v25 = vrot.slane %v8090_v48, 2  ;;  %v8100_v48 = vunpack.c.l.bf16 %v11167_v26 }
 0x6ad   : > { %v8352_v8 = vmax.f32 %v8320_v34, 0.0  ;;  %v8321_v19 = vadd.f32 %v8289_v41, %v8194_v6  ;;  %v8212_v37 = vsel %vm8154_vm2, %v8210_v22, %v8211_v50  ;;  %v11159_v6 = vld [vmem:[%s11427_s25 + $0xb4] sm:$0xf]  ;;  %v8098_v34 = vunpack.c.l.bf16 %v11160_v46 }
 0x6ae   : > { %v8350_v38 = vmax.f32 %v8318_v17, 0.0  ;;  %v8319_v28 = vadd.f32 %v8287_v40, %v8189_v51  ;;  %v8097_v56 = vunpack.c.l.bf16 %v11159_v6  ;;  %v8207_v51 = vsel %vm8154_vm2, %v8205_v29, %v8206_v62  ;;  %v11162_v17 = vld [vmem:[%s11427_s25 + $0xac] sm:$0xf] }
 0x6af   : > { %8384 = vst [vmem:[%s14009_s15 + $0x70] sm:$0xff] %v8352_v8  ;;  %v8353_v63 = vmax.f32 %v8321_v19, 0.0  ;;  %v8095_v40 = vunpack.c.l.bf16 %v11162_v17  ;;  %v8214_v8 = vsel %vm8154_vm2, %v8211_v50, %v8213_v31  ;;  %v11163_v19 = vld [vmem:[%s11427_s25 + $0xbc] sm:$0x3]  ;;  %v8209_v4 = vsel %vm8154_vm2, %v8206_v62, %v8208_v25 }
 0x6b0   : > { %8382 = vst [vmem:[%s14009_s15 + $0x60] sm:$0xff] %v8350_v38  ;;  %v8351_v24 = vmax.f32 %v8319_v28, 0.0  ;;  %v10351_v21 = vpop.f32.mrb[36].mxu1  ;;  %v8099_v32 = vunpack.c.l.bf16 %v11163_v19  ;;  %v8221_v14 = vrot.slane %v8098_v34, 2  ;;  %v8225_v34 = vrot.slane %v8100_v48, 2 }
 0x6b1   : > { %8385 = vst [vmem:[%s14009_s15 + $0x78] sm:$0xff] %v8353_v63  ;;  %v8292_v58 = vadd.f32 %v10351_v21, %v13991_v15  ;;  %v7963_v52 = vpop.f32.mrb[37].mxu1  ;;  %v11164_v63 = vld [vmem:[%s11427_s25 + $0xb0] sm:$0x3] }
 0x6b2   : > { %8383 = vst [vmem:[%s14009_s15 + $0x68] sm:$0xff] %v8351_v24  ;;  %v8290_v57 = vadd.f32 %v13991_v15, %v7963_v52  ;;  %v10352_v5 = vpop.f32.mrb[38].mxu1  ;;  %v8096_v11 = vunpack.c.l.bf16 %v11164_v63  ;;  %v8223_v12 = vrot.slane %v8099_v32, 2 }
 0x6b3   : > { %v8324_v0 = vadd.f32 %v8292_v58, %v8202_v39  ;;  %v8293_v60 = vadd.f32 %v10352_v5, %v13991_v15  ;;  %v7966_v54 = vpop.f32.mrb[39].mxu1  ;;  %v8220_v39 = vrot.slane %v8097_v56, 2  ;;  %v8216_v58 = vrot.slane %v8095_v40, 2 }
 0x6b4   : > { %v8322_v9 = vadd.f32 %v8290_v57, %v8197_v42  ;;  %v8291_v35 = vadd.f32 %v13991_v15, %v7966_v54  ;;  %v8218_v61 = vrot.slane %v8096_v11, 2 }
 0x6b5   : > { %v8356_v49 = vmax.f32 %v8324_v0, 0.0  ;;  %v8325_v47 = vadd.f32 %v8293_v60, %v8204_v18  ;;  %v8222_v5 = vsel %vm8154_vm2, %v8220_v39, %v8221_v14  ;;  %v11165_v18 = vld [vmem:[%s11427_s25 + $0xcc] sm:$0xf]  ;;  %v8104_v0 = vunpack.c.l.bf16 %v11166_v36 }
 0x6b6   : > { %v8354_v23 = vmax.f32 %v8322_v9, 0.0  ;;  %v8323_v59 = vadd.f32 %v8291_v35, %v8199_v44  ;;  %v8103_v10 = vunpack.c.l.bf16 %v11165_v18  ;;  %v8217_v44 = vsel %vm8154_vm2, %v8215_v30, %v8216_v58  ;;  %v11168_v9 = vld [vmem:[%s11427_s25 + $0xc4] sm:$0xf] }
 0x6b7   : > { %8388 = vst [vmem:[%s14009_s15 + $0x90] sm:$0xff] %v8356_v49  ;;  %v8357_v2 = vmax.f32 %v8325_v47, 0.0  ;;  %v8101_v35 = vunpack.c.l.bf16 %v11168_v9  ;;  %v8224_v49 = vsel %vm8154_vm2, %v8221_v14, %v8223_v12  ;;  %v11169_v47 = vld [vmem:[%s11427_s25 + $0xd4] sm:$0x3]  ;;  %v8219_v31 = vsel %vm8154_vm2, %v8216_v58, %v8218_v61 }
 0x6b8   : > { %8386 = vst [vmem:[%s14009_s15 + $0x80] sm:$0xff] %v8354_v23  ;;  %v8355_v27 = vmax.f32 %v8323_v59, 0.0  ;;  %v10355_v33 = vpop.f32.mrb[40].mxu1  ;;  %v8105_v29 = vunpack.c.l.bf16 %v11169_v47  ;;  %v8231_v6 = vrot.slane %v8104_v0, 2 }
 0x6b9   : > { %8389 = vst [vmem:[%s14009_s15 + $0x98] sm:$0xff] %v8357_v2  ;;  %v8296_v41 = vadd.f32 %v10355_v33, %v13991_v15  ;;  %v7979_v1 = vpop.f32.mrb[41].mxu1  ;;  %v11170_v2 = vld [vmem:[%s11427_s25 + $0xc8] sm:$0x3]  ;;  %s9014_s25 = sshll.u32 %s11273_s21, 12  ;;  %s14146_s21 = scalar_lea.sflag [#allocation5], %s244_s9 }
 0x6ba   : > { %8387 = vst [vmem:[%s14009_s15 + $0x88] sm:$0xff] %v8355_v27  ;;  %v8294_v3 = vadd.f32 %v13991_v15, %v7979_v1  ;;  %v10356_v7 = vpop.f32.mrb[42].mxu1  ;;  %v8102_v25 = vunpack.c.l.bf16 %v11170_v2  ;;  %v8233_v43 = vrot.slane %v8105_v29, 2  ;;  %s14137_s8 = scalar_lea.hbm %s14197_s5, %s9014_s25 }
 0x6bb   : > { %v8328_v55 = vadd.f32 %v8296_v41, %v8212_v37  ;;  %v8297_v38 = vadd.f32 %v10356_v7, %v13991_v15  ;;  %v7982_v28 = vpop.f32.mrb[43].mxu1  ;;  %v8230_v37 = vrot.slane %v8103_v10, 2  ;;  %v8226_v41 = vrot.slane %v8101_v35, 2 }
 0x6bc   : > { %v8326_v24 = vadd.f32 %v8294_v3, %v8207_v51  ;;  %v8295_v21 = vadd.f32 %v13991_v15, %v7982_v28  ;;  %v8228_v17 = vrot.slane %v8102_v25, 2  ;;  %v8234_v28 = vsel %vm8154_vm2, %v8231_v6, %v8233_v43 }
 0x6bd   : > { %v8360_v13 = vmax.f32 %v8328_v55, 0.0  ;;  %v8329_v16 = vadd.f32 %v8297_v38, %v8214_v8  ;;  %v8232_v7 = vsel %vm8154_vm2, %v8230_v37, %v8231_v6  ;;  %v8227_v32 = vsel %vm8154_vm2, %v8225_v34, %v8226_v41 }
 0x6be   : > { %v8358_v52 = vmax.f32 %v8326_v24, 0.0  ;;  %v8327_v42 = vadd.f32 %v8295_v21, %v8209_v4  ;;  %v8229_v24 = vsel %vm8154_vm2, %v8226_v41, %v8228_v17 }
 0x6bf   : > { %8392 = vst [vmem:[%s14009_s15 + $0xb0] sm:$0xff] %v8360_v13  ;;  %v8361_v53 = vmax.f32 %v8329_v16, 0.0 }
 0x6c0   : > { %8390 = vst [vmem:[%s14009_s15 + $0xa0] sm:$0xff] %v8358_v52  ;;  %v8359_v45 = vmax.f32 %v8327_v42, 0.0  ;;  %v10359_v57 = vpop.f32.mrb[44].mxu1 }
 0x6c1   : > { %8393 = vst [vmem:[%s14009_s15 + $0xb8] sm:$0xff] %v8361_v53  ;;  %v8300_v60 = vadd.f32 %v10359_v57, %v13991_v15  ;;  %v7995_v54 = vpop.f32.mrb[45].mxu1 }
 0x6c2   : > { %8391 = vst [vmem:[%s14009_s15 + $0xa8] sm:$0xff] %v8359_v45  ;;  %v8298_v22 = vadd.f32 %v13991_v15, %v7995_v54  ;;  %v10360_v50 = vpop.f32.mrb[46].mxu1 }
 0x6c3   : > { %v8332_v62 = vadd.f32 %v8300_v60, %v8222_v5  ;;  %v8301_v23 = vadd.f32 %v10360_v50, %v13991_v15  ;;  %v7998_v59 = vpop.f32.mrb[47].mxu1 }
 0x6c4   : > { %v8330_v27 = vadd.f32 %v8298_v22, %v8217_v44  ;;  %v8299_v33 = vadd.f32 %v13991_v15, %v7998_v59 }
 0x6c5   : > { %v8364_v56 = vmax.f32 %v8332_v62, 0.0  ;;  %v8333_v46 = vadd.f32 %v8301_v23, %v8224_v49 }
 0x6c6   : > { %v8362_v1 = vmax.f32 %v8330_v27, 0.0  ;;  %v8331_v51 = vadd.f32 %v8299_v33, %v8219_v31 }
 0x6c7   : > { %8396 = vst [vmem:[%s14009_s15 + $0xd0] sm:$0xff] %v8364_v56  ;;  %v8365_v20 = vmax.f32 %v8333_v46, 0.0 }
 0x6c8   : > { %8394 = vst [vmem:[%s14009_s15 + $0xc0] sm:$0xff] %v8362_v1  ;;  %v8363_v40 = vmax.f32 %v8331_v51, 0.0  ;;  %v10363_v3 = vpop.f32.mrb[48].mxu1 }
 0x6c9   : > { %8397 = vst [vmem:[%s14009_s15 + $0xd8] sm:$0xff] %v8365_v20  ;;  %v8304_v8 = vadd.f32 %v10363_v3, %v13991_v15  ;;  %v8011_v19 = vpop.f32.mrb[49].mxu1 }
 0x6ca   : > { %8395 = vst [vmem:[%s14009_s15 + $0xc8] sm:$0xff] %v8363_v40  ;;  %v8302_v55 = vadd.f32 %v13991_v15, %v8011_v19  ;;  %v10364_v38 = vpop.f32.mrb[50].mxu1 }
 0x6cb   : > { %v8336_v4 = vadd.f32 %v8304_v8, %v8232_v7  ;;  %v8305_v63 = vadd.f32 %v10364_v38, %v13991_v15  ;;  %v8014_v11 = vpop.f32.mrb[51].mxu1 }
 0x6cc   : > { %v8334_v21 = vadd.f32 %v8302_v55, %v8227_v32  ;;  %v8303_v39 = vadd.f32 %v13991_v15, %v8014_v11 }
 0x6cd   : > { %v8368_v14 = vmax.f32 %v8336_v4, 0.0  ;;  %v8337_v13 = vadd.f32 %v8305_v63, %v8234_v28 }
 0x6ce   : > { %v8366_v16 = vmax.f32 %v8334_v21, 0.0  ;;  %v8335_v30 = vadd.f32 %v8303_v39, %v8229_v24 }
 0x6cf   : > { %8400 = vst [vmem:[%s14009_s15 + $0xf0] sm:$0xff] %v8368_v14  ;;  %v8369_v58 = vmax.f32 %v8337_v13, 0.0 }
 0x6d0   : > { %8398 = vst [vmem:[%s14009_s15 + $0xe0] sm:$0xff] %v8366_v16  ;;  %v8367_v15 = vmax.f32 %v8335_v30, 0.0 }
 0x6d1   : > { %8401 = vst [vmem:[%s14009_s15 + $0xf8] sm:$0xff] %v8369_v58 }
 0x6d2   : > { %8399 = vst [vmem:[%s14009_s15 + $0xe8] sm:$0xff] %v8367_v15 }
 0x6d3   : > { %11212 = shalt.err (!%p11209_p6)
}
 0x6d4   : > { %s11213_s29 = scalar_lea.hbm %s14137_s8, 4096  ;;  %s11217_s13 = scalar_lea.hbm %s14197_s5, 8192 }
 0x6d5   : > { %p11214_p7 = scmp.ne.s32.totalorder %s14137_s8, %s11213_s29  ;;  %p11218_p0 = scmp.lt.u32.totalorder %s14137_s8, %s14197_s5 }
 0x6d6   : > { %p11219_p2 = scmp.lt.u32.totalorder %s11217_s13, %s11213_s29  ;;  %p11221_p8 = scmp.lt.u32.totalorder %s11213_s29, %s14137_s8 }
 0x6d7   : > { %p11215_p9 = pnand %p11214_p7, %p14729_p10 }
 0x6d8   : > { %p11220_p4 = por %p11219_p2, %p11218_p0 }
 0x6d9   : > { %p11216_p12 = pneg %p11215_p9 }
 0x6da   : > { %p11222_p11 = por %p11221_p8, %p11220_p4 }
 0x6dc   : > { %p11223_p13 = pnand %p11222_p11, %p11216_p12 }
 0x6de   : > { %11226 = shalt.err (!%p11223_p13)
}
 0x6df   : > { %s11288_s25 = smov 128   ;;  %s11289_s16 = smov 8  }
 0x6e0   : > { %10866 = dma.vmem_to_hbm [thread:$0]  (%p14729_p10), %s14139_s11, 4096, %s14137_s8, %s14146_s21, %s11288_s25, %s11288_s25, %s11289_s16  }
 0x6e1 PF: > { %p10878_p1 = scmp.ge.s32.totalorder %s11281_s23, 2  ;;  %s8434_s7 = sand.u32 1, %s11261_s18  }
 0x6e2   : > { %p14730_p3 = scmp.ne.s32.totalorder %s14419_s30, 0  ;;  %s8435_s10 = scalar_lea.sflag [#allocation5], %s8434_s7 }
 0x6e4   : > { %p10873_p5 = pnand %p10878_p1, %p14730_p3 }
 0x6e6   : > { %11256 = dma.done.wait (!%p10873_p5), %s8435_s10, 4096  }
 0x6e7   : > { %11258 = vsyncadd (!%p10873_p5), %s8435_s10, 4294963200  ;;  %s19_s23 = sadd.s32 1, %s11281_s23   ;;  %s14731_s18 = smov %s11265_s19 }
 0x6e8   : > { %p16_p6 = scmp.ge.s32.totalorder %s19_s23, 4   ;;  %s14732_s19 = smov %s11269_s20 }
 0x6e9   : > { %s14733_s20 = smov %s11373_s6  ;;  %s14734_s21 = smov %s11277_s22 }
 0x6ea   : > { %s14735_s22 = smov %s14737_s26  ;;  %18 = sbr.rel (!%p16_p6) target bundleno = 5 (0x5), region = 101 }
 0x6f1   :  { %8440 = vsyncpa [#allocation4], 1 }
 0x6f2   :  { %8442 = vsyncpa [#allocation4 + $0x1], 1 }
 0x6f3   :  { %8443 = vsyncpa [#allocation5], 1 }
 0x6f4   :  { %8445 = vsyncpa [#allocation5 + $0x1], 1 }

</bundles_post_ra>
